<compile_context>
chip_gen: v7x
topology: tpu7x:2x2x1
jax: 0.10.0
libtpu: 0.0.40
codegen_flags: <defaults>
</compile_context>

<pallas_src>
import math

import jax
import jax.numpy as jnp
from jax.experimental import pallas as pl
from jax.experimental.pallas import tpu as pltpu  # noqa: F401  (TPU backend)

# ----------------------- config (small, consistent with the module) -----------------------
B = 2            # batch
S_DEC = 8        # decoder sequence length
S_ENC = 8        # encoder sequence length
D_MODEL = 32
N_HEAD = 4
D_HEAD = D_MODEL // N_HEAD
FFN_HIDDEN = 64
VOCAB = 50       # dec_voc_size
VPAD = 128       # vocab padded to a full lane tile (lane-dense stores / MXU-friendly K)
N_LAYERS = 2
MAX_LEN = 64
LN_EPS = 1e-12   # custom LayerNorm eps used by the reference repo
MASK_FILL = -10000.0


# --------------------------------- in-kernel helpers ---------------------------------------
def _layernorm(h, g, b):
    # post-LN: (x - mean) / sqrt(var + eps) * gamma + beta  (rsqrt -> EUP)
    mean = jnp.mean(h, axis=-1, keepdims=True)
    var = jnp.mean(jnp.square(h - mean), axis=-1, keepdims=True)
    return (h - mean) * jax.lax.rsqrt(var + LN_EPS) * g + b


def _attention_core(q, k, v, s_q, s_kv, mask_f, wo, bo):
    """Multi-head attention core.

    q: (B*s_q, D); k, v: (B*s_kv, D); mask_f: (B, s_q, s_kv) float with 1=keep, 0=mask.
    Returns (B*s_q, D): softmax(QK^T/sqrt(dh)) V, heads concatenated, then one output proj.
    """
    scale = 1.0 / math.sqrt(D_HEAD)
    ctx_rows = []
    for b in range(B):                       # tiny static loop (B = 2)
        qb = q[b * s_q:(b + 1) * s_q, :]
        kb = k[b * s_kv:(b + 1) * s_kv, :]
        vb = v[b * s_kv:(b + 1) * s_kv, :]
        keep_b = mask_f[b] > 0.5             # hoisted out of the head loop
        heads = []
        for h in range(N_HEAD):              # static loop; heads live in column slabs
            sl = slice(h * D_HEAD, (h + 1) * D_HEAD)
            sc = jax.lax.dot_general(qb[:, sl], kb[:, sl], (((1,), (1,)), ((), ())),
                                     preferred_element_type=jnp.float32) * scale
            sc = jnp.where(keep_b, sc, MASK_FILL)
            sc = sc - jnp.max(sc, axis=-1, keepdims=True)
            p = jnp.exp(sc)
            p = p * pl.reciprocal(jnp.sum(p, axis=-1, keepdims=True), approx=True)
            heads.append(jnp.dot(p, vb[:, sl], preferred_element_type=jnp.float32))
        ctx_rows.append(jnp.concatenate(heads, axis=-1))      # (s_q, D) concat over heads
    ctx = jnp.concatenate(ctx_rows, axis=0)                   # (B*s_q, D)
    # single concat-then-project output matmul (K = D_MODEL)
    return jnp.dot(ctx, wo, preferred_element_type=jnp.float32) + bo


# ------------------------------------ fused kernel ------------------------------------------
def _decoder_kernel(ids_ref, enc_ref, tgt_mask_ref, src_mask_ref,
                    emb_ref, pos_ref,
                    sa_wqkv_ref, sa_bqkv_ref, sa_wo_ref, sa_bo_ref,
                    ca_wq_ref, ca_bq_ref, ca_wkv_ref, ca_bkv_ref, ca_wo_ref, ca_bo_ref,
                    w1_ref, b1_ref, w2_ref, b2_ref,
                    ln1_g_ref, ln1_b_ref, ln2_g_ref, ln2_b_ref, ln3_g_ref, ln3_b_ref,
                    lin_w_ref, lin_b_ref, out_ref):
    bs = B * S_DEC

    # --- TransformerEmbedding: one-hot gather on the MXU + sinusoidal positional add ---
    ids = ids_ref[...]                                                   # (BS, 1) int32
    vocab_iota = jax.lax.broadcasted_iota(jnp.int32, (bs, VPAD), 1)
    onehot = (vocab_iota == ids).astype(jnp.float32)                     # (BS, VPAD)
    x = jnp.dot(onehot, emb_ref[...], preferred_element_type=jnp.float32)  # (BS, D)
    x = x + jnp.concatenate([pos_ref[...]] * B, axis=0)                  # tile pos over batch
    # TODO(synk): dropout layers omitted (eval-mode identity).

    enc = enc_ref[...]                                                   # (B*S_ENC, D)
    tgt_mask = tgt_mask_ref[...]                                         # (B, S, S)
    src_mask = src_mask_ref[...]                                         # (B, S, S_ENC)

    for l in range(N_LAYERS):
        # ---- masked self-attention (fused QKV projection) + residual + post-LN ----
        qkv = jnp.dot(x, sa_wqkv_ref[l], preferred_element_type=jnp.float32) + sa_bqkv_ref[l]
        a = _attention_core(qkv[:, :D_MODEL],
                            qkv[:, D_MODEL:2 * D_MODEL],
                            qkv[:, 2 * D_MODEL:],
                            S_DEC, S_DEC, tgt_mask, sa_wo_ref[l], sa_bo_ref[l])
        x = _layernorm(a + x, ln1_g_ref[l], ln1_b_ref[l])

        # ---- encoder-decoder attention (fused KV projection) + residual + post-LN ----
        q = jnp.dot(x, ca_wq_ref[l], preferred_element_type=jnp.float32) + ca_bq_ref[l]
        kv = jnp.dot(enc, ca_wkv_ref[l], preferred_element_type=jnp.float32) + ca_bkv_ref[l]
        a = _attention_core(q, kv[:, :D_MODEL], kv[:, D_MODEL:],
                            S_DEC, S_ENC, src_mask, ca_wo_ref[l], ca_bo_ref[l])
        x = _layernorm(a + x, ln2_g_ref[l], ln2_b_ref[l])

        # ---- position-wise FFN (Linear -> ReLU -> Linear) + residual + post-LN ----
        h = jnp.dot(x, w1_ref[l], preferred_element_type=jnp.float32) + b1_ref[l]
        h = jnp.maximum(h, 0.0)
        f = jnp.dot(h, w2_ref[l], preferred_element_type=jnp.float32) + b2_ref[l]
        x = _layernorm(f + x, ln3_g_ref[l], ln3_b_ref[l])

    # ---- final Linear(d_model -> vocab), lane-padded to VPAD for a dense store ----
    out_ref[...] = jnp.dot(x, lin_w_ref[...], preferred_element_type=jnp.float32) + lin_b_ref[...]


# -------------------------------------- wrapper ---------------------------------------------
def decoder_forward(dec_tokens, enc_x, tgt_mask, src_mask, params):
    bsz, s = dec_tokens.shape
    s_enc = enc_x.shape[1]
    ids = dec_tokens.reshape(bsz * s, 1).astype(jnp.int32)
    enc_flat = enc_x.reshape(bsz * s_enc, D_MODEL).astype(jnp.float32)
    pos = params["pos_enc"][:s]

    logits_pad = pl.pallas_call(
        _decoder_kernel,
        out_shape=jax.ShapeDtypeStruct((bsz * s, VPAD), jnp.float32),
    )(ids, enc_flat, tgt_mask.astype(jnp.float32), src_mask.astype(jnp.float32),
      params["emb"], pos,
      params["sa_wqkv"], params["sa_bqkv"], params["sa_wo"], params["sa_bo"],
      params["ca_wq"], params["ca_bq"], params["ca_wkv"], params["ca_bkv"],
      params["ca_wo"], params["ca_bo"],
      params["ffn_w1"], params["ffn_b1"], params["ffn_w2"], params["ffn_b2"],
      params["ln1_g"], params["ln1_b"], params["ln2_g"], params["ln2_b"],
      params["ln3_g"], params["ln3_b"],
      params["lin_w"], params["lin_b"])

    return logits_pad.reshape(bsz, s, VPAD)[:, :, :VOCAB]


# -------------------------------- parameters / embedding -------------------------------------
def sinusoid_pos_encoding(max_len, d_model):
    pos = jnp.arange(max_len, dtype=jnp.float32)[:, None]
    i2 = jnp.arange(0, d_model, 2, dtype=jnp.float32)
    angle = pos / jnp.power(10000.0, i2 / d_model)
    pe = jnp.zeros((max_len, d_model), jnp.float32)
    pe = pe.at[:, 0::2].set(jnp.sin(angle))
    pe = pe.at[:, 1::2].set(jnp.cos(angle))
    return pe


def _dense(key, fan_in, fan_out):
    kw, kb = jax.random.split(key)
    w = jax.random.normal(kw, (fan_in, fan_out), jnp.float32) * 0.02
    b = jax.random.normal(kb, (1, fan_out), jnp.float32) * 0.02
    return w, b


def init_params(key):
    keys = jax.random.split(key, 2 + N_LAYERS)

    tok_emb = jax.random.normal(keys[0], (VOCAB, D_MODEL), jnp.float32) * 0.02
    emb = jnp.zeros((VPAD, D_MODEL), jnp.float32).at[:VOCAB].set(tok_emb)

    lw, lb = _dense(keys[1], D_MODEL, VOCAB)
    lin_w = jnp.zeros((D_MODEL, VPAD), jnp.float32).at[:, :VOCAB].set(lw)
    lin_b = jnp.zeros((1, VPAD), jnp.float32).at[:, :VOCAB].set(lb)

    names = ("sa_wqkv", "sa_bqkv", "sa_wo", "sa_bo",
             "ca_wq", "ca_bq", "ca_wkv", "ca_bkv", "ca_wo", "ca_bo",
             "ffn_w1", "ffn_b1", "ffn_w2", "ffn_b2",
             "ln1_g", "ln1_b", "ln2_g", "ln2_b", "ln3_g", "ln3_b")
    acc = {n: [] for n in names}
    ones = jnp.ones((1, D_MODEL), jnp.float32)
    zeros = jnp.zeros((1, D_MODEL), jnp.float32)

    for i in range(N_LAYERS):
        lk = jax.random.split(keys[2 + i], 10)
        sa_q_w, sa_q_b = _dense(lk[0], D_MODEL, D_MODEL)
        sa_k_w, sa_k_b = _dense(lk[1], D_MODEL, D_MODEL)
        sa_v_w, sa_v_b = _dense(lk[2], D_MODEL, D_MODEL)
        sa_o_w, sa_o_b = _dense(lk[3], D_MODEL, D_MODEL)
        ca_q_w, ca_q_b = _dense(lk[4], D_MODEL, D_MODEL)
        ca_k_w, ca_k_b = _dense(lk[5], D_MODEL, D_MODEL)
        ca_v_w, ca_v_b = _dense(lk[6], D_MODEL, D_MODEL)
        ca_o_w, ca_o_b = _dense(lk[7], D_MODEL, D_MODEL)
        w1, b1 = _dense(lk[8], D_MODEL, FFN_HIDDEN)
        w2, b2 = _dense(lk[9], FFN_HIDDEN, D_MODEL)

        acc["sa_wqkv"].append(jnp.concatenate([sa_q_w, sa_k_w, sa_v_w], axis=1))
        acc["sa_bqkv"].append(jnp.concatenate([sa_q_b, sa_k_b, sa_v_b], axis=1))
        acc["sa_wo"].append(sa_o_w)
        acc["sa_bo"].append(sa_o_b)
        acc["ca_wq"].append(ca_q_w)
        acc["ca_bq"].append(ca_q_b)
        acc["ca_wkv"].append(jnp.concatenate([ca_k_w, ca_v_w], axis=1))
        acc["ca_bkv"].append(jnp.concatenate([ca_k_b, ca_v_b], axis=1))
        acc["ca_wo"].append(ca_o_w)
        acc["ca_bo"].append(ca_o_b)
        acc["ffn_w1"].append(w1)
        acc["ffn_b1"].append(b1)
        acc["ffn_w2"].append(w2)
        acc["ffn_b2"].append(b2)
        for n in ("ln1", "ln2", "ln3"):
            acc[n + "_g"].append(ones)
            acc[n + "_b"].append(zeros)

    params = {k: jnp.stack(v, axis=0) for k, v in acc.items()}
    params["emb"] = emb
    params["pos_enc"] = sinusoid_pos_encoding(MAX_LEN, D_MODEL)
    params["lin_w"] = lin_w
    params["lin_b"] = lin_b
    return params


# ------------------------------------------ main --------------------------------------------
if __name__ == "__main__":
    key = jax.random.PRNGKey(0)
    k_tok, k_enc, k_par = jax.random.split(key, 3)

    dec_tokens = jax.random.randint(k_tok, (B, S_DEC), 0, VOCAB)                 # token ids
    enc_x = jax.random.normal(k_enc, (B, S_ENC, D_MODEL), jnp.float32)           # encoder output
    # tgt_mask: causal mask (1=keep, 0=mask); src_mask: no padding
    tgt_mask = jnp.broadcast_to(
        jnp.tril(jnp.ones((S_DEC, S_DEC), jnp.float32)), (B, S_DEC, S_DEC))
    src_mask = jnp.ones((B, S_DEC, S_ENC), jnp.float32)

    params = init_params(k_par)

    logits = decoder_forward(dec_tokens, enc_x, tgt_mask, src_mask, params)
    logits = jax.block_until_ready(logits)

    assert logits.shape == (B, S_DEC, VOCAB), logits.shape
    assert bool(jnp.all(jnp.isfinite(logits)))
    print("KERNEL_OK")
</pallas_src>

<mosaic_0001>
module attributes {stable_mosaic.version = 11 : i64} {
  func.func @_decoder_kernel(%arg0: memref<16x1xi32, #tpu.memory_space<vmem>>, %arg1: memref<16x32xf32, #tpu.memory_space<vmem>>, %arg2: memref<2x8x8xf32, #tpu.memory_space<vmem>>, %arg3: memref<2x8x8xf32, #tpu.memory_space<vmem>>, %arg4: memref<128x32xf32, #tpu.memory_space<vmem>>, %arg5: memref<8x32xf32, #tpu.memory_space<vmem>>, %arg6: memref<2x32x96xf32, #tpu.memory_space<vmem>>, %arg7: memref<2x1x96xf32, #tpu.memory_space<vmem>>, %arg8: memref<2x32x32xf32, #tpu.memory_space<vmem>>, %arg9: memref<2x1x32xf32, #tpu.memory_space<vmem>>, %arg10: memref<2x32x32xf32, #tpu.memory_space<vmem>>, %arg11: memref<2x1x32xf32, #tpu.memory_space<vmem>>, %arg12: memref<2x32x64xf32, #tpu.memory_space<vmem>>, %arg13: memref<2x1x64xf32, #tpu.memory_space<vmem>>, %arg14: memref<2x32x32xf32, #tpu.memory_space<vmem>>, %arg15: memref<2x1x32xf32, #tpu.memory_space<vmem>>, %arg16: memref<2x32x64xf32, #tpu.memory_space<vmem>>, %arg17: memref<2x1x64xf32, #tpu.memory_space<vmem>>, %arg18: memref<2x64x32xf32, #tpu.memory_space<vmem>>, %arg19: memref<2x1x32xf32, #tpu.memory_space<vmem>>, %arg20: memref<2x1x32xf32, #tpu.memory_space<vmem>>, %arg21: memref<2x1x32xf32, #tpu.memory_space<vmem>>, %arg22: memref<2x1x32xf32, #tpu.memory_space<vmem>>, %arg23: memref<2x1x32xf32, #tpu.memory_space<vmem>>, %arg24: memref<2x1x32xf32, #tpu.memory_space<vmem>>, %arg25: memref<2x1x32xf32, #tpu.memory_space<vmem>>, %arg26: memref<32x128xf32, #tpu.memory_space<vmem>>, %arg27: memref<1x128xf32, #tpu.memory_space<vmem>>, %arg28: memref<16x128xf32, #tpu.memory_space<vmem>>) attributes {dimension_semantics = [], scalar_prefetch = 0 : i64, scratch_operands = 0 : i64, tpu.core_type = #tpu.core_type<tc>} {
    %c0 = arith.constant 0 : index
    %c0_0 = arith.constant 0 : index
    %0 = vector.load %arg0[%c0, %c0_0] : memref<16x1xi32, #tpu.memory_space<vmem>>, vector<16x1xi32>
    %1 = tpu.iota {dimensions = array<i32: 1>} : vector<16x128xi32>
    %2 = vector.broadcast %0 : vector<16x1xi32> to vector<16x128xi32>
    %3 = arith.cmpi eq, %1, %2 : vector<16x128xi32>
    %4 = arith.extui %3 : vector<16x128xi1> to vector<16x128xi32>
    %5 = arith.sitofp %4 : vector<16x128xi32> to vector<16x128xf32>
    %c0_1 = arith.constant 0 : index
    %c0_2 = arith.constant 0 : index
    %6 = vector.load %arg4[%c0_1, %c0_2] : memref<128x32xf32, #tpu.memory_space<vmem>>, vector<128x32xf32>
    %cst = arith.constant dense<0.000000e+00> : vector<16x32xf32>
    %7 = tpu.matmul %5, %6, %cst {dimension_numbers = #tpu.dot_dimension_numbers<[1], [0], [0], [1], [0, 0, 1, 1], [], []>} : vector<16x128xf32>, vector<128x32xf32>, vector<16x32xf32> -> vector<16x32xf32>
    %c0_3 = arith.constant 0 : index
    %c0_4 = arith.constant 0 : index
    %8 = vector.load %arg5[%c0_3, %c0_4] : memref<8x32xf32, #tpu.memory_space<vmem>>, vector<8x32xf32>
    %9 = tpu.concatenate %8, %8 in 0 : vector<8x32xf32>, vector<8x32xf32> -> vector<16x32xf32>
    %10 = arith.addf %7, %9 : vector<16x32xf32>
    %c0_5 = arith.constant 0 : index
    %c0_6 = arith.constant 0 : index
    %11 = vector.load %arg1[%c0_5, %c0_6] : memref<16x32xf32, #tpu.memory_space<vmem>>, vector<16x32xf32>
    %c0_7 = arith.constant 0 : index
    %c0_8 = arith.constant 0 : index
    %c0_9 = arith.constant 0 : index
    %12 = vector.load %arg2[%c0_7, %c0_8, %c0_9] : memref<2x8x8xf32, #tpu.memory_space<vmem>>, vector<2x8x8xf32>
    %c0_10 = arith.constant 0 : index
    %c0_11 = arith.constant 0 : index
    %c0_12 = arith.constant 0 : index
    %13 = vector.load %arg3[%c0_10, %c0_11, %c0_12] : memref<2x8x8xf32, #tpu.memory_space<vmem>>, vector<2x8x8xf32>
    %c0_13 = arith.constant 0 : index
    %c0_14 = arith.constant 0 : index
    %c0_15 = arith.constant 0 : index
    %14 = vector.load %arg6[%c0_13, %c0_14, %c0_15] : memref<2x32x96xf32, #tpu.memory_space<vmem>>, vector<1x32x96xf32>
    %15 = vector.shape_cast %14 : vector<1x32x96xf32> to vector<32x96xf32>
    %cst_16 = arith.constant dense<0.000000e+00> : vector<16x96xf32>
    %16 = tpu.matmul %10, %15, %cst_16 {dimension_numbers = #tpu.dot_dimension_numbers<[1], [0], [0], [1], [0, 0, 1, 1], [], []>} : vector<16x32xf32>, vector<32x96xf32>, vector<16x96xf32> -> vector<16x96xf32>
    %c0_17 = arith.constant 0 : index
    %c0_18 = arith.constant 0 : index
    %c0_19 = arith.constant 0 : index
    %17 = vector.load %arg7[%c0_17, %c0_18, %c0_19] : memref<2x1x96xf32, #tpu.memory_space<vmem>>, vector<1x1x96xf32>
    %18 = vector.shape_cast %17 : vector<1x1x96xf32> to vector<1x96xf32>
    %19 = vector.broadcast %18 : vector<1x96xf32> to vector<16x96xf32>
    %20 = arith.addf %16, %19 : vector<16x96xf32>
    %21 = vector.extract_strided_slice %20 {offsets = [0, 0], sizes = [16, 32], strides = [1, 1]} : vector<16x96xf32> to vector<16x32xf32>
    %22 = vector.extract_strided_slice %20 {offsets = [0, 32], sizes = [16, 32], strides = [1, 1]} : vector<16x96xf32> to vector<16x32xf32>
    %23 = vector.extract_strided_slice %20 {offsets = [0, 64], sizes = [16, 32], strides = [1, 1]} : vector<16x96xf32> to vector<16x32xf32>
    %c0_20 = arith.constant 0 : index
    %c0_21 = arith.constant 0 : index
    %c0_22 = arith.constant 0 : index
    %24 = vector.load %arg8[%c0_20, %c0_21, %c0_22] : memref<2x32x32xf32, #tpu.memory_space<vmem>>, vector<1x32x32xf32>
    %25 = vector.shape_cast %24 : vector<1x32x32xf32> to vector<32x32xf32>
    %c0_23 = arith.constant 0 : index
    %c0_24 = arith.constant 0 : index
    %c0_25 = arith.constant 0 : index
    %26 = vector.load %arg9[%c0_23, %c0_24, %c0_25] : memref<2x1x32xf32, #tpu.memory_space<vmem>>, vector<1x1x32xf32>
    %27 = vector.shape_cast %26 : vector<1x1x32xf32> to vector<1x32xf32>
    %28 = vector.extract_strided_slice %21 {offsets = [0, 0], sizes = [8, 32], strides = [1, 1]} : vector<16x32xf32> to vector<8x32xf32>
    %29 = vector.extract_strided_slice %22 {offsets = [0, 0], sizes = [8, 32], strides = [1, 1]} : vector<16x32xf32> to vector<8x32xf32>
    %30 = vector.extract_strided_slice %23 {offsets = [0, 0], sizes = [8, 32], strides = [1, 1]} : vector<16x32xf32> to vector<8x32xf32>
    %31 = vector.extract_strided_slice %12 {offsets = [0, 0, 0], sizes = [1, 8, 8], strides = [1, 1, 1]} : vector<2x8x8xf32> to vector<1x8x8xf32>
    %32 = vector.shape_cast %31 : vector<1x8x8xf32> to vector<8x8xf32>
    %cst_26 = arith.constant 5.000000e-01 : f32
    %33 = vector.broadcast %cst_26 : f32 to vector<8x8xf32>
    %34 = arith.cmpf ogt, %32, %33 : vector<8x8xf32>
    %35 = vector.extract_strided_slice %28 {offsets = [0, 0], sizes = [8, 8], strides = [1, 1]} : vector<8x32xf32> to vector<8x8xf32>
    %36 = vector.extract_strided_slice %29 {offsets = [0, 0], sizes = [8, 8], strides = [1, 1]} : vector<8x32xf32> to vector<8x8xf32>
    %cst_27 = arith.constant dense<0.000000e+00> : vector<8x8xf32>
    %37 = tpu.matmul %35, %36, %cst_27 {dimension_numbers = #tpu.dot_dimension_numbers<[1], [1], [0], [0], [0, 0, 1, 0], [], []>} : vector<8x8xf32>, vector<8x8xf32>, vector<8x8xf32> -> vector<8x8xf32>
    %cst_28 = arith.constant 0.353553385 : f32
    %38 = vector.broadcast %cst_28 : f32 to vector<8x8xf32>
    %39 = arith.mulf %37, %38 : vector<8x8xf32>
    %cst_29 = arith.constant -1.000000e+04 : f32
    %40 = vector.broadcast %cst_29 : f32 to vector<8x8xf32>
    %41 = arith.select %34, %39, %40 : vector<8x8xi1>, vector<8x8xf32>
    %cst_30 = arith.constant dense<0xFF800000> : vector<8xf32>
    %42 = vector.multi_reduction <maximumf>, %41, %cst_30 [1] : vector<8x8xf32> to vector<8xf32>
    %43 = vector.shape_cast %42 : vector<8xf32> to vector<8x1xf32>
    %44 = vector.broadcast %43 : vector<8x1xf32> to vector<8x8xf32>
    %45 = arith.subf %41, %44 : vector<8x8xf32>
    %46 = math.exp %45 : vector<8x8xf32>
    %cst_31 = arith.constant dense<0.000000e+00> : vector<8xf32>
    %47 = vector.multi_reduction <add>, %46, %cst_31 [1] : vector<8x8xf32> to vector<8xf32>
    %48 = vector.shape_cast %47 : vector<8xf32> to vector<8x1xf32>
    %49 = tpu.reciprocal %48 {approx = true} : vector<8x1xf32> -> vector<8x1xf32>
    %50 = vector.broadcast %49 : vector<8x1xf32> to vector<8x8xf32>
    %51 = arith.mulf %46, %50 : vector<8x8xf32>
    %52 = vector.extract_strided_slice %30 {offsets = [0, 0], sizes = [8, 8], strides = [1, 1]} : vector<8x32xf32> to vector<8x8xf32>
    %cst_32 = arith.constant dense<0.000000e+00> : vector<8x8xf32>
    %53 = tpu.matmul %51, %52, %cst_32 {dimension_numbers = #tpu.dot_dimension_numbers<[1], [0], [0], [1], [0, 0, 1, 1], [], []>} : vector<8x8xf32>, vector<8x8xf32>, vector<8x8xf32> -> vector<8x8xf32>
    %54 = vector.extract_strided_slice %28 {offsets = [0, 8], sizes = [8, 8], strides = [1, 1]} : vector<8x32xf32> to vector<8x8xf32>
    %55 = vector.extract_strided_slice %29 {offsets = [0, 8], sizes = [8, 8], strides = [1, 1]} : vector<8x32xf32> to vector<8x8xf32>
    %cst_33 = arith.constant dense<0.000000e+00> : vector<8x8xf32>
    %56 = tpu.matmul %54, %55, %cst_33 {dimension_numbers = #tpu.dot_dimension_numbers<[1], [1], [0], [0], [0, 0, 1, 0], [], []>} : vector<8x8xf32>, vector<8x8xf32>, vector<8x8xf32> -> vector<8x8xf32>
    %cst_34 = arith.constant 0.353553385 : f32
    %57 = vector.broadcast %cst_34 : f32 to vector<8x8xf32>
    %58 = arith.mulf %56, %57 : vector<8x8xf32>
    %cst_35 = arith.constant -1.000000e+04 : f32
    %59 = vector.broadcast %cst_35 : f32 to vector<8x8xf32>
    %60 = arith.select %34, %58, %59 : vector<8x8xi1>, vector<8x8xf32>
    %cst_36 = arith.constant dense<0xFF800000> : vector<8xf32>
    %61 = vector.multi_reduction <maximumf>, %60, %cst_36 [1] : vector<8x8xf32> to vector<8xf32>
    %62 = vector.shape_cast %61 : vector<8xf32> to vector<8x1xf32>
    %63 = vector.broadcast %62 : vector<8x1xf32> to vector<8x8xf32>
    %64 = arith.subf %60, %63 : vector<8x8xf32>
    %65 = math.exp %64 : vector<8x8xf32>
    %cst_37 = arith.constant dense<0.000000e+00> : vector<8xf32>
    %66 = vector.multi_reduction <add>, %65, %cst_37 [1] : vector<8x8xf32> to vector<8xf32>
    %67 = vector.shape_cast %66 : vector<8xf32> to vector<8x1xf32>
    %68 = tpu.reciprocal %67 {approx = true} : vector<8x1xf32> -> vector<8x1xf32>
    %69 = vector.broadcast %68 : vector<8x1xf32> to vector<8x8xf32>
    %70 = arith.mulf %65, %69 : vector<8x8xf32>
    %71 = vector.extract_strided_slice %30 {offsets = [0, 8], sizes = [8, 8], strides = [1, 1]} : vector<8x32xf32> to vector<8x8xf32>
    %cst_38 = arith.constant dense<0.000000e+00> : vector<8x8xf32>
    %72 = tpu.matmul %70, %71, %cst_38 {dimension_numbers = #tpu.dot_dimension_numbers<[1], [0], [0], [1], [0, 0, 1, 1], [], []>} : vector<8x8xf32>, vector<8x8xf32>, vector<8x8xf32> -> vector<8x8xf32>
    %73 = vector.extract_strided_slice %28 {offsets = [0, 16], sizes = [8, 8], strides = [1, 1]} : vector<8x32xf32> to vector<8x8xf32>
    %74 = vector.extract_strided_slice %29 {offsets = [0, 16], sizes = [8, 8], strides = [1, 1]} : vector<8x32xf32> to vector<8x8xf32>
    %cst_39 = arith.constant dense<0.000000e+00> : vector<8x8xf32>
    %75 = tpu.matmul %73, %74, %cst_39 {dimension_numbers = #tpu.dot_dimension_numbers<[1], [1], [0], [0], [0, 0, 1, 0], [], []>} : vector<8x8xf32>, vector<8x8xf32>, vector<8x8xf32> -> vector<8x8xf32>
    %cst_40 = arith.constant 0.353553385 : f32
    %76 = vector.broadcast %cst_40 : f32 to vector<8x8xf32>
    %77 = arith.mulf %75, %76 : vector<8x8xf32>
    %cst_41 = arith.constant -1.000000e+04 : f32
    %78 = vector.broadcast %cst_41 : f32 to vector<8x8xf32>
    %79 = arith.select %34, %77, %78 : vector<8x8xi1>, vector<8x8xf32>
    %cst_42 = arith.constant dense<0xFF800000> : vector<8xf32>
    %80 = vector.multi_reduction <maximumf>, %79, %cst_42 [1] : vector<8x8xf32> to vector<8xf32>
    %81 = vector.shape_cast %80 : vector<8xf32> to vector<8x1xf32>
    %82 = vector.broadcast %81 : vector<8x1xf32> to vector<8x8xf32>
    %83 = arith.subf %79, %82 : vector<8x8xf32>
    %84 = math.exp %83 : vector<8x8xf32>
    %cst_43 = arith.constant dense<0.000000e+00> : vector<8xf32>
    %85 = vector.multi_reduction <add>, %84, %cst_43 [1] : vector<8x8xf32> to vector<8xf32>
    %86 = vector.shape_cast %85 : vector<8xf32> to vector<8x1xf32>
    %87 = tpu.reciprocal %86 {approx = true} : vector<8x1xf32> -> vector<8x1xf32>
    %88 = vector.broadcast %87 : vector<8x1xf32> to vector<8x8xf32>
    %89 = arith.mulf %84, %88 : vector<8x8xf32>
    %90 = vector.extract_strided_slice %30 {offsets = [0, 16], sizes = [8, 8], strides = [1, 1]} : vector<8x32xf32> to vector<8x8xf32>
    %cst_44 = arith.constant dense<0.000000e+00> : vector<8x8xf32>
    %91 = tpu.matmul %89, %90, %cst_44 {dimension_numbers = #tpu.dot_dimension_numbers<[1], [0], [0], [1], [0, 0, 1, 1], [], []>} : vector<8x8xf32>, vector<8x8xf32>, vector<8x8xf32> -> vector<8x8xf32>
    %92 = vector.extract_strided_slice %28 {offsets = [0, 24], sizes = [8, 8], strides = [1, 1]} : vector<8x32xf32> to vector<8x8xf32>
    %93 = vector.extract_strided_slice %29 {offsets = [0, 24], sizes = [8, 8], strides = [1, 1]} : vector<8x32xf32> to vector<8x8xf32>
    %cst_45 = arith.constant dense<0.000000e+00> : vector<8x8xf32>
    %94 = tpu.matmul %92, %93, %cst_45 {dimension_numbers = #tpu.dot_dimension_numbers<[1], [1], [0], [0], [0, 0, 1, 0], [], []>} : vector<8x8xf32>, vector<8x8xf32>, vector<8x8xf32> -> vector<8x8xf32>
    %cst_46 = arith.constant 0.353553385 : f32
    %95 = vector.broadcast %cst_46 : f32 to vector<8x8xf32>
    %96 = arith.mulf %94, %95 : vector<8x8xf32>
    %cst_47 = arith.constant -1.000000e+04 : f32
    %97 = vector.broadcast %cst_47 : f32 to vector<8x8xf32>
    %98 = arith.select %34, %96, %97 : vector<8x8xi1>, vector<8x8xf32>
    %cst_48 = arith.constant dense<0xFF800000> : vector<8xf32>
    %99 = vector.multi_reduction <maximumf>, %98, %cst_48 [1] : vector<8x8xf32> to vector<8xf32>
    %100 = vector.shape_cast %99 : vector<8xf32> to vector<8x1xf32>
    %101 = vector.broadcast %100 : vector<8x1xf32> to vector<8x8xf32>
    %102 = arith.subf %98, %101 : vector<8x8xf32>
    %103 = math.exp %102 : vector<8x8xf32>
    %cst_49 = arith.constant dense<0.000000e+00> : vector<8xf32>
    %104 = vector.multi_reduction <add>, %103, %cst_49 [1] : vector<8x8xf32> to vector<8xf32>
    %105 = vector.shape_cast %104 : vector<8xf32> to vector<8x1xf32>
    %106 = tpu.reciprocal %105 {approx = true} : vector<8x1xf32> -> vector<8x1xf32>
    %107 = vector.broadcast %106 : vector<8x1xf32> to vector<8x8xf32>
    %108 = arith.mulf %103, %107 : vector<8x8xf32>
    %109 = vector.extract_strided_slice %30 {offsets = [0, 24], sizes = [8, 8], strides = [1, 1]} : vector<8x32xf32> to vector<8x8xf32>
    %cst_50 = arith.constant dense<0.000000e+00> : vector<8x8xf32>
    %110 = tpu.matmul %108, %109, %cst_50 {dimension_numbers = #tpu.dot_dimension_numbers<[1], [0], [0], [1], [0, 0, 1, 1], [], []>} : vector<8x8xf32>, vector<8x8xf32>, vector<8x8xf32> -> vector<8x8xf32>
    %111 = tpu.concatenate %53, %72, %91, %110 in 1 : vector<8x8xf32>, vector<8x8xf32>, vector<8x8xf32>, vector<8x8xf32> -> vector<8x32xf32>
    %112 = vector.extract_strided_slice %21 {offsets = [8, 0], sizes = [8, 32], strides = [1, 1]} : vector<16x32xf32> to vector<8x32xf32>
    %113 = vector.extract_strided_slice %22 {offsets = [8, 0], sizes = [8, 32], strides = [1, 1]} : vector<16x32xf32> to vector<8x32xf32>
    %114 = vector.extract_strided_slice %23 {offsets = [8, 0], sizes = [8, 32], strides = [1, 1]} : vector<16x32xf32> to vector<8x32xf32>
    %115 = vector.extract_strided_slice %12 {offsets = [1, 0, 0], sizes = [1, 8, 8], strides = [1, 1, 1]} : vector<2x8x8xf32> to vector<1x8x8xf32>
    %116 = vector.shape_cast %115 : vector<1x8x8xf32> to vector<8x8xf32>
    %cst_51 = arith.constant 5.000000e-01 : f32
    %117 = vector.broadcast %cst_51 : f32 to vector<8x8xf32>
    %118 = arith.cmpf ogt, %116, %117 : vector<8x8xf32>
    %119 = vector.extract_strided_slice %112 {offsets = [0, 0], sizes = [8, 8], strides = [1, 1]} : vector<8x32xf32> to vector<8x8xf32>
    %120 = vector.extract_strided_slice %113 {offsets = [0, 0], sizes = [8, 8], strides = [1, 1]} : vector<8x32xf32> to vector<8x8xf32>
    %cst_52 = arith.constant dense<0.000000e+00> : vector<8x8xf32>
    %121 = tpu.matmul %119, %120, %cst_52 {dimension_numbers = #tpu.dot_dimension_numbers<[1], [1], [0], [0], [0, 0, 1, 0], [], []>} : vector<8x8xf32>, vector<8x8xf32>, vector<8x8xf32> -> vector<8x8xf32>
    %cst_53 = arith.constant 0.353553385 : f32
    %122 = vector.broadcast %cst_53 : f32 to vector<8x8xf32>
    %123 = arith.mulf %121, %122 : vector<8x8xf32>
    %cst_54 = arith.constant -1.000000e+04 : f32
    %124 = vector.broadcast %cst_54 : f32 to vector<8x8xf32>
    %125 = arith.select %118, %123, %124 : vector<8x8xi1>, vector<8x8xf32>
    %cst_55 = arith.constant dense<0xFF800000> : vector<8xf32>
    %126 = vector.multi_reduction <maximumf>, %125, %cst_55 [1] : vector<8x8xf32> to vector<8xf32>
    %127 = vector.shape_cast %126 : vector<8xf32> to vector<8x1xf32>
    %128 = vector.broadcast %127 : vector<8x1xf32> to vector<8x8xf32>
    %129 = arith.subf %125, %128 : vector<8x8xf32>
    %130 = math.exp %129 : vector<8x8xf32>
    %cst_56 = arith.constant dense<0.000000e+00> : vector<8xf32>
    %131 = vector.multi_reduction <add>, %130, %cst_56 [1] : vector<8x8xf32> to vector<8xf32>
    %132 = vector.shape_cast %131 : vector<8xf32> to vector<8x1xf32>
    %133 = tpu.reciprocal %132 {approx = true} : vector<8x1xf32> -> vector<8x1xf32>
    %134 = vector.broadcast %133 : vector<8x1xf32> to vector<8x8xf32>
    %135 = arith.mulf %130, %134 : vector<8x8xf32>
    %136 = vector.extract_strided_slice %114 {offsets = [0, 0], sizes = [8, 8], strides = [1, 1]} : vector<8x32xf32> to vector<8x8xf32>
    %cst_57 = arith.constant dense<0.000000e+00> : vector<8x8xf32>
    %137 = tpu.matmul %135, %136, %cst_57 {dimension_numbers = #tpu.dot_dimension_numbers<[1], [0], [0], [1], [0, 0, 1, 1], [], []>} : vector<8x8xf32>, vector<8x8xf32>, vector<8x8xf32> -> vector<8x8xf32>
    %138 = vector.extract_strided_slice %112 {offsets = [0, 8], sizes = [8, 8], strides = [1, 1]} : vector<8x32xf32> to vector<8x8xf32>
    %139 = vector.extract_strided_slice %113 {offsets = [0, 8], sizes = [8, 8], strides = [1, 1]} : vector<8x32xf32> to vector<8x8xf32>
    %cst_58 = arith.constant dense<0.000000e+00> : vector<8x8xf32>
    %140 = tpu.matmul %138, %139, %cst_58 {dimension_numbers = #tpu.dot_dimension_numbers<[1], [1], [0], [0], [0, 0, 1, 0], [], []>} : vector<8x8xf32>, vector<8x8xf32>, vector<8x8xf32> -> vector<8x8xf32>
    %cst_59 = arith.constant 0.353553385 : f32
    %141 = vector.broadcast %cst_59 : f32 to vector<8x8xf32>
    %142 = arith.mulf %140, %141 : vector<8x8xf32>
    %cst_60 = arith.constant -1.000000e+04 : f32
    %143 = vector.broadcast %cst_60 : f32 to vector<8x8xf32>
    %144 = arith.select %118, %142, %143 : vector<8x8xi1>, vector<8x8xf32>
    %cst_61 = arith.constant dense<0xFF800000> : vector<8xf32>
    %145 = vector.multi_reduction <maximumf>, %144, %cst_61 [1] : vector<8x8xf32> to vector<8xf32>
    %146 = vector.shape_cast %145 : vector<8xf32> to vector<8x1xf32>
    %147 = vector.broadcast %146 : vector<8x1xf32> to vector<8x8xf32>
    %148 = arith.subf %144, %147 : vector<8x8xf32>
    %149 = math.exp %148 : vector<8x8xf32>
    %cst_62 = arith.constant dense<0.000000e+00> : vector<8xf32>
    %150 = vector.multi_reduction <add>, %149, %cst_62 [1] : vector<8x8xf32> to vector<8xf32>
    %151 = vector.shape_cast %150 : vector<8xf32> to vector<8x1xf32>
    %152 = tpu.reciprocal %151 {approx = true} : vector<8x1xf32> -> vector<8x1xf32>
    %153 = vector.broadcast %152 : vector<8x1xf32> to vector<8x8xf32>
    %154 = arith.mulf %149, %153 : vector<8x8xf32>
    %155 = vector.extract_strided_slice %114 {offsets = [0, 8], sizes = [8, 8], strides = [1, 1]} : vector<8x32xf32> to vector<8x8xf32>
    %cst_63 = arith.constant dense<0.000000e+00> : vector<8x8xf32>
    %156 = tpu.matmul %154, %155, %cst_63 {dimension_numbers = #tpu.dot_dimension_numbers<[1], [0], [0], [1], [0, 0, 1, 1], [], []>} : vector<8x8xf32>, vector<8x8xf32>, vector<8x8xf32> -> vector<8x8xf32>
    %157 = vector.extract_strided_slice %112 {offsets = [0, 16], sizes = [8, 8], strides = [1, 1]} : vector<8x32xf32> to vector<8x8xf32>
    %158 = vector.extract_strided_slice %113 {offsets = [0, 16], sizes = [8, 8], strides = [1, 1]} : vector<8x32xf32> to vector<8x8xf32>
    %cst_64 = arith.constant dense<0.000000e+00> : vector<8x8xf32>
    %159 = tpu.matmul %157, %158, %cst_64 {dimension_numbers = #tpu.dot_dimension_numbers<[1], [1], [0], [0], [0, 0, 1, 0], [], []>} : vector<8x8xf32>, vector<8x8xf32>, vector<8x8xf32> -> vector<8x8xf32>
    %cst_65 = arith.constant 0.353553385 : f32
    %160 = vector.broadcast %cst_65 : f32 to vector<8x8xf32>
    %161 = arith.mulf %159, %160 : vector<8x8xf32>
    %cst_66 = arith.constant -1.000000e+04 : f32
    %162 = vector.broadcast %cst_66 : f32 to vector<8x8xf32>
    %163 = arith.select %118, %161, %162 : vector<8x8xi1>, vector<8x8xf32>
    %cst_67 = arith.constant dense<0xFF800000> : vector<8xf32>
    %164 = vector.multi_reduction <maximumf>, %163, %cst_67 [1] : vector<8x8xf32> to vector<8xf32>
    %165 = vector.shape_cast %164 : vector<8xf32> to vector<8x1xf32>
    %166 = vector.broadcast %165 : vector<8x1xf32> to vector<8x8xf32>
    %167 = arith.subf %163, %166 : vector<8x8xf32>
    %168 = math.exp %167 : vector<8x8xf32>
    %cst_68 = arith.constant dense<0.000000e+00> : vector<8xf32>
    %169 = vector.multi_reduction <add>, %168, %cst_68 [1] : vector<8x8xf32> to vector<8xf32>
    %170 = vector.shape_cast %169 : vector<8xf32> to vector<8x1xf32>
    %171 = tpu.reciprocal %170 {approx = true} : vector<8x1xf32> -> vector<8x1xf32>
    %172 = vector.broadcast %171 : vector<8x1xf32> to vector<8x8xf32>
    %173 = arith.mulf %168, %172 : vector<8x8xf32>
    %174 = vector.extract_strided_slice %114 {offsets = [0, 16], sizes = [8, 8], strides = [1, 1]} : vector<8x32xf32> to vector<8x8xf32>
    %cst_69 = arith.constant dense<0.000000e+00> : vector<8x8xf32>
    %175 = tpu.matmul %173, %174, %cst_69 {dimension_numbers = #tpu.dot_dimension_numbers<[1], [0], [0], [1], [0, 0, 1, 1], [], []>} : vector<8x8xf32>, vector<8x8xf32>, vector<8x8xf32> -> vector<8x8xf32>
    %176 = vector.extract_strided_slice %112 {offsets = [0, 24], sizes = [8, 8], strides = [1, 1]} : vector<8x32xf32> to vector<8x8xf32>
    %177 = vector.extract_strided_slice %113 {offsets = [0, 24], sizes = [8, 8], strides = [1, 1]} : vector<8x32xf32> to vector<8x8xf32>
    %cst_70 = arith.constant dense<0.000000e+00> : vector<8x8xf32>
    %178 = tpu.matmul %176, %177, %cst_70 {dimension_numbers = #tpu.dot_dimension_numbers<[1], [1], [0], [0], [0, 0, 1, 0], [], []>} : vector<8x8xf32>, vector<8x8xf32>, vector<8x8xf32> -> vector<8x8xf32>
    %cst_71 = arith.constant 0.353553385 : f32
    %179 = vector.broadcast %cst_71 : f32 to vector<8x8xf32>
    %180 = arith.mulf %178, %179 : vector<8x8xf32>
    %cst_72 = arith.constant -1.000000e+04 : f32
    %181 = vector.broadcast %cst_72 : f32 to vector<8x8xf32>
    %182 = arith.select %118, %180, %181 : vector<8x8xi1>, vector<8x8xf32>
    %cst_73 = arith.constant dense<0xFF800000> : vector<8xf32>
    %183 = vector.multi_reduction <maximumf>, %182, %cst_73 [1] : vector<8x8xf32> to vector<8xf32>
    %184 = vector.shape_cast %183 : vector<8xf32> to vector<8x1xf32>
    %185 = vector.broadcast %184 : vector<8x1xf32> to vector<8x8xf32>
    %186 = arith.subf %182, %185 : vector<8x8xf32>
    %187 = math.exp %186 : vector<8x8xf32>
    %cst_74 = arith.constant dense<0.000000e+00> : vector<8xf32>
    %188 = vector.multi_reduction <add>, %187, %cst_74 [1] : vector<8x8xf32> to vector<8xf32>
    %189 = vector.shape_cast %188 : vector<8xf32> to vector<8x1xf32>
    %190 = tpu.reciprocal %189 {approx = true} : vector<8x1xf32> -> vector<8x1xf32>
    %191 = vector.broadcast %190 : vector<8x1xf32> to vector<8x8xf32>
    %192 = arith.mulf %187, %191 : vector<8x8xf32>
    %193 = vector.extract_strided_slice %114 {offsets = [0, 24], sizes = [8, 8], strides = [1, 1]} : vector<8x32xf32> to vector<8x8xf32>
    %cst_75 = arith.constant dense<0.000000e+00> : vector<8x8xf32>
    %194 = tpu.matmul %192, %193, %cst_75 {dimension_numbers = #tpu.dot_dimension_numbers<[1], [0], [0], [1], [0, 0, 1, 1], [], []>} : vector<8x8xf32>, vector<8x8xf32>, vector<8x8xf32> -> vector<8x8xf32>
    %195 = tpu.concatenate %137, %156, %175, %194 in 1 : vector<8x8xf32>, vector<8x8xf32>, vector<8x8xf32>, vector<8x8xf32> -> vector<8x32xf32>
    %196 = tpu.concatenate %111, %195 in 0 : vector<8x32xf32>, vector<8x32xf32> -> vector<16x32xf32>
    %cst_76 = arith.constant dense<0.000000e+00> : vector<16x32xf32>
    %197 = tpu.matmul %196, %25, %cst_76 {dimension_numbers = #tpu.dot_dimension_numbers<[1], [0], [0], [1], [0, 0, 1, 1], [], []>} : vector<16x32xf32>, vector<32x32xf32>, vector<16x32xf32> -> vector<16x32xf32>
    %198 = vector.broadcast %27 : vector<1x32xf32> to vector<16x32xf32>
    %199 = arith.addf %197, %198 : vector<16x32xf32>
    %200 = arith.addf %199, %10 : vector<16x32xf32>
    %c0_77 = arith.constant 0 : index
    %c0_78 = arith.constant 0 : index
    %c0_79 = arith.constant 0 : index
    %201 = vector.load %arg20[%c0_77, %c0_78, %c0_79] : memref<2x1x32xf32, #tpu.memory_space<vmem>>, vector<1x1x32xf32>
    %202 = vector.shape_cast %201 : vector<1x1x32xf32> to vector<1x32xf32>
    %c0_80 = arith.constant 0 : index
    %c0_81 = arith.constant 0 : index
    %c0_82 = arith.constant 0 : index
    %203 = vector.load %arg21[%c0_80, %c0_81, %c0_82] : memref<2x1x32xf32, #tpu.memory_space<vmem>>, vector<1x1x32xf32>
    %204 = vector.shape_cast %203 : vector<1x1x32xf32> to vector<1x32xf32>
    %cst_83 = arith.constant dense<0.000000e+00> : vector<16xf32>
    %205 = vector.multi_reduction <add>, %200, %cst_83 [1] : vector<16x32xf32> to vector<16xf32>
    %206 = vector.shape_cast %205 : vector<16xf32> to vector<16x1xf32>
    %cst_84 = arith.constant 3.200000e+01 : f32
    %207 = vector.broadcast %cst_84 : f32 to vector<16x1xf32>
    %208 = arith.divf %206, %207 : vector<16x1xf32>
    %209 = vector.broadcast %208 : vector<16x1xf32> to vector<16x32xf32>
    %210 = arith.subf %200, %209 : vector<16x32xf32>
    %211 = arith.mulf %210, %210 : vector<16x32xf32>
    %cst_85 = arith.constant dense<0.000000e+00> : vector<16xf32>
    %212 = vector.multi_reduction <add>, %211, %cst_85 [1] : vector<16x32xf32> to vector<16xf32>
    %213 = vector.shape_cast %212 : vector<16xf32> to vector<16x1xf32>
    %cst_86 = arith.constant 3.200000e+01 : f32
    %214 = vector.broadcast %cst_86 : f32 to vector<16x1xf32>
    %215 = arith.divf %213, %214 : vector<16x1xf32>
    %216 = vector.broadcast %208 : vector<16x1xf32> to vector<16x32xf32>
    %217 = arith.subf %200, %216 : vector<16x32xf32>
    %cst_87 = arith.constant 9.99999996E-13 : f32
    %218 = vector.broadcast %cst_87 : f32 to vector<16x1xf32>
    %219 = arith.addf %215, %218 : vector<16x1xf32>
    %220 = math.rsqrt %219 : vector<16x1xf32>
    %221 = vector.broadcast %220 : vector<16x1xf32> to vector<16x32xf32>
    %222 = arith.mulf %217, %221 : vector<16x32xf32>
    %223 = vector.broadcast %202 : vector<1x32xf32> to vector<16x32xf32>
    %224 = arith.mulf %222, %223 : vector<16x32xf32>
    %225 = vector.broadcast %204 : vector<1x32xf32> to vector<16x32xf32>
    %226 = arith.addf %224, %225 : vector<16x32xf32>
    %c0_88 = arith.constant 0 : index
    %c0_89 = arith.constant 0 : index
    %c0_90 = arith.constant 0 : index
    %227 = vector.load %arg10[%c0_88, %c0_89, %c0_90] : memref<2x32x32xf32, #tpu.memory_space<vmem>>, vector<1x32x32xf32>
    %228 = vector.shape_cast %227 : vector<1x32x32xf32> to vector<32x32xf32>
    %cst_91 = arith.constant dense<0.000000e+00> : vector<16x32xf32>
    %229 = tpu.matmul %226, %228, %cst_91 {dimension_numbers = #tpu.dot_dimension_numbers<[1], [0], [0], [1], [0, 0, 1, 1], [], []>} : vector<16x32xf32>, vector<32x32xf32>, vector<16x32xf32> -> vector<16x32xf32>
    %c0_92 = arith.constant 0 : index
    %c0_93 = arith.constant 0 : index
    %c0_94 = arith.constant 0 : index
    %230 = vector.load %arg11[%c0_92, %c0_93, %c0_94] : memref<2x1x32xf32, #tpu.memory_space<vmem>>, vector<1x1x32xf32>
    %231 = vector.shape_cast %230 : vector<1x1x32xf32> to vector<1x32xf32>
    %232 = vector.broadcast %231 : vector<1x32xf32> to vector<16x32xf32>
    %233 = arith.addf %229, %232 : vector<16x32xf32>
    %c0_95 = arith.constant 0 : index
    %c0_96 = arith.constant 0 : index
    %c0_97 = arith.constant 0 : index
    %234 = vector.load %arg12[%c0_95, %c0_96, %c0_97] : memref<2x32x64xf32, #tpu.memory_space<vmem>>, vector<1x32x64xf32>
    %235 = vector.shape_cast %234 : vector<1x32x64xf32> to vector<32x64xf32>
    %cst_98 = arith.constant dense<0.000000e+00> : vector<16x64xf32>
    %236 = tpu.matmul %11, %235, %cst_98 {dimension_numbers = #tpu.dot_dimension_numbers<[1], [0], [0], [1], [0, 0, 1, 1], [], []>} : vector<16x32xf32>, vector<32x64xf32>, vector<16x64xf32> -> vector<16x64xf32>
    %c0_99 = arith.constant 0 : index
    %c0_100 = arith.constant 0 : index
    %c0_101 = arith.constant 0 : index
    %237 = vector.load %arg13[%c0_99, %c0_100, %c0_101] : memref<2x1x64xf32, #tpu.memory_space<vmem>>, vector<1x1x64xf32>
    %238 = vector.shape_cast %237 : vector<1x1x64xf32> to vector<1x64xf32>
    %239 = vector.broadcast %238 : vector<1x64xf32> to vector<16x64xf32>
    %240 = arith.addf %236, %239 : vector<16x64xf32>
    %241 = vector.extract_strided_slice %240 {offsets = [0, 0], sizes = [16, 32], strides = [1, 1]} : vector<16x64xf32> to vector<16x32xf32>
    %242 = vector.extract_strided_slice %240 {offsets = [0, 32], sizes = [16, 32], strides = [1, 1]} : vector<16x64xf32> to vector<16x32xf32>
    %c0_102 = arith.constant 0 : index
    %c0_103 = arith.constant 0 : index
    %c0_104 = arith.constant 0 : index
    %243 = vector.load %arg14[%c0_102, %c0_103, %c0_104] : memref<2x32x32xf32, #tpu.memory_space<vmem>>, vector<1x32x32xf32>
    %244 = vector.shape_cast %243 : vector<1x32x32xf32> to vector<32x32xf32>
    %c0_105 = arith.constant 0 : index
    %c0_106 = arith.constant 0 : index
    %c0_107 = arith.constant 0 : index
    %245 = vector.load %arg15[%c0_105, %c0_106, %c0_107] : memref<2x1x32xf32, #tpu.memory_space<vmem>>, vector<1x1x32xf32>
    %246 = vector.shape_cast %245 : vector<1x1x32xf32> to vector<1x32xf32>
    %247 = vector.extract_strided_slice %233 {offsets = [0, 0], sizes = [8, 32], strides = [1, 1]} : vector<16x32xf32> to vector<8x32xf32>
    %248 = vector.extract_strided_slice %241 {offsets = [0, 0], sizes = [8, 32], strides = [1, 1]} : vector<16x32xf32> to vector<8x32xf32>
    %249 = vector.extract_strided_slice %242 {offsets = [0, 0], sizes = [8, 32], strides = [1, 1]} : vector<16x32xf32> to vector<8x32xf32>
    %250 = vector.extract_strided_slice %13 {offsets = [0, 0, 0], sizes = [1, 8, 8], strides = [1, 1, 1]} : vector<2x8x8xf32> to vector<1x8x8xf32>
    %251 = vector.shape_cast %250 : vector<1x8x8xf32> to vector<8x8xf32>
    %cst_108 = arith.constant 5.000000e-01 : f32
    %252 = vector.broadcast %cst_108 : f32 to vector<8x8xf32>
    %253 = arith.cmpf ogt, %251, %252 : vector<8x8xf32>
    %254 = vector.extract_strided_slice %247 {offsets = [0, 0], sizes = [8, 8], strides = [1, 1]} : vector<8x32xf32> to vector<8x8xf32>
    %255 = vector.extract_strided_slice %248 {offsets = [0, 0], sizes = [8, 8], strides = [1, 1]} : vector<8x32xf32> to vector<8x8xf32>
    %cst_109 = arith.constant dense<0.000000e+00> : vector<8x8xf32>
    %256 = tpu.matmul %254, %255, %cst_109 {dimension_numbers = #tpu.dot_dimension_numbers<[1], [1], [0], [0], [0, 0, 1, 0], [], []>} : vector<8x8xf32>, vector<8x8xf32>, vector<8x8xf32> -> vector<8x8xf32>
    %cst_110 = arith.constant 0.353553385 : f32
    %257 = vector.broadcast %cst_110 : f32 to vector<8x8xf32>
    %258 = arith.mulf %256, %257 : vector<8x8xf32>
    %cst_111 = arith.constant -1.000000e+04 : f32
    %259 = vector.broadcast %cst_111 : f32 to vector<8x8xf32>
    %260 = arith.select %253, %258, %259 : vector<8x8xi1>, vector<8x8xf32>
    %cst_112 = arith.constant dense<0xFF800000> : vector<8xf32>
    %261 = vector.multi_reduction <maximumf>, %260, %cst_112 [1] : vector<8x8xf32> to vector<8xf32>
    %262 = vector.shape_cast %261 : vector<8xf32> to vector<8x1xf32>
    %263 = vector.broadcast %262 : vector<8x1xf32> to vector<8x8xf32>
    %264 = arith.subf %260, %263 : vector<8x8xf32>
    %265 = math.exp %264 : vector<8x8xf32>
    %cst_113 = arith.constant dense<0.000000e+00> : vector<8xf32>
    %266 = vector.multi_reduction <add>, %265, %cst_113 [1] : vector<8x8xf32> to vector<8xf32>
    %267 = vector.shape_cast %266 : vector<8xf32> to vector<8x1xf32>
    %268 = tpu.reciprocal %267 {approx = true} : vector<8x1xf32> -> vector<8x1xf32>
    %269 = vector.broadcast %268 : vector<8x1xf32> to vector<8x8xf32>
    %270 = arith.mulf %265, %269 : vector<8x8xf32>
    %271 = vector.extract_strided_slice %249 {offsets = [0, 0], sizes = [8, 8], strides = [1, 1]} : vector<8x32xf32> to vector<8x8xf32>
    %cst_114 = arith.constant dense<0.000000e+00> : vector<8x8xf32>
    %272 = tpu.matmul %270, %271, %cst_114 {dimension_numbers = #tpu.dot_dimension_numbers<[1], [0], [0], [1], [0, 0, 1, 1], [], []>} : vector<8x8xf32>, vector<8x8xf32>, vector<8x8xf32> -> vector<8x8xf32>
    %273 = vector.extract_strided_slice %247 {offsets = [0, 8], sizes = [8, 8], strides = [1, 1]} : vector<8x32xf32> to vector<8x8xf32>
    %274 = vector.extract_strided_slice %248 {offsets = [0, 8], sizes = [8, 8], strides = [1, 1]} : vector<8x32xf32> to vector<8x8xf32>
    %cst_115 = arith.constant dense<0.000000e+00> : vector<8x8xf32>
    %275 = tpu.matmul %273, %274, %cst_115 {dimension_numbers = #tpu.dot_dimension_numbers<[1], [1], [0], [0], [0, 0, 1, 0], [], []>} : vector<8x8xf32>, vector<8x8xf32>, vector<8x8xf32> -> vector<8x8xf32>
    %cst_116 = arith.constant 0.353553385 : f32
    %276 = vector.broadcast %cst_116 : f32 to vector<8x8xf32>
    %277 = arith.mulf %275, %276 : vector<8x8xf32>
    %cst_117 = arith.constant -1.000000e+04 : f32
    %278 = vector.broadcast %cst_117 : f32 to vector<8x8xf32>
    %279 = arith.select %253, %277, %278 : vector<8x8xi1>, vector<8x8xf32>
    %cst_118 = arith.constant dense<0xFF800000> : vector<8xf32>
    %280 = vector.multi_reduction <maximumf>, %279, %cst_118 [1] : vector<8x8xf32> to vector<8xf32>
    %281 = vector.shape_cast %280 : vector<8xf32> to vector<8x1xf32>
    %282 = vector.broadcast %281 : vector<8x1xf32> to vector<8x8xf32>
    %283 = arith.subf %279, %282 : vector<8x8xf32>
    %284 = math.exp %283 : vector<8x8xf32>
    %cst_119 = arith.constant dense<0.000000e+00> : vector<8xf32>
    %285 = vector.multi_reduction <add>, %284, %cst_119 [1] : vector<8x8xf32> to vector<8xf32>
    %286 = vector.shape_cast %285 : vector<8xf32> to vector<8x1xf32>
    %287 = tpu.reciprocal %286 {approx = true} : vector<8x1xf32> -> vector<8x1xf32>
    %288 = vector.broadcast %287 : vector<8x1xf32> to vector<8x8xf32>
    %289 = arith.mulf %284, %288 : vector<8x8xf32>
    %290 = vector.extract_strided_slice %249 {offsets = [0, 8], sizes = [8, 8], strides = [1, 1]} : vector<8x32xf32> to vector<8x8xf32>
    %cst_120 = arith.constant dense<0.000000e+00> : vector<8x8xf32>
    %291 = tpu.matmul %289, %290, %cst_120 {dimension_numbers = #tpu.dot_dimension_numbers<[1], [0], [0], [1], [0, 0, 1, 1], [], []>} : vector<8x8xf32>, vector<8x8xf32>, vector<8x8xf32> -> vector<8x8xf32>
    %292 = vector.extract_strided_slice %247 {offsets = [0, 16], sizes = [8, 8], strides = [1, 1]} : vector<8x32xf32> to vector<8x8xf32>
    %293 = vector.extract_strided_slice %248 {offsets = [0, 16], sizes = [8, 8], strides = [1, 1]} : vector<8x32xf32> to vector<8x8xf32>
    %cst_121 = arith.constant dense<0.000000e+00> : vector<8x8xf32>
    %294 = tpu.matmul %292, %293, %cst_121 {dimension_numbers = #tpu.dot_dimension_numbers<[1], [1], [0], [0], [0, 0, 1, 0], [], []>} : vector<8x8xf32>, vector<8x8xf32>, vector<8x8xf32> -> vector<8x8xf32>
    %cst_122 = arith.constant 0.353553385 : f32
    %295 = vector.broadcast %cst_122 : f32 to vector<8x8xf32>
    %296 = arith.mulf %294, %295 : vector<8x8xf32>
    %cst_123 = arith.constant -1.000000e+04 : f32
    %297 = vector.broadcast %cst_123 : f32 to vector<8x8xf32>
    %298 = arith.select %253, %296, %297 : vector<8x8xi1>, vector<8x8xf32>
    %cst_124 = arith.constant dense<0xFF800000> : vector<8xf32>
    %299 = vector.multi_reduction <maximumf>, %298, %cst_124 [1] : vector<8x8xf32> to vector<8xf32>
    %300 = vector.shape_cast %299 : vector<8xf32> to vector<8x1xf32>
    %301 = vector.broadcast %300 : vector<8x1xf32> to vector<8x8xf32>
    %302 = arith.subf %298, %301 : vector<8x8xf32>
    %303 = math.exp %302 : vector<8x8xf32>
    %cst_125 = arith.constant dense<0.000000e+00> : vector<8xf32>
    %304 = vector.multi_reduction <add>, %303, %cst_125 [1] : vector<8x8xf32> to vector<8xf32>
    %305 = vector.shape_cast %304 : vector<8xf32> to vector<8x1xf32>
    %306 = tpu.reciprocal %305 {approx = true} : vector<8x1xf32> -> vector<8x1xf32>
    %307 = vector.broadcast %306 : vector<8x1xf32> to vector<8x8xf32>
    %308 = arith.mulf %303, %307 : vector<8x8xf32>
    %309 = vector.extract_strided_slice %249 {offsets = [0, 16], sizes = [8, 8], strides = [1, 1]} : vector<8x32xf32> to vector<8x8xf32>
    %cst_126 = arith.constant dense<0.000000e+00> : vector<8x8xf32>
    %310 = tpu.matmul %308, %309, %cst_126 {dimension_numbers = #tpu.dot_dimension_numbers<[1], [0], [0], [1], [0, 0, 1, 1], [], []>} : vector<8x8xf32>, vector<8x8xf32>, vector<8x8xf32> -> vector<8x8xf32>
    %311 = vector.extract_strided_slice %247 {offsets = [0, 24], sizes = [8, 8], strides = [1, 1]} : vector<8x32xf32> to vector<8x8xf32>
    %312 = vector.extract_strided_slice %248 {offsets = [0, 24], sizes = [8, 8], strides = [1, 1]} : vector<8x32xf32> to vector<8x8xf32>
    %cst_127 = arith.constant dense<0.000000e+00> : vector<8x8xf32>
    %313 = tpu.matmul %311, %312, %cst_127 {dimension_numbers = #tpu.dot_dimension_numbers<[1], [1], [0], [0], [0, 0, 1, 0], [], []>} : vector<8x8xf32>, vector<8x8xf32>, vector<8x8xf32> -> vector<8x8xf32>
    %cst_128 = arith.constant 0.353553385 : f32
    %314 = vector.broadcast %cst_128 : f32 to vector<8x8xf32>
    %315 = arith.mulf %313, %314 : vector<8x8xf32>
    %cst_129 = arith.constant -1.000000e+04 : f32
    %316 = vector.broadcast %cst_129 : f32 to vector<8x8xf32>
    %317 = arith.select %253, %315, %316 : vector<8x8xi1>, vector<8x8xf32>
    %cst_130 = arith.constant dense<0xFF800000> : vector<8xf32>
    %318 = vector.multi_reduction <maximumf>, %317, %cst_130 [1] : vector<8x8xf32> to vector<8xf32>
    %319 = vector.shape_cast %318 : vector<8xf32> to vector<8x1xf32>
    %320 = vector.broadcast %319 : vector<8x1xf32> to vector<8x8xf32>
    %321 = arith.subf %317, %320 : vector<8x8xf32>
    %322 = math.exp %321 : vector<8x8xf32>
    %cst_131 = arith.constant dense<0.000000e+00> : vector<8xf32>
    %323 = vector.multi_reduction <add>, %322, %cst_131 [1] : vector<8x8xf32> to vector<8xf32>
    %324 = vector.shape_cast %323 : vector<8xf32> to vector<8x1xf32>
    %325 = tpu.reciprocal %324 {approx = true} : vector<8x1xf32> -> vector<8x1xf32>
    %326 = vector.broadcast %325 : vector<8x1xf32> to vector<8x8xf32>
    %327 = arith.mulf %322, %326 : vector<8x8xf32>
    %328 = vector.extract_strided_slice %249 {offsets = [0, 24], sizes = [8, 8], strides = [1, 1]} : vector<8x32xf32> to vector<8x8xf32>
    %cst_132 = arith.constant dense<0.000000e+00> : vector<8x8xf32>
    %329 = tpu.matmul %327, %328, %cst_132 {dimension_numbers = #tpu.dot_dimension_numbers<[1], [0], [0], [1], [0, 0, 1, 1], [], []>} : vector<8x8xf32>, vector<8x8xf32>, vector<8x8xf32> -> vector<8x8xf32>
    %330 = tpu.concatenate %272, %291, %310, %329 in 1 : vector<8x8xf32>, vector<8x8xf32>, vector<8x8xf32>, vector<8x8xf32> -> vector<8x32xf32>
    %331 = vector.extract_strided_slice %233 {offsets = [8, 0], sizes = [8, 32], strides = [1, 1]} : vector<16x32xf32> to vector<8x32xf32>
    %332 = vector.extract_strided_slice %241 {offsets = [8, 0], sizes = [8, 32], strides = [1, 1]} : vector<16x32xf32> to vector<8x32xf32>
    %333 = vector.extract_strided_slice %242 {offsets = [8, 0], sizes = [8, 32], strides = [1, 1]} : vector<16x32xf32> to vector<8x32xf32>
    %334 = vector.extract_strided_slice %13 {offsets = [1, 0, 0], sizes = [1, 8, 8], strides = [1, 1, 1]} : vector<2x8x8xf32> to vector<1x8x8xf32>
    %335 = vector.shape_cast %334 : vector<1x8x8xf32> to vector<8x8xf32>
    %cst_133 = arith.constant 5.000000e-01 : f32
    %336 = vector.broadcast %cst_133 : f32 to vector<8x8xf32>
    %337 = arith.cmpf ogt, %335, %336 : vector<8x8xf32>
    %338 = vector.extract_strided_slice %331 {offsets = [0, 0], sizes = [8, 8], strides = [1, 1]} : vector<8x32xf32> to vector<8x8xf32>
    %339 = vector.extract_strided_slice %332 {offsets = [0, 0], sizes = [8, 8], strides = [1, 1]} : vector<8x32xf32> to vector<8x8xf32>
    %cst_134 = arith.constant dense<0.000000e+00> : vector<8x8xf32>
    %340 = tpu.matmul %338, %339, %cst_134 {dimension_numbers = #tpu.dot_dimension_numbers<[1], [1], [0], [0], [0, 0, 1, 0], [], []>} : vector<8x8xf32>, vector<8x8xf32>, vector<8x8xf32> -> vector<8x8xf32>
    %cst_135 = arith.constant 0.353553385 : f32
    %341 = vector.broadcast %cst_135 : f32 to vector<8x8xf32>
    %342 = arith.mulf %340, %341 : vector<8x8xf32>
    %cst_136 = arith.constant -1.000000e+04 : f32
    %343 = vector.broadcast %cst_136 : f32 to vector<8x8xf32>
    %344 = arith.select %337, %342, %343 : vector<8x8xi1>, vector<8x8xf32>
    %cst_137 = arith.constant dense<0xFF800000> : vector<8xf32>
    %345 = vector.multi_reduction <maximumf>, %344, %cst_137 [1] : vector<8x8xf32> to vector<8xf32>
    %346 = vector.shape_cast %345 : vector<8xf32> to vector<8x1xf32>
    %347 = vector.broadcast %346 : vector<8x1xf32> to vector<8x8xf32>
    %348 = arith.subf %344, %347 : vector<8x8xf32>
    %349 = math.exp %348 : vector<8x8xf32>
    %cst_138 = arith.constant dense<0.000000e+00> : vector<8xf32>
    %350 = vector.multi_reduction <add>, %349, %cst_138 [1] : vector<8x8xf32> to vector<8xf32>
    %351 = vector.shape_cast %350 : vector<8xf32> to vector<8x1xf32>
    %352 = tpu.reciprocal %351 {approx = true} : vector<8x1xf32> -> vector<8x1xf32>
    %353 = vector.broadcast %352 : vector<8x1xf32> to vector<8x8xf32>
    %354 = arith.mulf %349, %353 : vector<8x8xf32>
    %355 = vector.extract_strided_slice %333 {offsets = [0, 0], sizes = [8, 8], strides = [1, 1]} : vector<8x32xf32> to vector<8x8xf32>
    %cst_139 = arith.constant dense<0.000000e+00> : vector<8x8xf32>
    %356 = tpu.matmul %354, %355, %cst_139 {dimension_numbers = #tpu.dot_dimension_numbers<[1], [0], [0], [1], [0, 0, 1, 1], [], []>} : vector<8x8xf32>, vector<8x8xf32>, vector<8x8xf32> -> vector<8x8xf32>
    %357 = vector.extract_strided_slice %331 {offsets = [0, 8], sizes = [8, 8], strides = [1, 1]} : vector<8x32xf32> to vector<8x8xf32>
    %358 = vector.extract_strided_slice %332 {offsets = [0, 8], sizes = [8, 8], strides = [1, 1]} : vector<8x32xf32> to vector<8x8xf32>
    %cst_140 = arith.constant dense<0.000000e+00> : vector<8x8xf32>
    %359 = tpu.matmul %357, %358, %cst_140 {dimension_numbers = #tpu.dot_dimension_numbers<[1], [1], [0], [0], [0, 0, 1, 0], [], []>} : vector<8x8xf32>, vector<8x8xf32>, vector<8x8xf32> -> vector<8x8xf32>
    %cst_141 = arith.constant 0.353553385 : f32
    %360 = vector.broadcast %cst_141 : f32 to vector<8x8xf32>
    %361 = arith.mulf %359, %360 : vector<8x8xf32>
    %cst_142 = arith.constant -1.000000e+04 : f32
    %362 = vector.broadcast %cst_142 : f32 to vector<8x8xf32>
    %363 = arith.select %337, %361, %362 : vector<8x8xi1>, vector<8x8xf32>
    %cst_143 = arith.constant dense<0xFF800000> : vector<8xf32>
    %364 = vector.multi_reduction <maximumf>, %363, %cst_143 [1] : vector<8x8xf32> to vector<8xf32>
    %365 = vector.shape_cast %364 : vector<8xf32> to vector<8x1xf32>
    %366 = vector.broadcast %365 : vector<8x1xf32> to vector<8x8xf32>
    %367 = arith.subf %363, %366 : vector<8x8xf32>
    %368 = math.exp %367 : vector<8x8xf32>
    %cst_144 = arith.constant dense<0.000000e+00> : vector<8xf32>
    %369 = vector.multi_reduction <add>, %368, %cst_144 [1] : vector<8x8xf32> to vector<8xf32>
    %370 = vector.shape_cast %369 : vector<8xf32> to vector<8x1xf32>
    %371 = tpu.reciprocal %370 {approx = true} : vector<8x1xf32> -> vector<8x1xf32>
    %372 = vector.broadcast %371 : vector<8x1xf32> to vector<8x8xf32>
    %373 = arith.mulf %368, %372 : vector<8x8xf32>
    %374 = vector.extract_strided_slice %333 {offsets = [0, 8], sizes = [8, 8], strides = [1, 1]} : vector<8x32xf32> to vector<8x8xf32>
    %cst_145 = arith.constant dense<0.000000e+00> : vector<8x8xf32>
    %375 = tpu.matmul %373, %374, %cst_145 {dimension_numbers = #tpu.dot_dimension_numbers<[1], [0], [0], [1], [0, 0, 1, 1], [], []>} : vector<8x8xf32>, vector<8x8xf32>, vector<8x8xf32> -> vector<8x8xf32>
    %376 = vector.extract_strided_slice %331 {offsets = [0, 16], sizes = [8, 8], strides = [1, 1]} : vector<8x32xf32> to vector<8x8xf32>
    %377 = vector.extract_strided_slice %332 {offsets = [0, 16], sizes = [8, 8], strides = [1, 1]} : vector<8x32xf32> to vector<8x8xf32>
    %cst_146 = arith.constant dense<0.000000e+00> : vector<8x8xf32>
    %378 = tpu.matmul %376, %377, %cst_146 {dimension_numbers = #tpu.dot_dimension_numbers<[1], [1], [0], [0], [0, 0, 1, 0], [], []>} : vector<8x8xf32>, vector<8x8xf32>, vector<8x8xf32> -> vector<8x8xf32>
    %cst_147 = arith.constant 0.353553385 : f32
    %379 = vector.broadcast %cst_147 : f32 to vector<8x8xf32>
    %380 = arith.mulf %378, %379 : vector<8x8xf32>
    %cst_148 = arith.constant -1.000000e+04 : f32
    %381 = vector.broadcast %cst_148 : f32 to vector<8x8xf32>
    %382 = arith.select %337, %380, %381 : vector<8x8xi1>, vector<8x8xf32>
    %cst_149 = arith.constant dense<0xFF800000> : vector<8xf32>
    %383 = vector.multi_reduction <maximumf>, %382, %cst_149 [1] : vector<8x8xf32> to vector<8xf32>
    %384 = vector.shape_cast %383 : vector<8xf32> to vector<8x1xf32>
    %385 = vector.broadcast %384 : vector<8x1xf32> to vector<8x8xf32>
    %386 = arith.subf %382, %385 : vector<8x8xf32>
    %387 = math.exp %386 : vector<8x8xf32>
    %cst_150 = arith.constant dense<0.000000e+00> : vector<8xf32>
    %388 = vector.multi_reduction <add>, %387, %cst_150 [1] : vector<8x8xf32> to vector<8xf32>
    %389 = vector.shape_cast %388 : vector<8xf32> to vector<8x1xf32>
    %390 = tpu.reciprocal %389 {approx = true} : vector<8x1xf32> -> vector<8x1xf32>
    %391 = vector.broadcast %390 : vector<8x1xf32> to vector<8x8xf32>
    %392 = arith.mulf %387, %391 : vector<8x8xf32>
    %393 = vector.extract_strided_slice %333 {offsets = [0, 16], sizes = [8, 8], strides = [1, 1]} : vector<8x32xf32> to vector<8x8xf32>
    %cst_151 = arith.constant dense<0.000000e+00> : vector<8x8xf32>
    %394 = tpu.matmul %392, %393, %cst_151 {dimension_numbers = #tpu.dot_dimension_numbers<[1], [0], [0], [1], [0, 0, 1, 1], [], []>} : vector<8x8xf32>, vector<8x8xf32>, vector<8x8xf32> -> vector<8x8xf32>
    %395 = vector.extract_strided_slice %331 {offsets = [0, 24], sizes = [8, 8], strides = [1, 1]} : vector<8x32xf32> to vector<8x8xf32>
    %396 = vector.extract_strided_slice %332 {offsets = [0, 24], sizes = [8, 8], strides = [1, 1]} : vector<8x32xf32> to vector<8x8xf32>
    %cst_152 = arith.constant dense<0.000000e+00> : vector<8x8xf32>
    %397 = tpu.matmul %395, %396, %cst_152 {dimension_numbers = #tpu.dot_dimension_numbers<[1], [1], [0], [0], [0, 0, 1, 0], [], []>} : vector<8x8xf32>, vector<8x8xf32>, vector<8x8xf32> -> vector<8x8xf32>
    %cst_153 = arith.constant 0.353553385 : f32
    %398 = vector.broadcast %cst_153 : f32 to vector<8x8xf32>
    %399 = arith.mulf %397, %398 : vector<8x8xf32>
    %cst_154 = arith.constant -1.000000e+04 : f32
    %400 = vector.broadcast %cst_154 : f32 to vector<8x8xf32>
    %401 = arith.select %337, %399, %400 : vector<8x8xi1>, vector<8x8xf32>
    %cst_155 = arith.constant dense<0xFF800000> : vector<8xf32>
    %402 = vector.multi_reduction <maximumf>, %401, %cst_155 [1] : vector<8x8xf32> to vector<8xf32>
    %403 = vector.shape_cast %402 : vector<8xf32> to vector<8x1xf32>
    %404 = vector.broadcast %403 : vector<8x1xf32> to vector<8x8xf32>
    %405 = arith.subf %401, %404 : vector<8x8xf32>
    %406 = math.exp %405 : vector<8x8xf32>
    %cst_156 = arith.constant dense<0.000000e+00> : vector<8xf32>
    %407 = vector.multi_reduction <add>, %406, %cst_156 [1] : vector<8x8xf32> to vector<8xf32>
    %408 = vector.shape_cast %407 : vector<8xf32> to vector<8x1xf32>
    %409 = tpu.reciprocal %408 {approx = true} : vector<8x1xf32> -> vector<8x1xf32>
    %410 = vector.broadcast %409 : vector<8x1xf32> to vector<8x8xf32>
    %411 = arith.mulf %406, %410 : vector<8x8xf32>
    %412 = vector.extract_strided_slice %333 {offsets = [0, 24], sizes = [8, 8], strides = [1, 1]} : vector<8x32xf32> to vector<8x8xf32>
    %cst_157 = arith.constant dense<0.000000e+00> : vector<8x8xf32>
    %413 = tpu.matmul %411, %412, %cst_157 {dimension_numbers = #tpu.dot_dimension_numbers<[1], [0], [0], [1], [0, 0, 1, 1], [], []>} : vector<8x8xf32>, vector<8x8xf32>, vector<8x8xf32> -> vector<8x8xf32>
    %414 = tpu.concatenate %356, %375, %394, %413 in 1 : vector<8x8xf32>, vector<8x8xf32>, vector<8x8xf32>, vector<8x8xf32> -> vector<8x32xf32>
    %415 = tpu.concatenate %330, %414 in 0 : vector<8x32xf32>, vector<8x32xf32> -> vector<16x32xf32>
    %cst_158 = arith.constant dense<0.000000e+00> : vector<16x32xf32>
    %416 = tpu.matmul %415, %244, %cst_158 {dimension_numbers = #tpu.dot_dimension_numbers<[1], [0], [0], [1], [0, 0, 1, 1], [], []>} : vector<16x32xf32>, vector<32x32xf32>, vector<16x32xf32> -> vector<16x32xf32>
    %417 = vector.broadcast %246 : vector<1x32xf32> to vector<16x32xf32>
    %418 = arith.addf %416, %417 : vector<16x32xf32>
    %419 = arith.addf %418, %226 : vector<16x32xf32>
    %c0_159 = arith.constant 0 : index
    %c0_160 = arith.constant 0 : index
    %c0_161 = arith.constant 0 : index
    %420 = vector.load %arg22[%c0_159, %c0_160, %c0_161] : memref<2x1x32xf32, #tpu.memory_space<vmem>>, vector<1x1x32xf32>
    %421 = vector.shape_cast %420 : vector<1x1x32xf32> to vector<1x32xf32>
    %c0_162 = arith.constant 0 : index
    %c0_163 = arith.constant 0 : index
    %c0_164 = arith.constant 0 : index
    %422 = vector.load %arg23[%c0_162, %c0_163, %c0_164] : memref<2x1x32xf32, #tpu.memory_space<vmem>>, vector<1x1x32xf32>
    %423 = vector.shape_cast %422 : vector<1x1x32xf32> to vector<1x32xf32>
    %cst_165 = arith.constant dense<0.000000e+00> : vector<16xf32>
    %424 = vector.multi_reduction <add>, %419, %cst_165 [1] : vector<16x32xf32> to vector<16xf32>
    %425 = vector.shape_cast %424 : vector<16xf32> to vector<16x1xf32>
    %cst_166 = arith.constant 3.200000e+01 : f32
    %426 = vector.broadcast %cst_166 : f32 to vector<16x1xf32>
    %427 = arith.divf %425, %426 : vector<16x1xf32>
    %428 = vector.broadcast %427 : vector<16x1xf32> to vector<16x32xf32>
    %429 = arith.subf %419, %428 : vector<16x32xf32>
    %430 = arith.mulf %429, %429 : vector<16x32xf32>
    %cst_167 = arith.constant dense<0.000000e+00> : vector<16xf32>
    %431 = vector.multi_reduction <add>, %430, %cst_167 [1] : vector<16x32xf32> to vector<16xf32>
    %432 = vector.shape_cast %431 : vector<16xf32> to vector<16x1xf32>
    %cst_168 = arith.constant 3.200000e+01 : f32
    %433 = vector.broadcast %cst_168 : f32 to vector<16x1xf32>
    %434 = arith.divf %432, %433 : vector<16x1xf32>
    %435 = vector.broadcast %427 : vector<16x1xf32> to vector<16x32xf32>
    %436 = arith.subf %419, %435 : vector<16x32xf32>
    %cst_169 = arith.constant 9.99999996E-13 : f32
    %437 = vector.broadcast %cst_169 : f32 to vector<16x1xf32>
    %438 = arith.addf %434, %437 : vector<16x1xf32>
    %439 = math.rsqrt %438 : vector<16x1xf32>
    %440 = vector.broadcast %439 : vector<16x1xf32> to vector<16x32xf32>
    %441 = arith.mulf %436, %440 : vector<16x32xf32>
    %442 = vector.broadcast %421 : vector<1x32xf32> to vector<16x32xf32>
    %443 = arith.mulf %441, %442 : vector<16x32xf32>
    %444 = vector.broadcast %423 : vector<1x32xf32> to vector<16x32xf32>
    %445 = arith.addf %443, %444 : vector<16x32xf32>
    %c0_170 = arith.constant 0 : index
    %c0_171 = arith.constant 0 : index
    %c0_172 = arith.constant 0 : index
    %446 = vector.load %arg16[%c0_170, %c0_171, %c0_172] : memref<2x32x64xf32, #tpu.memory_space<vmem>>, vector<1x32x64xf32>
    %447 = vector.shape_cast %446 : vector<1x32x64xf32> to vector<32x64xf32>
    %cst_173 = arith.constant dense<0.000000e+00> : vector<16x64xf32>
    %448 = tpu.matmul %445, %447, %cst_173 {dimension_numbers = #tpu.dot_dimension_numbers<[1], [0], [0], [1], [0, 0, 1, 1], [], []>} : vector<16x32xf32>, vector<32x64xf32>, vector<16x64xf32> -> vector<16x64xf32>
    %c0_174 = arith.constant 0 : index
    %c0_175 = arith.constant 0 : index
    %c0_176 = arith.constant 0 : index
    %449 = vector.load %arg17[%c0_174, %c0_175, %c0_176] : memref<2x1x64xf32, #tpu.memory_space<vmem>>, vector<1x1x64xf32>
    %450 = vector.shape_cast %449 : vector<1x1x64xf32> to vector<1x64xf32>
    %451 = vector.broadcast %450 : vector<1x64xf32> to vector<16x64xf32>
    %452 = arith.addf %448, %451 : vector<16x64xf32>
    %cst_177 = arith.constant 0.000000e+00 : f32
    %453 = vector.broadcast %cst_177 : f32 to vector<16x64xf32>
    %454 = arith.maximumf %452, %453 : vector<16x64xf32>
    %c0_178 = arith.constant 0 : index
    %c0_179 = arith.constant 0 : index
    %c0_180 = arith.constant 0 : index
    %455 = vector.load %arg18[%c0_178, %c0_179, %c0_180] : memref<2x64x32xf32, #tpu.memory_space<vmem>>, vector<1x64x32xf32>
    %456 = vector.shape_cast %455 : vector<1x64x32xf32> to vector<64x32xf32>
    %cst_181 = arith.constant dense<0.000000e+00> : vector<16x32xf32>
    %457 = tpu.matmul %454, %456, %cst_181 {dimension_numbers = #tpu.dot_dimension_numbers<[1], [0], [0], [1], [0, 0, 1, 1], [], []>} : vector<16x64xf32>, vector<64x32xf32>, vector<16x32xf32> -> vector<16x32xf32>
    %c0_182 = arith.constant 0 : index
    %c0_183 = arith.constant 0 : index
    %c0_184 = arith.constant 0 : index
    %458 = vector.load %arg19[%c0_182, %c0_183, %c0_184] : memref<2x1x32xf32, #tpu.memory_space<vmem>>, vector<1x1x32xf32>
    %459 = vector.shape_cast %458 : vector<1x1x32xf32> to vector<1x32xf32>
    %460 = vector.broadcast %459 : vector<1x32xf32> to vector<16x32xf32>
    %461 = arith.addf %457, %460 : vector<16x32xf32>
    %462 = arith.addf %461, %445 : vector<16x32xf32>
    %c0_185 = arith.constant 0 : index
    %c0_186 = arith.constant 0 : index
    %c0_187 = arith.constant 0 : index
    %463 = vector.load %arg24[%c0_185, %c0_186, %c0_187] : memref<2x1x32xf32, #tpu.memory_space<vmem>>, vector<1x1x32xf32>
    %464 = vector.shape_cast %463 : vector<1x1x32xf32> to vector<1x32xf32>
    %c0_188 = arith.constant 0 : index
    %c0_189 = arith.constant 0 : index
    %c0_190 = arith.constant 0 : index
    %465 = vector.load %arg25[%c0_188, %c0_189, %c0_190] : memref<2x1x32xf32, #tpu.memory_space<vmem>>, vector<1x1x32xf32>
    %466 = vector.shape_cast %465 : vector<1x1x32xf32> to vector<1x32xf32>
    %cst_191 = arith.constant dense<0.000000e+00> : vector<16xf32>
    %467 = vector.multi_reduction <add>, %462, %cst_191 [1] : vector<16x32xf32> to vector<16xf32>
    %468 = vector.shape_cast %467 : vector<16xf32> to vector<16x1xf32>
    %cst_192 = arith.constant 3.200000e+01 : f32
    %469 = vector.broadcast %cst_192 : f32 to vector<16x1xf32>
    %470 = arith.divf %468, %469 : vector<16x1xf32>
    %471 = vector.broadcast %470 : vector<16x1xf32> to vector<16x32xf32>
    %472 = arith.subf %462, %471 : vector<16x32xf32>
    %473 = arith.mulf %472, %472 : vector<16x32xf32>
    %cst_193 = arith.constant dense<0.000000e+00> : vector<16xf32>
    %474 = vector.multi_reduction <add>, %473, %cst_193 [1] : vector<16x32xf32> to vector<16xf32>
    %475 = vector.shape_cast %474 : vector<16xf32> to vector<16x1xf32>
    %cst_194 = arith.constant 3.200000e+01 : f32
    %476 = vector.broadcast %cst_194 : f32 to vector<16x1xf32>
    %477 = arith.divf %475, %476 : vector<16x1xf32>
    %478 = vector.broadcast %470 : vector<16x1xf32> to vector<16x32xf32>
    %479 = arith.subf %462, %478 : vector<16x32xf32>
    %cst_195 = arith.constant 9.99999996E-13 : f32
    %480 = vector.broadcast %cst_195 : f32 to vector<16x1xf32>
    %481 = arith.addf %477, %480 : vector<16x1xf32>
    %482 = math.rsqrt %481 : vector<16x1xf32>
    %483 = vector.broadcast %482 : vector<16x1xf32> to vector<16x32xf32>
    %484 = arith.mulf %479, %483 : vector<16x32xf32>
    %485 = vector.broadcast %464 : vector<1x32xf32> to vector<16x32xf32>
    %486 = arith.mulf %484, %485 : vector<16x32xf32>
    %487 = vector.broadcast %466 : vector<1x32xf32> to vector<16x32xf32>
    %488 = arith.addf %486, %487 : vector<16x32xf32>
    %c1 = arith.constant 1 : index
    %c0_196 = arith.constant 0 : index
    %c0_197 = arith.constant 0 : index
    %489 = vector.load %arg6[%c1, %c0_196, %c0_197] : memref<2x32x96xf32, #tpu.memory_space<vmem>>, vector<1x32x96xf32>
    %490 = vector.shape_cast %489 : vector<1x32x96xf32> to vector<32x96xf32>
    %cst_198 = arith.constant dense<0.000000e+00> : vector<16x96xf32>
    %491 = tpu.matmul %488, %490, %cst_198 {dimension_numbers = #tpu.dot_dimension_numbers<[1], [0], [0], [1], [0, 0, 1, 1], [], []>} : vector<16x32xf32>, vector<32x96xf32>, vector<16x96xf32> -> vector<16x96xf32>
    %c1_199 = arith.constant 1 : index
    %c0_200 = arith.constant 0 : index
    %c0_201 = arith.constant 0 : index
    %492 = vector.load %arg7[%c1_199, %c0_200, %c0_201] : memref<2x1x96xf32, #tpu.memory_space<vmem>>, vector<1x1x96xf32>
    %493 = vector.shape_cast %492 : vector<1x1x96xf32> to vector<1x96xf32>
    %494 = vector.broadcast %493 : vector<1x96xf32> to vector<16x96xf32>
    %495 = arith.addf %491, %494 : vector<16x96xf32>
    %496 = vector.extract_strided_slice %495 {offsets = [0, 0], sizes = [16, 32], strides = [1, 1]} : vector<16x96xf32> to vector<16x32xf32>
    %497 = vector.extract_strided_slice %495 {offsets = [0, 32], sizes = [16, 32], strides = [1, 1]} : vector<16x96xf32> to vector<16x32xf32>
    %498 = vector.extract_strided_slice %495 {offsets = [0, 64], sizes = [16, 32], strides = [1, 1]} : vector<16x96xf32> to vector<16x32xf32>
    %c1_202 = arith.constant 1 : index
    %c0_203 = arith.constant 0 : index
    %c0_204 = arith.constant 0 : index
    %499 = vector.load %arg8[%c1_202, %c0_203, %c0_204] : memref<2x32x32xf32, #tpu.memory_space<vmem>>, vector<1x32x32xf32>
    %500 = vector.shape_cast %499 : vector<1x32x32xf32> to vector<32x32xf32>
    %c1_205 = arith.constant 1 : index
    %c0_206 = arith.constant 0 : index
    %c0_207 = arith.constant 0 : index
    %501 = vector.load %arg9[%c1_205, %c0_206, %c0_207] : memref<2x1x32xf32, #tpu.memory_space<vmem>>, vector<1x1x32xf32>
    %502 = vector.shape_cast %501 : vector<1x1x32xf32> to vector<1x32xf32>
    %503 = vector.extract_strided_slice %496 {offsets = [0, 0], sizes = [8, 32], strides = [1, 1]} : vector<16x32xf32> to vector<8x32xf32>
    %504 = vector.extract_strided_slice %497 {offsets = [0, 0], sizes = [8, 32], strides = [1, 1]} : vector<16x32xf32> to vector<8x32xf32>
    %505 = vector.extract_strided_slice %498 {offsets = [0, 0], sizes = [8, 32], strides = [1, 1]} : vector<16x32xf32> to vector<8x32xf32>
    %506 = vector.extract_strided_slice %12 {offsets = [0, 0, 0], sizes = [1, 8, 8], strides = [1, 1, 1]} : vector<2x8x8xf32> to vector<1x8x8xf32>
    %507 = vector.shape_cast %506 : vector<1x8x8xf32> to vector<8x8xf32>
    %cst_208 = arith.constant 5.000000e-01 : f32
    %508 = vector.broadcast %cst_208 : f32 to vector<8x8xf32>
    %509 = arith.cmpf ogt, %507, %508 : vector<8x8xf32>
    %510 = vector.extract_strided_slice %503 {offsets = [0, 0], sizes = [8, 8], strides = [1, 1]} : vector<8x32xf32> to vector<8x8xf32>
    %511 = vector.extract_strided_slice %504 {offsets = [0, 0], sizes = [8, 8], strides = [1, 1]} : vector<8x32xf32> to vector<8x8xf32>
    %cst_209 = arith.constant dense<0.000000e+00> : vector<8x8xf32>
    %512 = tpu.matmul %510, %511, %cst_209 {dimension_numbers = #tpu.dot_dimension_numbers<[1], [1], [0], [0], [0, 0, 1, 0], [], []>} : vector<8x8xf32>, vector<8x8xf32>, vector<8x8xf32> -> vector<8x8xf32>
    %cst_210 = arith.constant 0.353553385 : f32
    %513 = vector.broadcast %cst_210 : f32 to vector<8x8xf32>
    %514 = arith.mulf %512, %513 : vector<8x8xf32>
    %cst_211 = arith.constant -1.000000e+04 : f32
    %515 = vector.broadcast %cst_211 : f32 to vector<8x8xf32>
    %516 = arith.select %509, %514, %515 : vector<8x8xi1>, vector<8x8xf32>
    %cst_212 = arith.constant dense<0xFF800000> : vector<8xf32>
    %517 = vector.multi_reduction <maximumf>, %516, %cst_212 [1] : vector<8x8xf32> to vector<8xf32>
    %518 = vector.shape_cast %517 : vector<8xf32> to vector<8x1xf32>
    %519 = vector.broadcast %518 : vector<8x1xf32> to vector<8x8xf32>
    %520 = arith.subf %516, %519 : vector<8x8xf32>
    %521 = math.exp %520 : vector<8x8xf32>
    %cst_213 = arith.constant dense<0.000000e+00> : vector<8xf32>
    %522 = vector.multi_reduction <add>, %521, %cst_213 [1] : vector<8x8xf32> to vector<8xf32>
    %523 = vector.shape_cast %522 : vector<8xf32> to vector<8x1xf32>
    %524 = tpu.reciprocal %523 {approx = true} : vector<8x1xf32> -> vector<8x1xf32>
    %525 = vector.broadcast %524 : vector<8x1xf32> to vector<8x8xf32>
    %526 = arith.mulf %521, %525 : vector<8x8xf32>
    %527 = vector.extract_strided_slice %505 {offsets = [0, 0], sizes = [8, 8], strides = [1, 1]} : vector<8x32xf32> to vector<8x8xf32>
    %cst_214 = arith.constant dense<0.000000e+00> : vector<8x8xf32>
    %528 = tpu.matmul %526, %527, %cst_214 {dimension_numbers = #tpu.dot_dimension_numbers<[1], [0], [0], [1], [0, 0, 1, 1], [], []>} : vector<8x8xf32>, vector<8x8xf32>, vector<8x8xf32> -> vector<8x8xf32>
    %529 = vector.extract_strided_slice %503 {offsets = [0, 8], sizes = [8, 8], strides = [1, 1]} : vector<8x32xf32> to vector<8x8xf32>
    %530 = vector.extract_strided_slice %504 {offsets = [0, 8], sizes = [8, 8], strides = [1, 1]} : vector<8x32xf32> to vector<8x8xf32>
    %cst_215 = arith.constant dense<0.000000e+00> : vector<8x8xf32>
    %531 = tpu.matmul %529, %530, %cst_215 {dimension_numbers = #tpu.dot_dimension_numbers<[1], [1], [0], [0], [0, 0, 1, 0], [], []>} : vector<8x8xf32>, vector<8x8xf32>, vector<8x8xf32> -> vector<8x8xf32>
    %cst_216 = arith.constant 0.353553385 : f32
    %532 = vector.broadcast %cst_216 : f32 to vector<8x8xf32>
    %533 = arith.mulf %531, %532 : vector<8x8xf32>
    %cst_217 = arith.constant -1.000000e+04 : f32
    %534 = vector.broadcast %cst_217 : f32 to vector<8x8xf32>
    %535 = arith.select %509, %533, %534 : vector<8x8xi1>, vector<8x8xf32>
    %cst_218 = arith.constant dense<0xFF800000> : vector<8xf32>
    %536 = vector.multi_reduction <maximumf>, %535, %cst_218 [1] : vector<8x8xf32> to vector<8xf32>
    %537 = vector.shape_cast %536 : vector<8xf32> to vector<8x1xf32>
    %538 = vector.broadcast %537 : vector<8x1xf32> to vector<8x8xf32>
    %539 = arith.subf %535, %538 : vector<8x8xf32>
    %540 = math.exp %539 : vector<8x8xf32>
    %cst_219 = arith.constant dense<0.000000e+00> : vector<8xf32>
    %541 = vector.multi_reduction <add>, %540, %cst_219 [1] : vector<8x8xf32> to vector<8xf32>
    %542 = vector.shape_cast %541 : vector<8xf32> to vector<8x1xf32>
    %543 = tpu.reciprocal %542 {approx = true} : vector<8x1xf32> -> vector<8x1xf32>
    %544 = vector.broadcast %543 : vector<8x1xf32> to vector<8x8xf32>
    %545 = arith.mulf %540, %544 : vector<8x8xf32>
    %546 = vector.extract_strided_slice %505 {offsets = [0, 8], sizes = [8, 8], strides = [1, 1]} : vector<8x32xf32> to vector<8x8xf32>
    %cst_220 = arith.constant dense<0.000000e+00> : vector<8x8xf32>
    %547 = tpu.matmul %545, %546, %cst_220 {dimension_numbers = #tpu.dot_dimension_numbers<[1], [0], [0], [1], [0, 0, 1, 1], [], []>} : vector<8x8xf32>, vector<8x8xf32>, vector<8x8xf32> -> vector<8x8xf32>
    %548 = vector.extract_strided_slice %503 {offsets = [0, 16], sizes = [8, 8], strides = [1, 1]} : vector<8x32xf32> to vector<8x8xf32>
    %549 = vector.extract_strided_slice %504 {offsets = [0, 16], sizes = [8, 8], strides = [1, 1]} : vector<8x32xf32> to vector<8x8xf32>
    %cst_221 = arith.constant dense<0.000000e+00> : vector<8x8xf32>
    %550 = tpu.matmul %548, %549, %cst_221 {dimension_numbers = #tpu.dot_dimension_numbers<[1], [1], [0], [0], [0, 0, 1, 0], [], []>} : vector<8x8xf32>, vector<8x8xf32>, vector<8x8xf32> -> vector<8x8xf32>
    %cst_222 = arith.constant 0.353553385 : f32
    %551 = vector.broadcast %cst_222 : f32 to vector<8x8xf32>
    %552 = arith.mulf %550, %551 : vector<8x8xf32>
    %cst_223 = arith.constant -1.000000e+04 : f32
    %553 = vector.broadcast %cst_223 : f32 to vector<8x8xf32>
    %554 = arith.select %509, %552, %553 : vector<8x8xi1>, vector<8x8xf32>
    %cst_224 = arith.constant dense<0xFF800000> : vector<8xf32>
    %555 = vector.multi_reduction <maximumf>, %554, %cst_224 [1] : vector<8x8xf32> to vector<8xf32>
    %556 = vector.shape_cast %555 : vector<8xf32> to vector<8x1xf32>
    %557 = vector.broadcast %556 : vector<8x1xf32> to vector<8x8xf32>
    %558 = arith.subf %554, %557 : vector<8x8xf32>
    %559 = math.exp %558 : vector<8x8xf32>
    %cst_225 = arith.constant dense<0.000000e+00> : vector<8xf32>
    %560 = vector.multi_reduction <add>, %559, %cst_225 [1] : vector<8x8xf32> to vector<8xf32>
    %561 = vector.shape_cast %560 : vector<8xf32> to vector<8x1xf32>
    %562 = tpu.reciprocal %561 {approx = true} : vector<8x1xf32> -> vector<8x1xf32>
    %563 = vector.broadcast %562 : vector<8x1xf32> to vector<8x8xf32>
    %564 = arith.mulf %559, %563 : vector<8x8xf32>
    %565 = vector.extract_strided_slice %505 {offsets = [0, 16], sizes = [8, 8], strides = [1, 1]} : vector<8x32xf32> to vector<8x8xf32>
    %cst_226 = arith.constant dense<0.000000e+00> : vector<8x8xf32>
    %566 = tpu.matmul %564, %565, %cst_226 {dimension_numbers = #tpu.dot_dimension_numbers<[1], [0], [0], [1], [0, 0, 1, 1], [], []>} : vector<8x8xf32>, vector<8x8xf32>, vector<8x8xf32> -> vector<8x8xf32>
    %567 = vector.extract_strided_slice %503 {offsets = [0, 24], sizes = [8, 8], strides = [1, 1]} : vector<8x32xf32> to vector<8x8xf32>
    %568 = vector.extract_strided_slice %504 {offsets = [0, 24], sizes = [8, 8], strides = [1, 1]} : vector<8x32xf32> to vector<8x8xf32>
    %cst_227 = arith.constant dense<0.000000e+00> : vector<8x8xf32>
    %569 = tpu.matmul %567, %568, %cst_227 {dimension_numbers = #tpu.dot_dimension_numbers<[1], [1], [0], [0], [0, 0, 1, 0], [], []>} : vector<8x8xf32>, vector<8x8xf32>, vector<8x8xf32> -> vector<8x8xf32>
    %cst_228 = arith.constant 0.353553385 : f32
    %570 = vector.broadcast %cst_228 : f32 to vector<8x8xf32>
    %571 = arith.mulf %569, %570 : vector<8x8xf32>
    %cst_229 = arith.constant -1.000000e+04 : f32
    %572 = vector.broadcast %cst_229 : f32 to vector<8x8xf32>
    %573 = arith.select %509, %571, %572 : vector<8x8xi1>, vector<8x8xf32>
    %cst_230 = arith.constant dense<0xFF800000> : vector<8xf32>
    %574 = vector.multi_reduction <maximumf>, %573, %cst_230 [1] : vector<8x8xf32> to vector<8xf32>
    %575 = vector.shape_cast %574 : vector<8xf32> to vector<8x1xf32>
    %576 = vector.broadcast %575 : vector<8x1xf32> to vector<8x8xf32>
    %577 = arith.subf %573, %576 : vector<8x8xf32>
    %578 = math.exp %577 : vector<8x8xf32>
    %cst_231 = arith.constant dense<0.000000e+00> : vector<8xf32>
    %579 = vector.multi_reduction <add>, %578, %cst_231 [1] : vector<8x8xf32> to vector<8xf32>
    %580 = vector.shape_cast %579 : vector<8xf32> to vector<8x1xf32>
    %581 = tpu.reciprocal %580 {approx = true} : vector<8x1xf32> -> vector<8x1xf32>
    %582 = vector.broadcast %581 : vector<8x1xf32> to vector<8x8xf32>
    %583 = arith.mulf %578, %582 : vector<8x8xf32>
    %584 = vector.extract_strided_slice %505 {offsets = [0, 24], sizes = [8, 8], strides = [1, 1]} : vector<8x32xf32> to vector<8x8xf32>
    %cst_232 = arith.constant dense<0.000000e+00> : vector<8x8xf32>
    %585 = tpu.matmul %583, %584, %cst_232 {dimension_numbers = #tpu.dot_dimension_numbers<[1], [0], [0], [1], [0, 0, 1, 1], [], []>} : vector<8x8xf32>, vector<8x8xf32>, vector<8x8xf32> -> vector<8x8xf32>
    %586 = tpu.concatenate %528, %547, %566, %585 in 1 : vector<8x8xf32>, vector<8x8xf32>, vector<8x8xf32>, vector<8x8xf32> -> vector<8x32xf32>
    %587 = vector.extract_strided_slice %496 {offsets = [8, 0], sizes = [8, 32], strides = [1, 1]} : vector<16x32xf32> to vector<8x32xf32>
    %588 = vector.extract_strided_slice %497 {offsets = [8, 0], sizes = [8, 32], strides = [1, 1]} : vector<16x32xf32> to vector<8x32xf32>
    %589 = vector.extract_strided_slice %498 {offsets = [8, 0], sizes = [8, 32], strides = [1, 1]} : vector<16x32xf32> to vector<8x32xf32>
    %590 = vector.extract_strided_slice %12 {offsets = [1, 0, 0], sizes = [1, 8, 8], strides = [1, 1, 1]} : vector<2x8x8xf32> to vector<1x8x8xf32>
    %591 = vector.shape_cast %590 : vector<1x8x8xf32> to vector<8x8xf32>
    %cst_233 = arith.constant 5.000000e-01 : f32
    %592 = vector.broadcast %cst_233 : f32 to vector<8x8xf32>
    %593 = arith.cmpf ogt, %591, %592 : vector<8x8xf32>
    %594 = vector.extract_strided_slice %587 {offsets = [0, 0], sizes = [8, 8], strides = [1, 1]} : vector<8x32xf32> to vector<8x8xf32>
    %595 = vector.extract_strided_slice %588 {offsets = [0, 0], sizes = [8, 8], strides = [1, 1]} : vector<8x32xf32> to vector<8x8xf32>
    %cst_234 = arith.constant dense<0.000000e+00> : vector<8x8xf32>
    %596 = tpu.matmul %594, %595, %cst_234 {dimension_numbers = #tpu.dot_dimension_numbers<[1], [1], [0], [0], [0, 0, 1, 0], [], []>} : vector<8x8xf32>, vector<8x8xf32>, vector<8x8xf32> -> vector<8x8xf32>
    %cst_235 = arith.constant 0.353553385 : f32
    %597 = vector.broadcast %cst_235 : f32 to vector<8x8xf32>
    %598 = arith.mulf %596, %597 : vector<8x8xf32>
    %cst_236 = arith.constant -1.000000e+04 : f32
    %599 = vector.broadcast %cst_236 : f32 to vector<8x8xf32>
    %600 = arith.select %593, %598, %599 : vector<8x8xi1>, vector<8x8xf32>
    %cst_237 = arith.constant dense<0xFF800000> : vector<8xf32>
    %601 = vector.multi_reduction <maximumf>, %600, %cst_237 [1] : vector<8x8xf32> to vector<8xf32>
    %602 = vector.shape_cast %601 : vector<8xf32> to vector<8x1xf32>
    %603 = vector.broadcast %602 : vector<8x1xf32> to vector<8x8xf32>
    %604 = arith.subf %600, %603 : vector<8x8xf32>
    %605 = math.exp %604 : vector<8x8xf32>
    %cst_238 = arith.constant dense<0.000000e+00> : vector<8xf32>
    %606 = vector.multi_reduction <add>, %605, %cst_238 [1] : vector<8x8xf32> to vector<8xf32>
    %607 = vector.shape_cast %606 : vector<8xf32> to vector<8x1xf32>
    %608 = tpu.reciprocal %607 {approx = true} : vector<8x1xf32> -> vector<8x1xf32>
    %609 = vector.broadcast %608 : vector<8x1xf32> to vector<8x8xf32>
    %610 = arith.mulf %605, %609 : vector<8x8xf32>
    %611 = vector.extract_strided_slice %589 {offsets = [0, 0], sizes = [8, 8], strides = [1, 1]} : vector<8x32xf32> to vector<8x8xf32>
    %cst_239 = arith.constant dense<0.000000e+00> : vector<8x8xf32>
    %612 = tpu.matmul %610, %611, %cst_239 {dimension_numbers = #tpu.dot_dimension_numbers<[1], [0], [0], [1], [0, 0, 1, 1], [], []>} : vector<8x8xf32>, vector<8x8xf32>, vector<8x8xf32> -> vector<8x8xf32>
    %613 = vector.extract_strided_slice %587 {offsets = [0, 8], sizes = [8, 8], strides = [1, 1]} : vector<8x32xf32> to vector<8x8xf32>
    %614 = vector.extract_strided_slice %588 {offsets = [0, 8], sizes = [8, 8], strides = [1, 1]} : vector<8x32xf32> to vector<8x8xf32>
    %cst_240 = arith.constant dense<0.000000e+00> : vector<8x8xf32>
    %615 = tpu.matmul %613, %614, %cst_240 {dimension_numbers = #tpu.dot_dimension_numbers<[1], [1], [0], [0], [0, 0, 1, 0], [], []>} : vector<8x8xf32>, vector<8x8xf32>, vector<8x8xf32> -> vector<8x8xf32>
    %cst_241 = arith.constant 0.353553385 : f32
    %616 = vector.broadcast %cst_241 : f32 to vector<8x8xf32>
    %617 = arith.mulf %615, %616 : vector<8x8xf32>
    %cst_242 = arith.constant -1.000000e+04 : f32
    %618 = vector.broadcast %cst_242 : f32 to vector<8x8xf32>
    %619 = arith.select %593, %617, %618 : vector<8x8xi1>, vector<8x8xf32>
    %cst_243 = arith.constant dense<0xFF800000> : vector<8xf32>
    %620 = vector.multi_reduction <maximumf>, %619, %cst_243 [1] : vector<8x8xf32> to vector<8xf32>
    %621 = vector.shape_cast %620 : vector<8xf32> to vector<8x1xf32>
    %622 = vector.broadcast %621 : vector<8x1xf32> to vector<8x8xf32>
    %623 = arith.subf %619, %622 : vector<8x8xf32>
    %624 = math.exp %623 : vector<8x8xf32>
    %cst_244 = arith.constant dense<0.000000e+00> : vector<8xf32>
    %625 = vector.multi_reduction <add>, %624, %cst_244 [1] : vector<8x8xf32> to vector<8xf32>
    %626 = vector.shape_cast %625 : vector<8xf32> to vector<8x1xf32>
    %627 = tpu.reciprocal %626 {approx = true} : vector<8x1xf32> -> vector<8x1xf32>
    %628 = vector.broadcast %627 : vector<8x1xf32> to vector<8x8xf32>
    %629 = arith.mulf %624, %628 : vector<8x8xf32>
    %630 = vector.extract_strided_slice %589 {offsets = [0, 8], sizes = [8, 8], strides = [1, 1]} : vector<8x32xf32> to vector<8x8xf32>
    %cst_245 = arith.constant dense<0.000000e+00> : vector<8x8xf32>
    %631 = tpu.matmul %629, %630, %cst_245 {dimension_numbers = #tpu.dot_dimension_numbers<[1], [0], [0], [1], [0, 0, 1, 1], [], []>} : vector<8x8xf32>, vector<8x8xf32>, vector<8x8xf32> -> vector<8x8xf32>
    %632 = vector.extract_strided_slice %587 {offsets = [0, 16], sizes = [8, 8], strides = [1, 1]} : vector<8x32xf32> to vector<8x8xf32>
    %633 = vector.extract_strided_slice %588 {offsets = [0, 16], sizes = [8, 8], strides = [1, 1]} : vector<8x32xf32> to vector<8x8xf32>
    %cst_246 = arith.constant dense<0.000000e+00> : vector<8x8xf32>
    %634 = tpu.matmul %632, %633, %cst_246 {dimension_numbers = #tpu.dot_dimension_numbers<[1], [1], [0], [0], [0, 0, 1, 0], [], []>} : vector<8x8xf32>, vector<8x8xf32>, vector<8x8xf32> -> vector<8x8xf32>
    %cst_247 = arith.constant 0.353553385 : f32
    %635 = vector.broadcast %cst_247 : f32 to vector<8x8xf32>
    %636 = arith.mulf %634, %635 : vector<8x8xf32>
    %cst_248 = arith.constant -1.000000e+04 : f32
    %637 = vector.broadcast %cst_248 : f32 to vector<8x8xf32>
    %638 = arith.select %593, %636, %637 : vector<8x8xi1>, vector<8x8xf32>
    %cst_249 = arith.constant dense<0xFF800000> : vector<8xf32>
    %639 = vector.multi_reduction <maximumf>, %638, %cst_249 [1] : vector<8x8xf32> to vector<8xf32>
    %640 = vector.shape_cast %639 : vector<8xf32> to vector<8x1xf32>
    %641 = vector.broadcast %640 : vector<8x1xf32> to vector<8x8xf32>
    %642 = arith.subf %638, %641 : vector<8x8xf32>
    %643 = math.exp %642 : vector<8x8xf32>
    %cst_250 = arith.constant dense<0.000000e+00> : vector<8xf32>
    %644 = vector.multi_reduction <add>, %643, %cst_250 [1] : vector<8x8xf32> to vector<8xf32>
    %645 = vector.shape_cast %644 : vector<8xf32> to vector<8x1xf32>
    %646 = tpu.reciprocal %645 {approx = true} : vector<8x1xf32> -> vector<8x1xf32>
    %647 = vector.broadcast %646 : vector<8x1xf32> to vector<8x8xf32>
    %648 = arith.mulf %643, %647 : vector<8x8xf32>
    %649 = vector.extract_strided_slice %589 {offsets = [0, 16], sizes = [8, 8], strides = [1, 1]} : vector<8x32xf32> to vector<8x8xf32>
    %cst_251 = arith.constant dense<0.000000e+00> : vector<8x8xf32>
    %650 = tpu.matmul %648, %649, %cst_251 {dimension_numbers = #tpu.dot_dimension_numbers<[1], [0], [0], [1], [0, 0, 1, 1], [], []>} : vector<8x8xf32>, vector<8x8xf32>, vector<8x8xf32> -> vector<8x8xf32>
    %651 = vector.extract_strided_slice %587 {offsets = [0, 24], sizes = [8, 8], strides = [1, 1]} : vector<8x32xf32> to vector<8x8xf32>
    %652 = vector.extract_strided_slice %588 {offsets = [0, 24], sizes = [8, 8], strides = [1, 1]} : vector<8x32xf32> to vector<8x8xf32>
    %cst_252 = arith.constant dense<0.000000e+00> : vector<8x8xf32>
    %653 = tpu.matmul %651, %652, %cst_252 {dimension_numbers = #tpu.dot_dimension_numbers<[1], [1], [0], [0], [0, 0, 1, 0], [], []>} : vector<8x8xf32>, vector<8x8xf32>, vector<8x8xf32> -> vector<8x8xf32>
    %cst_253 = arith.constant 0.353553385 : f32
    %654 = vector.broadcast %cst_253 : f32 to vector<8x8xf32>
    %655 = arith.mulf %653, %654 : vector<8x8xf32>
    %cst_254 = arith.constant -1.000000e+04 : f32
    %656 = vector.broadcast %cst_254 : f32 to vector<8x8xf32>
    %657 = arith.select %593, %655, %656 : vector<8x8xi1>, vector<8x8xf32>
    %cst_255 = arith.constant dense<0xFF800000> : vector<8xf32>
    %658 = vector.multi_reduction <maximumf>, %657, %cst_255 [1] : vector<8x8xf32> to vector<8xf32>
    %659 = vector.shape_cast %658 : vector<8xf32> to vector<8x1xf32>
    %660 = vector.broadcast %659 : vector<8x1xf32> to vector<8x8xf32>
    %661 = arith.subf %657, %660 : vector<8x8xf32>
    %662 = math.exp %661 : vector<8x8xf32>
    %cst_256 = arith.constant dense<0.000000e+00> : vector<8xf32>
    %663 = vector.multi_reduction <add>, %662, %cst_256 [1] : vector<8x8xf32> to vector<8xf32>
    %664 = vector.shape_cast %663 : vector<8xf32> to vector<8x1xf32>
    %665 = tpu.reciprocal %664 {approx = true} : vector<8x1xf32> -> vector<8x1xf32>
    %666 = vector.broadcast %665 : vector<8x1xf32> to vector<8x8xf32>
    %667 = arith.mulf %662, %666 : vector<8x8xf32>
    %668 = vector.extract_strided_slice %589 {offsets = [0, 24], sizes = [8, 8], strides = [1, 1]} : vector<8x32xf32> to vector<8x8xf32>
    %cst_257 = arith.constant dense<0.000000e+00> : vector<8x8xf32>
    %669 = tpu.matmul %667, %668, %cst_257 {dimension_numbers = #tpu.dot_dimension_numbers<[1], [0], [0], [1], [0, 0, 1, 1], [], []>} : vector<8x8xf32>, vector<8x8xf32>, vector<8x8xf32> -> vector<8x8xf32>
    %670 = tpu.concatenate %612, %631, %650, %669 in 1 : vector<8x8xf32>, vector<8x8xf32>, vector<8x8xf32>, vector<8x8xf32> -> vector<8x32xf32>
    %671 = tpu.concatenate %586, %670 in 0 : vector<8x32xf32>, vector<8x32xf32> -> vector<16x32xf32>
    %cst_258 = arith.constant dense<0.000000e+00> : vector<16x32xf32>
    %672 = tpu.matmul %671, %500, %cst_258 {dimension_numbers = #tpu.dot_dimension_numbers<[1], [0], [0], [1], [0, 0, 1, 1], [], []>} : vector<16x32xf32>, vector<32x32xf32>, vector<16x32xf32> -> vector<16x32xf32>
    %673 = vector.broadcast %502 : vector<1x32xf32> to vector<16x32xf32>
    %674 = arith.addf %672, %673 : vector<16x32xf32>
    %675 = arith.addf %674, %488 : vector<16x32xf32>
    %c1_259 = arith.constant 1 : index
    %c0_260 = arith.constant 0 : index
    %c0_261 = arith.constant 0 : index
    %676 = vector.load %arg20[%c1_259, %c0_260, %c0_261] : memref<2x1x32xf32, #tpu.memory_space<vmem>>, vector<1x1x32xf32>
    %677 = vector.shape_cast %676 : vector<1x1x32xf32> to vector<1x32xf32>
    %c1_262 = arith.constant 1 : index
    %c0_263 = arith.constant 0 : index
    %c0_264 = arith.constant 0 : index
    %678 = vector.load %arg21[%c1_262, %c0_263, %c0_264] : memref<2x1x32xf32, #tpu.memory_space<vmem>>, vector<1x1x32xf32>
    %679 = vector.shape_cast %678 : vector<1x1x32xf32> to vector<1x32xf32>
    %cst_265 = arith.constant dense<0.000000e+00> : vector<16xf32>
    %680 = vector.multi_reduction <add>, %675, %cst_265 [1] : vector<16x32xf32> to vector<16xf32>
    %681 = vector.shape_cast %680 : vector<16xf32> to vector<16x1xf32>
    %cst_266 = arith.constant 3.200000e+01 : f32
    %682 = vector.broadcast %cst_266 : f32 to vector<16x1xf32>
    %683 = arith.divf %681, %682 : vector<16x1xf32>
    %684 = vector.broadcast %683 : vector<16x1xf32> to vector<16x32xf32>
    %685 = arith.subf %675, %684 : vector<16x32xf32>
    %686 = arith.mulf %685, %685 : vector<16x32xf32>
    %cst_267 = arith.constant dense<0.000000e+00> : vector<16xf32>
    %687 = vector.multi_reduction <add>, %686, %cst_267 [1] : vector<16x32xf32> to vector<16xf32>
    %688 = vector.shape_cast %687 : vector<16xf32> to vector<16x1xf32>
    %cst_268 = arith.constant 3.200000e+01 : f32
    %689 = vector.broadcast %cst_268 : f32 to vector<16x1xf32>
    %690 = arith.divf %688, %689 : vector<16x1xf32>
    %691 = vector.broadcast %683 : vector<16x1xf32> to vector<16x32xf32>
    %692 = arith.subf %675, %691 : vector<16x32xf32>
    %cst_269 = arith.constant 9.99999996E-13 : f32
    %693 = vector.broadcast %cst_269 : f32 to vector<16x1xf32>
    %694 = arith.addf %690, %693 : vector<16x1xf32>
    %695 = math.rsqrt %694 : vector<16x1xf32>
    %696 = vector.broadcast %695 : vector<16x1xf32> to vector<16x32xf32>
    %697 = arith.mulf %692, %696 : vector<16x32xf32>
    %698 = vector.broadcast %677 : vector<1x32xf32> to vector<16x32xf32>
    %699 = arith.mulf %697, %698 : vector<16x32xf32>
    %700 = vector.broadcast %679 : vector<1x32xf32> to vector<16x32xf32>
    %701 = arith.addf %699, %700 : vector<16x32xf32>
    %c1_270 = arith.constant 1 : index
    %c0_271 = arith.constant 0 : index
    %c0_272 = arith.constant 0 : index
    %702 = vector.load %arg10[%c1_270, %c0_271, %c0_272] : memref<2x32x32xf32, #tpu.memory_space<vmem>>, vector<1x32x32xf32>
    %703 = vector.shape_cast %702 : vector<1x32x32xf32> to vector<32x32xf32>
    %cst_273 = arith.constant dense<0.000000e+00> : vector<16x32xf32>
    %704 = tpu.matmul %701, %703, %cst_273 {dimension_numbers = #tpu.dot_dimension_numbers<[1], [0], [0], [1], [0, 0, 1, 1], [], []>} : vector<16x32xf32>, vector<32x32xf32>, vector<16x32xf32> -> vector<16x32xf32>
    %c1_274 = arith.constant 1 : index
    %c0_275 = arith.constant 0 : index
    %c0_276 = arith.constant 0 : index
    %705 = vector.load %arg11[%c1_274, %c0_275, %c0_276] : memref<2x1x32xf32, #tpu.memory_space<vmem>>, vector<1x1x32xf32>
    %706 = vector.shape_cast %705 : vector<1x1x32xf32> to vector<1x32xf32>
    %707 = vector.broadcast %706 : vector<1x32xf32> to vector<16x32xf32>
    %708 = arith.addf %704, %707 : vector<16x32xf32>
    %c1_277 = arith.constant 1 : index
    %c0_278 = arith.constant 0 : index
    %c0_279 = arith.constant 0 : index
    %709 = vector.load %arg12[%c1_277, %c0_278, %c0_279] : memref<2x32x64xf32, #tpu.memory_space<vmem>>, vector<1x32x64xf32>
    %710 = vector.shape_cast %709 : vector<1x32x64xf32> to vector<32x64xf32>
    %cst_280 = arith.constant dense<0.000000e+00> : vector<16x64xf32>
    %711 = tpu.matmul %11, %710, %cst_280 {dimension_numbers = #tpu.dot_dimension_numbers<[1], [0], [0], [1], [0, 0, 1, 1], [], []>} : vector<16x32xf32>, vector<32x64xf32>, vector<16x64xf32> -> vector<16x64xf32>
    %c1_281 = arith.constant 1 : index
    %c0_282 = arith.constant 0 : index
    %c0_283 = arith.constant 0 : index
    %712 = vector.load %arg13[%c1_281, %c0_282, %c0_283] : memref<2x1x64xf32, #tpu.memory_space<vmem>>, vector<1x1x64xf32>
    %713 = vector.shape_cast %712 : vector<1x1x64xf32> to vector<1x64xf32>
    %714 = vector.broadcast %713 : vector<1x64xf32> to vector<16x64xf32>
    %715 = arith.addf %711, %714 : vector<16x64xf32>
    %716 = vector.extract_strided_slice %715 {offsets = [0, 0], sizes = [16, 32], strides = [1, 1]} : vector<16x64xf32> to vector<16x32xf32>
    %717 = vector.extract_strided_slice %715 {offsets = [0, 32], sizes = [16, 32], strides = [1, 1]} : vector<16x64xf32> to vector<16x32xf32>
    %c1_284 = arith.constant 1 : index
    %c0_285 = arith.constant 0 : index
    %c0_286 = arith.constant 0 : index
    %718 = vector.load %arg14[%c1_284, %c0_285, %c0_286] : memref<2x32x32xf32, #tpu.memory_space<vmem>>, vector<1x32x32xf32>
    %719 = vector.shape_cast %718 : vector<1x32x32xf32> to vector<32x32xf32>
    %c1_287 = arith.constant 1 : index
    %c0_288 = arith.constant 0 : index
    %c0_289 = arith.constant 0 : index
    %720 = vector.load %arg15[%c1_287, %c0_288, %c0_289] : memref<2x1x32xf32, #tpu.memory_space<vmem>>, vector<1x1x32xf32>
    %721 = vector.shape_cast %720 : vector<1x1x32xf32> to vector<1x32xf32>
    %722 = vector.extract_strided_slice %708 {offsets = [0, 0], sizes = [8, 32], strides = [1, 1]} : vector<16x32xf32> to vector<8x32xf32>
    %723 = vector.extract_strided_slice %716 {offsets = [0, 0], sizes = [8, 32], strides = [1, 1]} : vector<16x32xf32> to vector<8x32xf32>
    %724 = vector.extract_strided_slice %717 {offsets = [0, 0], sizes = [8, 32], strides = [1, 1]} : vector<16x32xf32> to vector<8x32xf32>
    %725 = vector.extract_strided_slice %13 {offsets = [0, 0, 0], sizes = [1, 8, 8], strides = [1, 1, 1]} : vector<2x8x8xf32> to vector<1x8x8xf32>
    %726 = vector.shape_cast %725 : vector<1x8x8xf32> to vector<8x8xf32>
    %cst_290 = arith.constant 5.000000e-01 : f32
    %727 = vector.broadcast %cst_290 : f32 to vector<8x8xf32>
    %728 = arith.cmpf ogt, %726, %727 : vector<8x8xf32>
    %729 = vector.extract_strided_slice %722 {offsets = [0, 0], sizes = [8, 8], strides = [1, 1]} : vector<8x32xf32> to vector<8x8xf32>
    %730 = vector.extract_strided_slice %723 {offsets = [0, 0], sizes = [8, 8], strides = [1, 1]} : vector<8x32xf32> to vector<8x8xf32>
    %cst_291 = arith.constant dense<0.000000e+00> : vector<8x8xf32>
    %731 = tpu.matmul %729, %730, %cst_291 {dimension_numbers = #tpu.dot_dimension_numbers<[1], [1], [0], [0], [0, 0, 1, 0], [], []>} : vector<8x8xf32>, vector<8x8xf32>, vector<8x8xf32> -> vector<8x8xf32>
    %cst_292 = arith.constant 0.353553385 : f32
    %732 = vector.broadcast %cst_292 : f32 to vector<8x8xf32>
    %733 = arith.mulf %731, %732 : vector<8x8xf32>
    %cst_293 = arith.constant -1.000000e+04 : f32
    %734 = vector.broadcast %cst_293 : f32 to vector<8x8xf32>
    %735 = arith.select %728, %733, %734 : vector<8x8xi1>, vector<8x8xf32>
    %cst_294 = arith.constant dense<0xFF800000> : vector<8xf32>
    %736 = vector.multi_reduction <maximumf>, %735, %cst_294 [1] : vector<8x8xf32> to vector<8xf32>
    %737 = vector.shape_cast %736 : vector<8xf32> to vector<8x1xf32>
    %738 = vector.broadcast %737 : vector<8x1xf32> to vector<8x8xf32>
    %739 = arith.subf %735, %738 : vector<8x8xf32>
    %740 = math.exp %739 : vector<8x8xf32>
    %cst_295 = arith.constant dense<0.000000e+00> : vector<8xf32>
    %741 = vector.multi_reduction <add>, %740, %cst_295 [1] : vector<8x8xf32> to vector<8xf32>
    %742 = vector.shape_cast %741 : vector<8xf32> to vector<8x1xf32>
    %743 = tpu.reciprocal %742 {approx = true} : vector<8x1xf32> -> vector<8x1xf32>
    %744 = vector.broadcast %743 : vector<8x1xf32> to vector<8x8xf32>
    %745 = arith.mulf %740, %744 : vector<8x8xf32>
    %746 = vector.extract_strided_slice %724 {offsets = [0, 0], sizes = [8, 8], strides = [1, 1]} : vector<8x32xf32> to vector<8x8xf32>
    %cst_296 = arith.constant dense<0.000000e+00> : vector<8x8xf32>
    %747 = tpu.matmul %745, %746, %cst_296 {dimension_numbers = #tpu.dot_dimension_numbers<[1], [0], [0], [1], [0, 0, 1, 1], [], []>} : vector<8x8xf32>, vector<8x8xf32>, vector<8x8xf32> -> vector<8x8xf32>
    %748 = vector.extract_strided_slice %722 {offsets = [0, 8], sizes = [8, 8], strides = [1, 1]} : vector<8x32xf32> to vector<8x8xf32>
    %749 = vector.extract_strided_slice %723 {offsets = [0, 8], sizes = [8, 8], strides = [1, 1]} : vector<8x32xf32> to vector<8x8xf32>
    %cst_297 = arith.constant dense<0.000000e+00> : vector<8x8xf32>
    %750 = tpu.matmul %748, %749, %cst_297 {dimension_numbers = #tpu.dot_dimension_numbers<[1], [1], [0], [0], [0, 0, 1, 0], [], []>} : vector<8x8xf32>, vector<8x8xf32>, vector<8x8xf32> -> vector<8x8xf32>
    %cst_298 = arith.constant 0.353553385 : f32
    %751 = vector.broadcast %cst_298 : f32 to vector<8x8xf32>
    %752 = arith.mulf %750, %751 : vector<8x8xf32>
    %cst_299 = arith.constant -1.000000e+04 : f32
    %753 = vector.broadcast %cst_299 : f32 to vector<8x8xf32>
    %754 = arith.select %728, %752, %753 : vector<8x8xi1>, vector<8x8xf32>
    %cst_300 = arith.constant dense<0xFF800000> : vector<8xf32>
    %755 = vector.multi_reduction <maximumf>, %754, %cst_300 [1] : vector<8x8xf32> to vector<8xf32>
    %756 = vector.shape_cast %755 : vector<8xf32> to vector<8x1xf32>
    %757 = vector.broadcast %756 : vector<8x1xf32> to vector<8x8xf32>
    %758 = arith.subf %754, %757 : vector<8x8xf32>
    %759 = math.exp %758 : vector<8x8xf32>
    %cst_301 = arith.constant dense<0.000000e+00> : vector<8xf32>
    %760 = vector.multi_reduction <add>, %759, %cst_301 [1] : vector<8x8xf32> to vector<8xf32>
    %761 = vector.shape_cast %760 : vector<8xf32> to vector<8x1xf32>
    %762 = tpu.reciprocal %761 {approx = true} : vector<8x1xf32> -> vector<8x1xf32>
    %763 = vector.broadcast %762 : vector<8x1xf32> to vector<8x8xf32>
    %764 = arith.mulf %759, %763 : vector<8x8xf32>
    %765 = vector.extract_strided_slice %724 {offsets = [0, 8], sizes = [8, 8], strides = [1, 1]} : vector<8x32xf32> to vector<8x8xf32>
    %cst_302 = arith.constant dense<0.000000e+00> : vector<8x8xf32>
    %766 = tpu.matmul %764, %765, %cst_302 {dimension_numbers = #tpu.dot_dimension_numbers<[1], [0], [0], [1], [0, 0, 1, 1], [], []>} : vector<8x8xf32>, vector<8x8xf32>, vector<8x8xf32> -> vector<8x8xf32>
    %767 = vector.extract_strided_slice %722 {offsets = [0, 16], sizes = [8, 8], strides = [1, 1]} : vector<8x32xf32> to vector<8x8xf32>
    %768 = vector.extract_strided_slice %723 {offsets = [0, 16], sizes = [8, 8], strides = [1, 1]} : vector<8x32xf32> to vector<8x8xf32>
    %cst_303 = arith.constant dense<0.000000e+00> : vector<8x8xf32>
    %769 = tpu.matmul %767, %768, %cst_303 {dimension_numbers = #tpu.dot_dimension_numbers<[1], [1], [0], [0], [0, 0, 1, 0], [], []>} : vector<8x8xf32>, vector<8x8xf32>, vector<8x8xf32> -> vector<8x8xf32>
    %cst_304 = arith.constant 0.353553385 : f32
    %770 = vector.broadcast %cst_304 : f32 to vector<8x8xf32>
    %771 = arith.mulf %769, %770 : vector<8x8xf32>
    %cst_305 = arith.constant -1.000000e+04 : f32
    %772 = vector.broadcast %cst_305 : f32 to vector<8x8xf32>
    %773 = arith.select %728, %771, %772 : vector<8x8xi1>, vector<8x8xf32>
    %cst_306 = arith.constant dense<0xFF800000> : vector<8xf32>
    %774 = vector.multi_reduction <maximumf>, %773, %cst_306 [1] : vector<8x8xf32> to vector<8xf32>
    %775 = vector.shape_cast %774 : vector<8xf32> to vector<8x1xf32>
    %776 = vector.broadcast %775 : vector<8x1xf32> to vector<8x8xf32>
    %777 = arith.subf %773, %776 : vector<8x8xf32>
    %778 = math.exp %777 : vector<8x8xf32>
    %cst_307 = arith.constant dense<0.000000e+00> : vector<8xf32>
    %779 = vector.multi_reduction <add>, %778, %cst_307 [1] : vector<8x8xf32> to vector<8xf32>
    %780 = vector.shape_cast %779 : vector<8xf32> to vector<8x1xf32>
    %781 = tpu.reciprocal %780 {approx = true} : vector<8x1xf32> -> vector<8x1xf32>
    %782 = vector.broadcast %781 : vector<8x1xf32> to vector<8x8xf32>
    %783 = arith.mulf %778, %782 : vector<8x8xf32>
    %784 = vector.extract_strided_slice %724 {offsets = [0, 16], sizes = [8, 8], strides = [1, 1]} : vector<8x32xf32> to vector<8x8xf32>
    %cst_308 = arith.constant dense<0.000000e+00> : vector<8x8xf32>
    %785 = tpu.matmul %783, %784, %cst_308 {dimension_numbers = #tpu.dot_dimension_numbers<[1], [0], [0], [1], [0, 0, 1, 1], [], []>} : vector<8x8xf32>, vector<8x8xf32>, vector<8x8xf32> -> vector<8x8xf32>
    %786 = vector.extract_strided_slice %722 {offsets = [0, 24], sizes = [8, 8], strides = [1, 1]} : vector<8x32xf32> to vector<8x8xf32>
    %787 = vector.extract_strided_slice %723 {offsets = [0, 24], sizes = [8, 8], strides = [1, 1]} : vector<8x32xf32> to vector<8x8xf32>
    %cst_309 = arith.constant dense<0.000000e+00> : vector<8x8xf32>
    %788 = tpu.matmul %786, %787, %cst_309 {dimension_numbers = #tpu.dot_dimension_numbers<[1], [1], [0], [0], [0, 0, 1, 0], [], []>} : vector<8x8xf32>, vector<8x8xf32>, vector<8x8xf32> -> vector<8x8xf32>
    %cst_310 = arith.constant 0.353553385 : f32
    %789 = vector.broadcast %cst_310 : f32 to vector<8x8xf32>
    %790 = arith.mulf %788, %789 : vector<8x8xf32>
    %cst_311 = arith.constant -1.000000e+04 : f32
    %791 = vector.broadcast %cst_311 : f32 to vector<8x8xf32>
    %792 = arith.select %728, %790, %791 : vector<8x8xi1>, vector<8x8xf32>
    %cst_312 = arith.constant dense<0xFF800000> : vector<8xf32>
    %793 = vector.multi_reduction <maximumf>, %792, %cst_312 [1] : vector<8x8xf32> to vector<8xf32>
    %794 = vector.shape_cast %793 : vector<8xf32> to vector<8x1xf32>
    %795 = vector.broadcast %794 : vector<8x1xf32> to vector<8x8xf32>
    %796 = arith.subf %792, %795 : vector<8x8xf32>
    %797 = math.exp %796 : vector<8x8xf32>
    %cst_313 = arith.constant dense<0.000000e+00> : vector<8xf32>
    %798 = vector.multi_reduction <add>, %797, %cst_313 [1] : vector<8x8xf32> to vector<8xf32>
    %799 = vector.shape_cast %798 : vector<8xf32> to vector<8x1xf32>
    %800 = tpu.reciprocal %799 {approx = true} : vector<8x1xf32> -> vector<8x1xf32>
    %801 = vector.broadcast %800 : vector<8x1xf32> to vector<8x8xf32>
    %802 = arith.mulf %797, %801 : vector<8x8xf32>
    %803 = vector.extract_strided_slice %724 {offsets = [0, 24], sizes = [8, 8], strides = [1, 1]} : vector<8x32xf32> to vector<8x8xf32>
    %cst_314 = arith.constant dense<0.000000e+00> : vector<8x8xf32>
    %804 = tpu.matmul %802, %803, %cst_314 {dimension_numbers = #tpu.dot_dimension_numbers<[1], [0], [0], [1], [0, 0, 1, 1], [], []>} : vector<8x8xf32>, vector<8x8xf32>, vector<8x8xf32> -> vector<8x8xf32>
    %805 = tpu.concatenate %747, %766, %785, %804 in 1 : vector<8x8xf32>, vector<8x8xf32>, vector<8x8xf32>, vector<8x8xf32> -> vector<8x32xf32>
    %806 = vector.extract_strided_slice %708 {offsets = [8, 0], sizes = [8, 32], strides = [1, 1]} : vector<16x32xf32> to vector<8x32xf32>
    %807 = vector.extract_strided_slice %716 {offsets = [8, 0], sizes = [8, 32], strides = [1, 1]} : vector<16x32xf32> to vector<8x32xf32>
    %808 = vector.extract_strided_slice %717 {offsets = [8, 0], sizes = [8, 32], strides = [1, 1]} : vector<16x32xf32> to vector<8x32xf32>
    %809 = vector.extract_strided_slice %13 {offsets = [1, 0, 0], sizes = [1, 8, 8], strides = [1, 1, 1]} : vector<2x8x8xf32> to vector<1x8x8xf32>
    %810 = vector.shape_cast %809 : vector<1x8x8xf32> to vector<8x8xf32>
    %cst_315 = arith.constant 5.000000e-01 : f32
    %811 = vector.broadcast %cst_315 : f32 to vector<8x8xf32>
    %812 = arith.cmpf ogt, %810, %811 : vector<8x8xf32>
    %813 = vector.extract_strided_slice %806 {offsets = [0, 0], sizes = [8, 8], strides = [1, 1]} : vector<8x32xf32> to vector<8x8xf32>
    %814 = vector.extract_strided_slice %807 {offsets = [0, 0], sizes = [8, 8], strides = [1, 1]} : vector<8x32xf32> to vector<8x8xf32>
    %cst_316 = arith.constant dense<0.000000e+00> : vector<8x8xf32>
    %815 = tpu.matmul %813, %814, %cst_316 {dimension_numbers = #tpu.dot_dimension_numbers<[1], [1], [0], [0], [0, 0, 1, 0], [], []>} : vector<8x8xf32>, vector<8x8xf32>, vector<8x8xf32> -> vector<8x8xf32>
    %cst_317 = arith.constant 0.353553385 : f32
    %816 = vector.broadcast %cst_317 : f32 to vector<8x8xf32>
    %817 = arith.mulf %815, %816 : vector<8x8xf32>
    %cst_318 = arith.constant -1.000000e+04 : f32
    %818 = vector.broadcast %cst_318 : f32 to vector<8x8xf32>
    %819 = arith.select %812, %817, %818 : vector<8x8xi1>, vector<8x8xf32>
    %cst_319 = arith.constant dense<0xFF800000> : vector<8xf32>
    %820 = vector.multi_reduction <maximumf>, %819, %cst_319 [1] : vector<8x8xf32> to vector<8xf32>
    %821 = vector.shape_cast %820 : vector<8xf32> to vector<8x1xf32>
    %822 = vector.broadcast %821 : vector<8x1xf32> to vector<8x8xf32>
    %823 = arith.subf %819, %822 : vector<8x8xf32>
    %824 = math.exp %823 : vector<8x8xf32>
    %cst_320 = arith.constant dense<0.000000e+00> : vector<8xf32>
    %825 = vector.multi_reduction <add>, %824, %cst_320 [1] : vector<8x8xf32> to vector<8xf32>
    %826 = vector.shape_cast %825 : vector<8xf32> to vector<8x1xf32>
    %827 = tpu.reciprocal %826 {approx = true} : vector<8x1xf32> -> vector<8x1xf32>
    %828 = vector.broadcast %827 : vector<8x1xf32> to vector<8x8xf32>
    %829 = arith.mulf %824, %828 : vector<8x8xf32>
    %830 = vector.extract_strided_slice %808 {offsets = [0, 0], sizes = [8, 8], strides = [1, 1]} : vector<8x32xf32> to vector<8x8xf32>
    %cst_321 = arith.constant dense<0.000000e+00> : vector<8x8xf32>
    %831 = tpu.matmul %829, %830, %cst_321 {dimension_numbers = #tpu.dot_dimension_numbers<[1], [0], [0], [1], [0, 0, 1, 1], [], []>} : vector<8x8xf32>, vector<8x8xf32>, vector<8x8xf32> -> vector<8x8xf32>
    %832 = vector.extract_strided_slice %806 {offsets = [0, 8], sizes = [8, 8], strides = [1, 1]} : vector<8x32xf32> to vector<8x8xf32>
    %833 = vector.extract_strided_slice %807 {offsets = [0, 8], sizes = [8, 8], strides = [1, 1]} : vector<8x32xf32> to vector<8x8xf32>
    %cst_322 = arith.constant dense<0.000000e+00> : vector<8x8xf32>
    %834 = tpu.matmul %832, %833, %cst_322 {dimension_numbers = #tpu.dot_dimension_numbers<[1], [1], [0], [0], [0, 0, 1, 0], [], []>} : vector<8x8xf32>, vector<8x8xf32>, vector<8x8xf32> -> vector<8x8xf32>
    %cst_323 = arith.constant 0.353553385 : f32
    %835 = vector.broadcast %cst_323 : f32 to vector<8x8xf32>
    %836 = arith.mulf %834, %835 : vector<8x8xf32>
    %cst_324 = arith.constant -1.000000e+04 : f32
    %837 = vector.broadcast %cst_324 : f32 to vector<8x8xf32>
    %838 = arith.select %812, %836, %837 : vector<8x8xi1>, vector<8x8xf32>
    %cst_325 = arith.constant dense<0xFF800000> : vector<8xf32>
    %839 = vector.multi_reduction <maximumf>, %838, %cst_325 [1] : vector<8x8xf32> to vector<8xf32>
    %840 = vector.shape_cast %839 : vector<8xf32> to vector<8x1xf32>
    %841 = vector.broadcast %840 : vector<8x1xf32> to vector<8x8xf32>
    %842 = arith.subf %838, %841 : vector<8x8xf32>
    %843 = math.exp %842 : vector<8x8xf32>
    %cst_326 = arith.constant dense<0.000000e+00> : vector<8xf32>
    %844 = vector.multi_reduction <add>, %843, %cst_326 [1] : vector<8x8xf32> to vector<8xf32>
    %845 = vector.shape_cast %844 : vector<8xf32> to vector<8x1xf32>
    %846 = tpu.reciprocal %845 {approx = true} : vector<8x1xf32> -> vector<8x1xf32>
    %847 = vector.broadcast %846 : vector<8x1xf32> to vector<8x8xf32>
    %848 = arith.mulf %843, %847 : vector<8x8xf32>
    %849 = vector.extract_strided_slice %808 {offsets = [0, 8], sizes = [8, 8], strides = [1, 1]} : vector<8x32xf32> to vector<8x8xf32>
    %cst_327 = arith.constant dense<0.000000e+00> : vector<8x8xf32>
    %850 = tpu.matmul %848, %849, %cst_327 {dimension_numbers = #tpu.dot_dimension_numbers<[1], [0], [0], [1], [0, 0, 1, 1], [], []>} : vector<8x8xf32>, vector<8x8xf32>, vector<8x8xf32> -> vector<8x8xf32>
    %851 = vector.extract_strided_slice %806 {offsets = [0, 16], sizes = [8, 8], strides = [1, 1]} : vector<8x32xf32> to vector<8x8xf32>
    %852 = vector.extract_strided_slice %807 {offsets = [0, 16], sizes = [8, 8], strides = [1, 1]} : vector<8x32xf32> to vector<8x8xf32>
    %cst_328 = arith.constant dense<0.000000e+00> : vector<8x8xf32>
    %853 = tpu.matmul %851, %852, %cst_328 {dimension_numbers = #tpu.dot_dimension_numbers<[1], [1], [0], [0], [0, 0, 1, 0], [], []>} : vector<8x8xf32>, vector<8x8xf32>, vector<8x8xf32> -> vector<8x8xf32>
    %cst_329 = arith.constant 0.353553385 : f32
    %854 = vector.broadcast %cst_329 : f32 to vector<8x8xf32>
    %855 = arith.mulf %853, %854 : vector<8x8xf32>
    %cst_330 = arith.constant -1.000000e+04 : f32
    %856 = vector.broadcast %cst_330 : f32 to vector<8x8xf32>
    %857 = arith.select %812, %855, %856 : vector<8x8xi1>, vector<8x8xf32>
    %cst_331 = arith.constant dense<0xFF800000> : vector<8xf32>
    %858 = vector.multi_reduction <maximumf>, %857, %cst_331 [1] : vector<8x8xf32> to vector<8xf32>
    %859 = vector.shape_cast %858 : vector<8xf32> to vector<8x1xf32>
    %860 = vector.broadcast %859 : vector<8x1xf32> to vector<8x8xf32>
    %861 = arith.subf %857, %860 : vector<8x8xf32>
    %862 = math.exp %861 : vector<8x8xf32>
    %cst_332 = arith.constant dense<0.000000e+00> : vector<8xf32>
    %863 = vector.multi_reduction <add>, %862, %cst_332 [1] : vector<8x8xf32> to vector<8xf32>
    %864 = vector.shape_cast %863 : vector<8xf32> to vector<8x1xf32>
    %865 = tpu.reciprocal %864 {approx = true} : vector<8x1xf32> -> vector<8x1xf32>
    %866 = vector.broadcast %865 : vector<8x1xf32> to vector<8x8xf32>
    %867 = arith.mulf %862, %866 : vector<8x8xf32>
    %868 = vector.extract_strided_slice %808 {offsets = [0, 16], sizes = [8, 8], strides = [1, 1]} : vector<8x32xf32> to vector<8x8xf32>
    %cst_333 = arith.constant dense<0.000000e+00> : vector<8x8xf32>
    %869 = tpu.matmul %867, %868, %cst_333 {dimension_numbers = #tpu.dot_dimension_numbers<[1], [0], [0], [1], [0, 0, 1, 1], [], []>} : vector<8x8xf32>, vector<8x8xf32>, vector<8x8xf32> -> vector<8x8xf32>
    %870 = vector.extract_strided_slice %806 {offsets = [0, 24], sizes = [8, 8], strides = [1, 1]} : vector<8x32xf32> to vector<8x8xf32>
    %871 = vector.extract_strided_slice %807 {offsets = [0, 24], sizes = [8, 8], strides = [1, 1]} : vector<8x32xf32> to vector<8x8xf32>
    %cst_334 = arith.constant dense<0.000000e+00> : vector<8x8xf32>
    %872 = tpu.matmul %870, %871, %cst_334 {dimension_numbers = #tpu.dot_dimension_numbers<[1], [1], [0], [0], [0, 0, 1, 0], [], []>} : vector<8x8xf32>, vector<8x8xf32>, vector<8x8xf32> -> vector<8x8xf32>
    %cst_335 = arith.constant 0.353553385 : f32
    %873 = vector.broadcast %cst_335 : f32 to vector<8x8xf32>
    %874 = arith.mulf %872, %873 : vector<8x8xf32>
    %cst_336 = arith.constant -1.000000e+04 : f32
    %875 = vector.broadcast %cst_336 : f32 to vector<8x8xf32>
    %876 = arith.select %812, %874, %875 : vector<8x8xi1>, vector<8x8xf32>
    %cst_337 = arith.constant dense<0xFF800000> : vector<8xf32>
    %877 = vector.multi_reduction <maximumf>, %876, %cst_337 [1] : vector<8x8xf32> to vector<8xf32>
    %878 = vector.shape_cast %877 : vector<8xf32> to vector<8x1xf32>
    %879 = vector.broadcast %878 : vector<8x1xf32> to vector<8x8xf32>
    %880 = arith.subf %876, %879 : vector<8x8xf32>
    %881 = math.exp %880 : vector<8x8xf32>
    %cst_338 = arith.constant dense<0.000000e+00> : vector<8xf32>
    %882 = vector.multi_reduction <add>, %881, %cst_338 [1] : vector<8x8xf32> to vector<8xf32>
    %883 = vector.shape_cast %882 : vector<8xf32> to vector<8x1xf32>
    %884 = tpu.reciprocal %883 {approx = true} : vector<8x1xf32> -> vector<8x1xf32>
    %885 = vector.broadcast %884 : vector<8x1xf32> to vector<8x8xf32>
    %886 = arith.mulf %881, %885 : vector<8x8xf32>
    %887 = vector.extract_strided_slice %808 {offsets = [0, 24], sizes = [8, 8], strides = [1, 1]} : vector<8x32xf32> to vector<8x8xf32>
    %cst_339 = arith.constant dense<0.000000e+00> : vector<8x8xf32>
    %888 = tpu.matmul %886, %887, %cst_339 {dimension_numbers = #tpu.dot_dimension_numbers<[1], [0], [0], [1], [0, 0, 1, 1], [], []>} : vector<8x8xf32>, vector<8x8xf32>, vector<8x8xf32> -> vector<8x8xf32>
    %889 = tpu.concatenate %831, %850, %869, %888 in 1 : vector<8x8xf32>, vector<8x8xf32>, vector<8x8xf32>, vector<8x8xf32> -> vector<8x32xf32>
    %890 = tpu.concatenate %805, %889 in 0 : vector<8x32xf32>, vector<8x32xf32> -> vector<16x32xf32>
    %cst_340 = arith.constant dense<0.000000e+00> : vector<16x32xf32>
    %891 = tpu.matmul %890, %719, %cst_340 {dimension_numbers = #tpu.dot_dimension_numbers<[1], [0], [0], [1], [0, 0, 1, 1], [], []>} : vector<16x32xf32>, vector<32x32xf32>, vector<16x32xf32> -> vector<16x32xf32>
    %892 = vector.broadcast %721 : vector<1x32xf32> to vector<16x32xf32>
    %893 = arith.addf %891, %892 : vector<16x32xf32>
    %894 = arith.addf %893, %701 : vector<16x32xf32>
    %c1_341 = arith.constant 1 : index
    %c0_342 = arith.constant 0 : index
    %c0_343 = arith.constant 0 : index
    %895 = vector.load %arg22[%c1_341, %c0_342, %c0_343] : memref<2x1x32xf32, #tpu.memory_space<vmem>>, vector<1x1x32xf32>
    %896 = vector.shape_cast %895 : vector<1x1x32xf32> to vector<1x32xf32>
    %c1_344 = arith.constant 1 : index
    %c0_345 = arith.constant 0 : index
    %c0_346 = arith.constant 0 : index
    %897 = vector.load %arg23[%c1_344, %c0_345, %c0_346] : memref<2x1x32xf32, #tpu.memory_space<vmem>>, vector<1x1x32xf32>
    %898 = vector.shape_cast %897 : vector<1x1x32xf32> to vector<1x32xf32>
    %cst_347 = arith.constant dense<0.000000e+00> : vector<16xf32>
    %899 = vector.multi_reduction <add>, %894, %cst_347 [1] : vector<16x32xf32> to vector<16xf32>
    %900 = vector.shape_cast %899 : vector<16xf32> to vector<16x1xf32>
    %cst_348 = arith.constant 3.200000e+01 : f32
    %901 = vector.broadcast %cst_348 : f32 to vector<16x1xf32>
    %902 = arith.divf %900, %901 : vector<16x1xf32>
    %903 = vector.broadcast %902 : vector<16x1xf32> to vector<16x32xf32>
    %904 = arith.subf %894, %903 : vector<16x32xf32>
    %905 = arith.mulf %904, %904 : vector<16x32xf32>
    %cst_349 = arith.constant dense<0.000000e+00> : vector<16xf32>
    %906 = vector.multi_reduction <add>, %905, %cst_349 [1] : vector<16x32xf32> to vector<16xf32>
    %907 = vector.shape_cast %906 : vector<16xf32> to vector<16x1xf32>
    %cst_350 = arith.constant 3.200000e+01 : f32
    %908 = vector.broadcast %cst_350 : f32 to vector<16x1xf32>
    %909 = arith.divf %907, %908 : vector<16x1xf32>
    %910 = vector.broadcast %902 : vector<16x1xf32> to vector<16x32xf32>
    %911 = arith.subf %894, %910 : vector<16x32xf32>
    %cst_351 = arith.constant 9.99999996E-13 : f32
    %912 = vector.broadcast %cst_351 : f32 to vector<16x1xf32>
    %913 = arith.addf %909, %912 : vector<16x1xf32>
    %914 = math.rsqrt %913 : vector<16x1xf32>
    %915 = vector.broadcast %914 : vector<16x1xf32> to vector<16x32xf32>
    %916 = arith.mulf %911, %915 : vector<16x32xf32>
    %917 = vector.broadcast %896 : vector<1x32xf32> to vector<16x32xf32>
    %918 = arith.mulf %916, %917 : vector<16x32xf32>
    %919 = vector.broadcast %898 : vector<1x32xf32> to vector<16x32xf32>
    %920 = arith.addf %918, %919 : vector<16x32xf32>
    %c1_352 = arith.constant 1 : index
    %c0_353 = arith.constant 0 : index
    %c0_354 = arith.constant 0 : index
    %921 = vector.load %arg16[%c1_352, %c0_353, %c0_354] : memref<2x32x64xf32, #tpu.memory_space<vmem>>, vector<1x32x64xf32>
    %922 = vector.shape_cast %921 : vector<1x32x64xf32> to vector<32x64xf32>
    %cst_355 = arith.constant dense<0.000000e+00> : vector<16x64xf32>
    %923 = tpu.matmul %920, %922, %cst_355 {dimension_numbers = #tpu.dot_dimension_numbers<[1], [0], [0], [1], [0, 0, 1, 1], [], []>} : vector<16x32xf32>, vector<32x64xf32>, vector<16x64xf32> -> vector<16x64xf32>
    %c1_356 = arith.constant 1 : index
    %c0_357 = arith.constant 0 : index
    %c0_358 = arith.constant 0 : index
    %924 = vector.load %arg17[%c1_356, %c0_357, %c0_358] : memref<2x1x64xf32, #tpu.memory_space<vmem>>, vector<1x1x64xf32>
    %925 = vector.shape_cast %924 : vector<1x1x64xf32> to vector<1x64xf32>
    %926 = vector.broadcast %925 : vector<1x64xf32> to vector<16x64xf32>
    %927 = arith.addf %923, %926 : vector<16x64xf32>
    %cst_359 = arith.constant 0.000000e+00 : f32
    %928 = vector.broadcast %cst_359 : f32 to vector<16x64xf32>
    %929 = arith.maximumf %927, %928 : vector<16x64xf32>
    %c1_360 = arith.constant 1 : index
    %c0_361 = arith.constant 0 : index
    %c0_362 = arith.constant 0 : index
    %930 = vector.load %arg18[%c1_360, %c0_361, %c0_362] : memref<2x64x32xf32, #tpu.memory_space<vmem>>, vector<1x64x32xf32>
    %931 = vector.shape_cast %930 : vector<1x64x32xf32> to vector<64x32xf32>
    %cst_363 = arith.constant dense<0.000000e+00> : vector<16x32xf32>
    %932 = tpu.matmul %929, %931, %cst_363 {dimension_numbers = #tpu.dot_dimension_numbers<[1], [0], [0], [1], [0, 0, 1, 1], [], []>} : vector<16x64xf32>, vector<64x32xf32>, vector<16x32xf32> -> vector<16x32xf32>
    %c1_364 = arith.constant 1 : index
    %c0_365 = arith.constant 0 : index
    %c0_366 = arith.constant 0 : index
    %933 = vector.load %arg19[%c1_364, %c0_365, %c0_366] : memref<2x1x32xf32, #tpu.memory_space<vmem>>, vector<1x1x32xf32>
    %934 = vector.shape_cast %933 : vector<1x1x32xf32> to vector<1x32xf32>
    %935 = vector.broadcast %934 : vector<1x32xf32> to vector<16x32xf32>
    %936 = arith.addf %932, %935 : vector<16x32xf32>
    %937 = arith.addf %936, %920 : vector<16x32xf32>
    %c1_367 = arith.constant 1 : index
    %c0_368 = arith.constant 0 : index
    %c0_369 = arith.constant 0 : index
    %938 = vector.load %arg24[%c1_367, %c0_368, %c0_369] : memref<2x1x32xf32, #tpu.memory_space<vmem>>, vector<1x1x32xf32>
    %939 = vector.shape_cast %938 : vector<1x1x32xf32> to vector<1x32xf32>
    %c1_370 = arith.constant 1 : index
    %c0_371 = arith.constant 0 : index
    %c0_372 = arith.constant 0 : index
    %940 = vector.load %arg25[%c1_370, %c0_371, %c0_372] : memref<2x1x32xf32, #tpu.memory_space<vmem>>, vector<1x1x32xf32>
    %941 = vector.shape_cast %940 : vector<1x1x32xf32> to vector<1x32xf32>
    %cst_373 = arith.constant dense<0.000000e+00> : vector<16xf32>
    %942 = vector.multi_reduction <add>, %937, %cst_373 [1] : vector<16x32xf32> to vector<16xf32>
    %943 = vector.shape_cast %942 : vector<16xf32> to vector<16x1xf32>
    %cst_374 = arith.constant 3.200000e+01 : f32
    %944 = vector.broadcast %cst_374 : f32 to vector<16x1xf32>
    %945 = arith.divf %943, %944 : vector<16x1xf32>
    %946 = vector.broadcast %945 : vector<16x1xf32> to vector<16x32xf32>
    %947 = arith.subf %937, %946 : vector<16x32xf32>
    %948 = arith.mulf %947, %947 : vector<16x32xf32>
    %cst_375 = arith.constant dense<0.000000e+00> : vector<16xf32>
    %949 = vector.multi_reduction <add>, %948, %cst_375 [1] : vector<16x32xf32> to vector<16xf32>
    %950 = vector.shape_cast %949 : vector<16xf32> to vector<16x1xf32>
    %cst_376 = arith.constant 3.200000e+01 : f32
    %951 = vector.broadcast %cst_376 : f32 to vector<16x1xf32>
    %952 = arith.divf %950, %951 : vector<16x1xf32>
    %953 = vector.broadcast %945 : vector<16x1xf32> to vector<16x32xf32>
    %954 = arith.subf %937, %953 : vector<16x32xf32>
    %cst_377 = arith.constant 9.99999996E-13 : f32
    %955 = vector.broadcast %cst_377 : f32 to vector<16x1xf32>
    %956 = arith.addf %952, %955 : vector<16x1xf32>
    %957 = math.rsqrt %956 : vector<16x1xf32>
    %958 = vector.broadcast %957 : vector<16x1xf32> to vector<16x32xf32>
    %959 = arith.mulf %954, %958 : vector<16x32xf32>
    %960 = vector.broadcast %939 : vector<1x32xf32> to vector<16x32xf32>
    %961 = arith.mulf %959, %960 : vector<16x32xf32>
    %962 = vector.broadcast %941 : vector<1x32xf32> to vector<16x32xf32>
    %963 = arith.addf %961, %962 : vector<16x32xf32>
    %c0_378 = arith.constant 0 : index
    %c0_379 = arith.constant 0 : index
    %964 = vector.load %arg26[%c0_378, %c0_379] : memref<32x128xf32, #tpu.memory_space<vmem>>, vector<32x128xf32>
    %cst_380 = arith.constant dense<0.000000e+00> : vector<16x128xf32>
    %965 = tpu.matmul %963, %964, %cst_380 {dimension_numbers = #tpu.dot_dimension_numbers<[1], [0], [0], [1], [0, 0, 1, 1], [], []>} : vector<16x32xf32>, vector<32x128xf32>, vector<16x128xf32> -> vector<16x128xf32>
    %c0_381 = arith.constant 0 : index
    %c0_382 = arith.constant 0 : index
    %966 = vector.load %arg27[%c0_381, %c0_382] : memref<1x128xf32, #tpu.memory_space<vmem>>, vector<1x128xf32>
    %967 = vector.broadcast %966 : vector<1x128xf32> to vector<16x128xf32>
    %968 = arith.addf %965, %967 : vector<16x128xf32>
    %c0_383 = arith.constant 0 : index
    %c0_384 = arith.constant 0 : index
    %969 = vector.load %arg28[%c0_383, %c0_384] : memref<16x128xf32, #tpu.memory_space<vmem>>, vector<16x128xf32>
    tpu.vector_store %arg28[%c0_383, %c0_384], %968 {strides = array<i32>} : memref<16x128xf32, #tpu.memory_space<vmem>>, vector<16x128xf32>,
    return
  }
}

</mosaic_0001>

<bundles_post_ra>
// kernel: tpu_custom_call.1
= control target key start
LH: loop header
LB: loop body
LE: loop exit
PB: predicated region body
PF: predicated region fallthrough
CT: control target
= control target key end

     0   :  { %s10385_s0 = inlined_call_operand.vmem [shape: s32[16,1], index: 0, kind: input, shape index: {}]   ;;  %s10386_s1 = inlined_call_operand.hbm [shape: f32[16,32], index: 1, kind: input, shape index: {}]   ;;  %s10387_s2 = inlined_call_operand.hbm [shape: f32[2,8,8], index: 2, kind: input, shape index: {}]   ;;  %s10388_s3 = inlined_call_operand.hbm [shape: f32[2,8,8], index: 3, kind: input, shape index: {}]   ;;  %s10389_s4 = inlined_call_operand.vmem [shape: f32[128,32], index: 4, kind: input, shape index: {}]   ;;  %s10390_s5 = inlined_call_operand.hbm [shape: f32[8,32], index: 5, kind: input, shape index: {}]   ;;  %s10391_s6 = inlined_call_operand.vmem [shape: f32[2,32,96], index: 6, kind: input, shape index: {}]   ;;  %s10392_s7 = inlined_call_operand.vmem [shape: f32[2,1,96], index: 7, kind: input, shape index: {}]   ;;  %s10393_s8 = inlined_call_operand.vmem [shape: f32[2,32,32], index: 8, kind: input, shape index: {}]   ;;  %s10394_s9 = inlined_call_operand.vmem [shape: f32[2,1,32], index: 9, kind: input, shape index: {}]   ;;  %s10395_s10 = inlined_call_operand.vmem [shape: f32[2,32,32], index: 10, kind: input, shape index: {}]   ;;  %s10396_s11 = inlined_call_operand.vmem [shape: f32[2,1,32], index: 11, kind: input, shape index: {}]   ;;  %s10397_s12 = inlined_call_operand.vmem [shape: f32[2,32,64], index: 12, kind: input, shape index: {}]   ;;  %s10398_s13 = inlined_call_operand.hbm [shape: f32[2,1,64], index: 13, kind: input, shape index: {}]   ;;  %s10399_s14 = inlined_call_operand.vmem [shape: f32[2,32,32], index: 14, kind: input, shape index: {}]   ;;  %s10400_s15 = inlined_call_operand.hbm [shape: f32[2,1,32], index: 15, kind: input, shape index: {}]   ;;  %s10401_s16 = inlined_call_operand.hbm [shape: f32[2,32,64], index: 16, kind: input, shape index: {}]   ;;  %s10402_s17 = inlined_call_operand.vmem [shape: f32[2,1,64], index: 17, kind: input, shape index: {}]   ;;  %s10403_s18 = inlined_call_operand.vmem [shape: f32[2,64,32], index: 18, kind: input, shape index: {}]   ;;  %s10404_s19 = inlined_call_operand.vmem [shape: f32[2,1,32], index: 19, kind: input, shape index: {}]   ;;  %s10405_s20 = inlined_call_operand.vmem [shape: f32[2,1,32], index: 20, kind: input, shape index: {}]   ;;  %s10406_s21 = inlined_call_operand.vmem [shape: f32[2,1,32], index: 21, kind: input, shape index: {}]   ;;  %s10407_s22 = inlined_call_operand.vmem [shape: f32[2,1,32], index: 22, kind: input, shape index: {}]   ;;  %s10408_s23 = inlined_call_operand.vmem [shape: f32[2,1,32], index: 23, kind: input, shape index: {}]   ;;  %s10409_s24 = inlined_call_operand.vmem [shape: f32[2,1,32], index: 24, kind: input, shape index: {}]   ;;  %s10410_s25 = inlined_call_operand.vmem [shape: f32[2,1,32], index: 25, kind: input, shape index: {}]   ;;  %s10411_s26 = inlined_call_operand.vmem [shape: f32[32,128], index: 26, kind: input, shape index: {}]   ;;  %s10412_s27 = inlined_call_operand.vmem [shape: f32[1,128], index: 27, kind: input, shape index: {}]   ;;  %s10413_s28 = inlined_call_operand.hbm [shape: f32[16,128], index: 28, kind: output, shape index: {}]  }
   0x1   :  { %10463 = sst [smem:[#allocation20_spill]] %s10385_s0 }
   0x2   :  { %10464 = sst [smem:[#allocation21_spill]] %s10386_s1 }
   0x3   :  { %10465 = sst [smem:[#allocation22_spill]] %s10387_s2 }
   0x4   :  { %10466 = sst [smem:[#allocation23_spill]] %s10388_s3 }
   0x5   :  { %10467 = sst [smem:[#allocation24_spill]] %s10389_s4 }
   0x6   :  { %10468 = sst [smem:[#allocation25_spill]] %s10390_s5 }
   0x7   :  { %10469 = sst [smem:[#allocation26_spill]] %s10391_s6 }
   0x8   :  { %10470 = sst [smem:[#allocation27_spill]] %s10392_s7 }
   0x9   :  { %10471 = sst [smem:[#allocation28_spill]] %s10393_s8 }
   0xa   :  { %10472 = sst [smem:[#allocation29_spill]] %s10394_s9 }
   0xb   :  { %10473 = sst [smem:[#allocation30_spill]] %s10395_s10 }
   0xc   :  { %10474 = sst [smem:[#allocation31_spill]] %s10396_s11 }
   0xd   :  { %10475 = sst [smem:[#allocation32_spill]] %s10397_s12 }
   0xe   :  { %10476 = sst [smem:[#allocation33_spill]] %s10399_s14 }
   0xf   :  { %10477 = sst [smem:[#allocation34_spill]] %s10411_s26 }
  0x10   :  { %10478 = sst [smem:[#allocation35_spill]] %s10412_s27 }
  0x11   :  { %10479 = sst [smem:[#allocation36_spill]] %s10413_s28 }
  0x12   :  { %33 = vsyncpa [#allocation3], 0 }
  0x13   :  { %34 = vsyncpa [#allocation6], 0 }
  0x14   :  { %35 = vsyncpa [#allocation9], 0 }
  0x15   :  { %36 = vsyncpa [#allocation12], 0 }
  0x16   :  { %37 = vsyncpa [#allocation4], 0  ;;  %s8976_s8 = smov [#allocation5]   ;;  %s8977_s9 = smov [#allocation8]  }
  0x17   :  { %s57_s5 = sshll.u32 %s8976_s8, 4  ;;  %s84_s30 = sshll.u32 %s8977_s9, 4  ;;  %s58_s5 = int_to_ptr.vmem [resolvable:$true] %s57_s5  ;;  %s85_s30 = int_to_ptr.vmem [resolvable:$true] %s84_s30 }
  0x18   :  { %s10480_s10 = sld [smem:[#allocation22_spill]] }
  0x1e   :  { %s8790_s0 = scalar_lea.hbm %s10480_s10, 256 }
  0x1f   :  { %p8791_p0 = scmp.ne.s32.totalorder %s10480_s10, %s8790_s0  ;;  %p8794_p1 = scmp.lt.u32.totalorder %s8790_s0, %s10480_s10 }
  0x21   :  { %p8796_p2 = pnand %p8794_p1, %p8791_p0 }
  0x23   :  { %8799 = shalt.err (!%p8796_p2)
}
  0x24   :  { %s8800_s12 = scalar_lea.vmem %s58_s5, 256  ;;  %p8805_p4 = scmp.lt.s32.totalorder %s58_s5, %s58_s5 }
  0x25   :  { %p8801_p3 = scmp.ne.s32.totalorder %s58_s5, %s8800_s12  ;;  %p8806_p5 = scmp.lt.s32.totalorder %s8800_s12, %s8800_s12 }
  0x27   :  { %p8807_p6 = por %p8806_p5, %p8805_p4 }
  0x29   :  { %p8808_p7 = pnand %p8807_p6, %p8801_p3 }
  0x2b   :  { %8811 = shalt.err (!%p8808_p7)
}
  0x2c   :  { %s10428_s1 = smov 128   ;;  %s10447_s4 = smov 8  }
  0x2d   :  { %63 = dma.hbm_to_vmem [thread:$0]  %s10480_s10, 256, %s58_s5, [#allocation6], %s10428_s1, %s10428_s1, %s10447_s4  }
  0x2e   :  { %s10481_s0 = sld [smem:[#allocation25_spill]] }
  0x34   :  { %s8812_s11 = scalar_lea.hbm %s10481_s0, 128 }
  0x35   :  { %p8813_p8 = scmp.ne.s32.totalorder %s10481_s0, %s8812_s11  ;;  %p8816_p9 = scmp.lt.u32.totalorder %s8812_s11, %s10481_s0 }
  0x37   :  { %p8818_p10 = pnand %p8816_p9, %p8813_p8 }
  0x39   :  { %8821 = shalt.err (!%p8818_p10)
}
  0x3a   :  { %s8822_s28 = scalar_lea.vmem %s85_s30, 128  ;;  %p8827_p12 = scmp.lt.s32.totalorder %s85_s30, %s85_s30 }
  0x3b   :  { %p8823_p11 = scmp.ne.s32.totalorder %s85_s30, %s8822_s28  ;;  %p8828_p13 = scmp.lt.s32.totalorder %s8822_s28, %s8822_s28 }
  0x3d   :  { %p8829_p0 = por %p8828_p13, %p8827_p12 }
  0x3f   :  { %p8830_p1 = pnand %p8829_p0, %p8823_p11 }
  0x41   :  { %8833 = shalt.err (!%p8830_p1)
}
  0x42   :  { %87 = dma.hbm_to_vmem [thread:$0]  %s10481_s0, 128, %s85_s30, [#allocation9]  }
  0x43   :  { %s8980_s8 = smov [#allocation11]   ;;  %s8981_s3 = smov [#allocation2]  }
  0x44   :  { %s121_s9 = sshll.u32 %s8980_s8, 4  ;;  %s45_s6 = sshll.u32 %s8981_s3, 4  ;;  %s122_s9 = int_to_ptr.vmem [resolvable:$true] %s121_s9  ;;  %s9176_s6 = int_to_ptr.vmem [resolvable:$true] %s45_s6 }
  0x45   :  { %s8834_s2 = scalar_lea.hbm %s10400_s15, 32 }
  0x46   :  { %p8835_p2 = scmp.ne.s32.totalorder %s10400_s15, %s8834_s2  ;;  %p8838_p3 = scmp.lt.u32.totalorder %s8834_s2, %s10400_s15 }
  0x48   :  { %p8840_p4 = pnand %p8838_p3, %p8835_p2 }
  0x4a   :  { %8843 = shalt.err (!%p8840_p4)
}
  0x4b   :  { %s8844_s30 = scalar_lea.vmem %s122_s9, 32  ;;  %p8849_p6 = scmp.lt.s32.totalorder %s122_s9, %s122_s9 }
  0x4c   :  { %p8845_p5 = scmp.ne.s32.totalorder %s122_s9, %s8844_s30  ;;  %p8850_p7 = scmp.lt.s32.totalorder %s8844_s30, %s8844_s30 }
  0x4e   :  { %p8851_p8 = por %p8850_p7, %p8849_p6 }
  0x50   :  { %p8852_p9 = pnand %p8851_p8, %p8845_p5 }
  0x52   :  { %8855 = shalt.err (!%p8852_p9)
}
  0x53   :  { %s10430_s0 = smov 16   ;;  %s10432_s5 = smov 1  }
  0x54   :  { %127 = dma.hbm_to_vmem [thread:$0]  %s10400_s15, 32, %s122_s9, [#allocation12], %s10430_s0, %s10430_s0, %s10432_s5  }
  0x55   :  { %s10482_s11 = sld [smem:[#allocation21_spill]] }
  0x5b   :  { %s8856_s29 = scalar_lea.hbm %s10482_s11, 256 }
  0x5c   :  { %p8857_p10 = scmp.ne.s32.totalorder %s10482_s11, %s8856_s29  ;;  %p8860_p11 = scmp.lt.u32.totalorder %s8856_s29, %s10482_s11 }
  0x5e   :  { %p8862_p12 = pnand %p8860_p11, %p8857_p10 }
  0x60   :  { %8865 = shalt.err (!%p8862_p12)
}
  0x61   :  { %s8866_s30 = scalar_lea.vmem %s9176_s6, 256  ;;  %p8871_p0 = scmp.lt.s32.totalorder %s9176_s6, %s9176_s6 }
  0x62   :  { %p8867_p13 = scmp.ne.s32.totalorder %s9176_s6, %s8866_s30  ;;  %p8872_p1 = scmp.lt.s32.totalorder %s8866_s30, %s8866_s30 }
  0x64   :  { %p8873_p2 = por %p8872_p1, %p8871_p0 }
  0x66   :  { %p8874_p3 = pnand %p8873_p2, %p8867_p13 }
  0x68   :  { %8877 = shalt.err (!%p8874_p3)
}
  0x69   :  { %s10483_s15 = smov 128   ;;  %s8984_s8 = smov [#allocation7]  }
  0x6a   :  { %51 = dma.hbm_to_vmem [thread:$0]  %s10482_s11, 256, %s9176_s6, [#allocation3], %s10483_s15, %s10483_s15, %s10447_s4  }
  0x6b   :  { %s69_s1 = sshll.u32 %s8984_s8, 4  ;;  %s8985_s3 = smov [#allocation10]   ;;  %s70_s1 = int_to_ptr.vmem [resolvable:$true] %s69_s1 }
  0x6c   :  { %s107_s29 = sshll.u32 %s8985_s3, 4  ;;  %s10484_s28 = sld [smem:[#allocation23_spill]]  ;;  %s9213_s29 = int_to_ptr.vmem [resolvable:$true] %s107_s29 }
  0x72   :  { %s8878_s12 = scalar_lea.hbm %s10484_s28, 256 }
  0x73   :  { %p8879_p4 = scmp.ne.s32.totalorder %s10484_s28, %s8878_s12  ;;  %p8882_p5 = scmp.lt.u32.totalorder %s8878_s12, %s10484_s28 }
  0x75   :  { %p8884_p6 = pnand %p8882_p5, %p8879_p4 }
  0x77   :  { %8887 = shalt.err (!%p8884_p6)
}
  0x78   :  { %s8888_s6 = scalar_lea.vmem %s70_s1, 256  ;;  %p8893_p8 = scmp.lt.s32.totalorder %s70_s1, %s70_s1 }
  0x79   :  { %p8889_p7 = scmp.ne.s32.totalorder %s70_s1, %s8888_s6  ;;  %p8894_p9 = scmp.lt.s32.totalorder %s8888_s6, %s8888_s6 }
  0x7b   :  { %p8895_p10 = por %p8894_p9, %p8893_p8 }
  0x7d   :  { %p8896_p11 = pnand %p8895_p10, %p8889_p7 }
  0x7f   :  { %8899 = shalt.err (!%p8896_p11)
}
  0x80   :  { %75 = dma.hbm_to_vmem [thread:$0]  %s10484_s28, 256, %s70_s1, [#allocation6], %s10483_s15, %s10483_s15, %s10447_s4  }
  0x81   :  { %s8900_s27 = scalar_lea.hbm %s10398_s13, 32 }
  0x82   :  { %p8901_p12 = scmp.ne.s32.totalorder %s10398_s13, %s8900_s27  ;;  %p8904_p13 = scmp.lt.u32.totalorder %s8900_s27, %s10398_s13 }
  0x84   :  { %p8906_p0 = pnand %p8904_p13, %p8901_p12 }
  0x86   :  { %8909 = shalt.err (!%p8906_p0)
}
  0x87   :  { %s8910_s7 = scalar_lea.vmem %s9213_s29, 32  ;;  %p8915_p2 = scmp.lt.s32.totalorder %s9213_s29, %s9213_s29 }
  0x88   :  { %p8911_p1 = scmp.ne.s32.totalorder %s9213_s29, %s8910_s7  ;;  %p8916_p3 = scmp.lt.s32.totalorder %s8910_s7, %s8910_s7 }
  0x8a   :  { %p8917_p4 = por %p8916_p3, %p8915_p2 }
  0x8c   :  { %p8918_p5 = pnand %p8917_p4, %p8911_p1 }
  0x8e   :  { %8921 = shalt.err (!%p8918_p5)
}
  0x8f   :  { %s10485_s1 = smov 1   ;;  %s10486_s28 = smov 16  }
  0x90   :  { %113 = dma.hbm_to_vmem [thread:$0]  %s10398_s13, 32, %s9213_s29, [#allocation9], %s10486_s28, %s10486_s28, %s10485_s1  }
  0x91   :  { %s8986_s6 = smov [#allocation13]   ;;  %s8922_s10 = scalar_lea.hbm %s10401_s16, 1024 }
  0x92   :  { %s133_s11 = sshll.u32 %s8986_s6, 4  ;;  %p8923_p6 = scmp.ne.s32.totalorder %s10401_s16, %s8922_s10  ;;  %s134_s11 = int_to_ptr.vmem [resolvable:$true] %s133_s11 }
  0x93   :  { %p8926_p7 = scmp.lt.u32.totalorder %s8922_s10, %s10401_s16 }
  0x95   :  { %p8928_p8 = pnand %p8926_p7, %p8923_p6 }
  0x97   :  { %8931 = shalt.err (!%p8928_p8)
}
  0x98   :  { %s8932_s2 = scalar_lea.vmem %s134_s11, 1024  ;;  %p8937_p10 = scmp.lt.s32.totalorder %s134_s11, %s134_s11 }
  0x99   :  { %p8933_p9 = scmp.ne.s32.totalorder %s134_s11, %s8932_s2  ;;  %p8938_p11 = scmp.lt.s32.totalorder %s8932_s2, %s8932_s2 }
  0x9b   :  { %p8939_p12 = por %p8938_p11, %p8937_p10 }
  0x9d   :  { %p8940_p13 = pnand %p8939_p12, %p8933_p9 }
  0x9f   :  { %8943 = shalt.err (!%p8940_p13)
}
  0xa0   :  { %139 = dma.hbm_to_vmem [thread:$0]  %s10401_s16, 1024, %s134_s11, [#allocation12], %s10483_s15, %s10483_s15, %s10447_s4  }
  0xa1   :  { %8966 = dma.done.wait [#allocation3], 256  }
  0xa2   :  { %8967 = vsyncadd [#allocation3], 4294967040 }
  0xa3   :  { %8968 = dma.done.wait [#allocation6], 512  }
  0xa4   :  { %8969 = vsyncadd [#allocation6], 4294966784 }
  0xa5   :  { %8970 = dma.done.wait [#allocation9], 160  }
  0xa6   :  { %8971 = vsyncadd [#allocation9], 4294967136 }
  0xa7   :  { %8972 = dma.done.wait [#allocation12], 1056  }
  0xa8   :  { %8973 = vsyncadd [#allocation12], 4294966240  ;;  %v8987_v0 = vmov 0   ;;  %s10487_s12 = sld [smem:[#allocation20_spill]]  ;;  %s10488_s9 = sld [smem:[#allocation24_spill]]  ;;  %v185_v30 = vlaneseq  ;;  %v8988_v33 = vmov 1.0  }
  0xa9   :  { %8635 = vset.pattern.permute.xlu0 %v8987_v0  ;;  %s10489_s6 = sld [smem:[#allocation26_spill]]  ;;  %v215_v38 = vld [vmem:[#allocation8] sm:$0xff]  ;;  %vm308_vm2 = vcmask 261120   ;;  %v8989_v43 = vmov 0.0   ;;  %vm8990_vm3 = vmmov 0   ;;  %s10490_s7 = sld [smem:[#allocation27_spill]] }
  0xaa   :  { %v186_v31 = vand.u32 127, %v185_v30  ;;  %s10449_s1 = smov 96   ;;  %vm399_vm4 = vcmask 64512   ;;  %v9360_v50 = vld [vmem:[#allocation5] sm:$0xff]  ;;  %s10457_s30 = smov 88   ;;  %vm1077_vm7 = vcmask 130048  }
  0xab   :  { %vm395_vm5 = vcmp.gt.f32.partialorder %v9360_v50, 0.5  ;;  %s10439_s16 = smov 64   ;;  %s10437_s11 = smov 56   ;;  %vm1079_vm8 = vcmask 195584   ;;  %vm3693_vm11 = vcmask 523264  }
  0xac   :  { %s10455_s0 = smov 112   ;;  %s10441_s10 = smov 80  }
  0xad   :  { %s10443_s27 = smov 72   ;;  %s10451_s5 = smov 104  }
  0xae   :  { %v183_v1 = vld [vmem:[%s10487_s12] sm:$0xff]  ;;  %v200_v3 = vld [vmem:[%s10488_s9 + $0x8] sm:$0xff]  ;;  %v201_v4 = vld [vmem:[%s10488_s9 + $0x10] sm:$0xff]  ;;  %s10433_s8 = smov 48   ;;  %s10435_s3 = smov 40  }
  0xaf   :  { %v199_v2 = vld [vmem:[%s10488_s9] sm:$0xff]  ;;  %188 = vperm.xlu0 %8635, %v183_v1   ;;  %v202_v5 = vld [vmem:[%s10488_s9 + $0x18] sm:$0xff]  ;;  %v184_v6 = vld [vmem:[%s10487_s12 + $0x8] sm:$0xff]  ;;  %s10453_s12 = smov 120   ;;  %s10491_s13 = sld [smem:[#allocation28_spill]] }
  0xb0   :  { %v8439_v7 = vpack.c.bf16 %v200_v3, %v199_v2  ;;  %v8443_v8 = vpack.c.bf16 %v202_v5, %v201_v4  ;;  %v203_v9 = vld [vmem:[%s10488_s9 + $0x20] sm:$0xff]  ;;  %v204_v10 = vld [vmem:[%s10488_s9 + $0x28] sm:$0xff]  ;;  %v205_v14 = vld [vmem:[%s10488_s9 + $0x30] sm:$0xff]  ;;  %s10499_s2 = smov 8   ;;  %s10500_s29 = smov 24  }
  0xb1   :  { %v8447_v11 = vpack.c.bf16 %v204_v10, %v203_v9  ;;  %v297_v12 = vld [vmem:[%s10489_s6] sm:$0xff]  ;;  %v298_v13 = vld [vmem:[%s10489_s6 + $0x8] sm:$0xff]  ;;  %v206_v15 = vld [vmem:[%s10488_s9 + $0x38] sm:$0xff]  ;;  %s10504_s26 = smov 104   ;;  %s10506_s15 = smov 56  }
  0xb2   :  { %8440 = vmatprep.subr.bf16.mxu0 %v8439_v7  ;;  %v8471_v16 = vpack.c.bf16 %v298_v13, %v297_v12  ;;  %v8451_v17 = vpack.c.bf16 %v206_v15, %v205_v14  ;;  %v207_v18 = vld [vmem:[%s10488_s9 + $0x40] sm:$0xff]  ;;  %v208_v19 = vld [vmem:[%s10488_s9 + $0x48] sm:$0xff]  ;;  %v209_v21 = vld [vmem:[%s10488_s9 + $0x50] sm:$0xff] }
  0xb3   :  { %191 = vperm.xlu0 %8635, %v184_v6   ;;  %8442 = vmatpush3.bf16.msra.mxu0 %v8439_v7  ;;  %v8455_v20 = vpack.c.bf16 %v208_v19, %v207_v18  ;;  %v210_v22 = vld [vmem:[%s10488_s9 + $0x58] sm:$0xff]  ;;  %v211_v24 = vld [vmem:[%s10488_s9 + $0x60] sm:$0xff]  ;;  %v212_v25 = vld [vmem:[%s10488_s9 + $0x68] sm:$0xff] }
  0xb4   :  { %8444 = vmatprep.subr.bf16.mxu0 %v8443_v8  ;;  %8472 = vmatprep.subr.bf16.mxu1 %v8471_v16  ;;  %v8459_v23 = vpack.c.bf16 %v210_v22, %v209_v21  ;;  %v8463_v26 = vpack.c.bf16 %v212_v25, %v211_v24  ;;  %v213_v27 = vld [vmem:[%s10488_s9 + $0x70] sm:$0xff]  ;;  %v214_v28 = vld [vmem:[%s10488_s9 + $0x78] sm:$0xff]  ;;  %v7467_v44 = vld [vmem:[%s10490_s7] ss:$0 sm:$0xff]  ;;  %s10493_s9 = sld [smem:[#allocation32_spill]] }
  0xb5   :  { %8474 = vmatpush3.bf16.msra.mxu1 %v8471_v16  ;;  %v8467_v29 = vpack.c.bf16 %v214_v28, %v213_v27  ;;  %v299_v35 = vld [vmem:[%s10489_s6 + $0x10] sm:$0xff]  ;;  %v300_v36 = vld [vmem:[%s10489_s6 + $0x18] sm:$0xff] }
  0xb6   :  { %v8475_v37 = vpack.c.bf16 %v300_v36, %v299_v35 }
  0xb7   :  { %8446 = vmatpush3.bf16.msra.mxu0 %v8443_v8 }
  0xb8   :  { %8448 = vmatprep.subr.bf16.mxu0 %v8447_v11  ;;  %8476 = vmatprep.subr.bf16.mxu1 %v8475_v37 }
  0xb9   :  { %8478 = vmatpush3.bf16.msra.mxu1 %v8475_v37 }
  0xba   :  { %7949 = vmatprep.subr.mxu1 %v8989_v43 }
  0xbb   :  { %8450 = vmatpush3.bf16.msra.mxu0 %v8447_v11 }
  0xbc   :  { %8452 = vmatprep.subr.bf16.mxu0 %v8451_v17 }
  0xbf   :  { %8454 = vmatpush3.bf16.msra.mxu0 %v8451_v17 }
  0xc0   :  { %8456 = vmatprep.subr.bf16.mxu0 %v8455_v20 }
  0xc3   :  { %8458 = vmatpush3.bf16.msra.mxu0 %v8455_v20 }
  0xc4   :  { %8460 = vmatprep.subr.bf16.mxu0 %v8459_v23 }
  0xc7   :  { %8462 = vmatpush3.bf16.msra.mxu0 %v8459_v23 }
  0xc8   :  { %8464 = vmatprep.subr.bf16.mxu0 %v8463_v26 }
  0xcb   :  { %8466 = vmatpush3.bf16.msra.mxu0 %v8463_v26 }
  0xcc   :  { %8468 = vmatprep.subr.bf16.mxu0 %v8467_v29 }
  0xcf   :  { %8470 = vmatpush3.bf16.msra.mxu0 %v8467_v29 }
  0xd0   :  { %7989 = vmatprep.subr.mxu0 %v8989_v43 }
 0x12e   :  { %v189_v32 = vpop.permute.xlu0 %188 }
 0x12f   :  { %vm193_vm0 = vcmp.eq.s32.totalorder %v186_v31, %v189_v32 }
 0x130   :  { %7935 = vmatprep.mubr.msk.f32.mxu0 %vm193_vm0, %v8988_v33 }
 0x132   :  { %v192_v34 = vpop.permute.xlu0 %191 }
 0x133   :  { %vm194_vm1 = vcmp.eq.s32.totalorder %v186_v31, %v192_v34 }
 0x134   :  { %7936 = vmatmul.mubr.msk.f32.vlgmr.msra.gmra.mrb[0].mxu0 %vm194_vm1, %v8988_v33 }
 0x135   :  { %7991 = vmatprep.mubr.msk.f32.mxu0 %vm8990_vm3, %v8989_v43 }
 0x207   :  { %v7937_v39 = vpop.f32.mrb[0].mxu0 }
 0x208   :  { %v282_v40 = vpop.f32.mrb[1].mxu0  ;;  %v9333_v42 = vadd.f32 %v7937_v39, %v215_v38 }
 0x209   :  { %v9331_v41 = vadd.f32 %v282_v40, %v215_v38 }
 0x20b   :  { %7946 = vmatprep.mubr.msk.f32.mxu1 %vm308_vm2, %v9331_v41 }
 0x20c   :  { %7947 = vmatmul.mubr.msk.f32.vlgmr.msra.gmra.mrb[0].mxu1 %vm308_vm2, %v9333_v42 }
 0x20d   :  { %7951 = vmatprep.mubr.msk.f32.mxu1 %vm8990_vm3, %v8989_v43 }
 0x2df   :  { %v7948_v45 = vpop.f32.mrb[0].mxu1 }
 0x2e0   :  { %v9348_v46 = vadd.f32 %v7948_v45, %v7467_v44  ;;  %v381_v47 = vpop.f32.mrb[1].mxu1 }
 0x2e1   :  { %v9350_v48 = vadd.f32 %v7467_v44, %v381_v47 }
 0x2e3   :  { %397 = vrot.lane.b32.xlu1 %v9350_v48, %s10449_s1 }
 0x355   :  { %v398_v49 = vpop.permute.xlu1 %397 }
 0x356   :  { %7950 = vmatpush3.xpose.msk.msra.mxu1 %vm399_vm4, %v398_v49 }
 0x357   :  { %7954 = vmatprep.subr.mxu1 %v8989_v43 }
 0x359   :  { %7952 = vmatmul.mubr.msk.f32.vlgmr.msra.gmra.mrb[2].mxu1 %vm399_vm4, %v9350_v48 }
 0x35a   :  { %7956 = vmatprep.mubr.msk.f32.mxu1 %vm8990_vm3, %v8989_v43 }
 0x42c   :  { %v470_v51 = vpop.f32.mrb[2].mxu1 }
 0x42d   :  { %v474_v52 = vmul.f32 0.35355338, %v470_v51  ;;  %v7953_v53 = vpop.f32.mrb[3].mxu1 }
 0x42f   :  { %v475_v54 = vsel %vm395_vm5, %v474_v52, -10000.0  ;;  %v9456_v52 = vld [vmem:[#allocation5 + $0x8] sm:$0xff] }
 0x430   :  { %v476_v55 = vsel %vm399_vm4, %v475_v54, -inf  ;;  %vm1081_vm6 = vcmp.gt.f32.partialorder %v9456_v52, 0.5 }
 0x431   :  { %477 = vmax.xlane.f32.xlu1 %v476_v55 }
 0x442   :  { %565 = vrot.lane.b32.xlu1 %v9350_v48, %s10457_s30 }
 0x446   :  { %563 = vrot.lane.b32.xlu1 %v9350_v48, %s10453_s12 }
 0x4be   :  { %v478_v56 = vpop.xlane.xlu1 %477 }
 0x4bf   :  { %v479_v57 = vsub.f32 %v475_v54, %v478_v56 }
 0x4c1   :  { %v480_v58 = vmul.f32 1.442695, %v479_v57 }
 0x4c2   :  { %v566_v0 = vpop.permute.xlu1 %565 }
 0x4c3   :  { %8636 = vpow2.f32 %v480_v58 }
 0x4c6   :  { %v564_v2 = vpop.permute.xlu1 %563 }
 0x4cd   :  { %v8637_v59 = vpop.eup %8636 }
 0x4ce   :  { %v482_v60 = vsel %vm399_vm4, %v8637_v59, 0.0 }
 0x4cf   :  { %483 = vadd.xlane.f32.xlu0 %v482_v60 }
 0x4e5   :  { %487 = vrot.lane.b32.xlu0 %v9350_v48, %s10439_s16 }
 0x55c   :  { %v484_v61 = vpop.xlane.xlu0 %483 }
 0x55d   :  { %8638 = vrcp.f32 %v484_v61 }
 0x560   :  { %v488_v62 = vpop.permute.xlu0 %487 }
 0x561   :  { %7955 = vmatpush3.msra.mxu1 %v488_v62 }
 0x562   :  { %7959 = vmatprep.subr.mxu1 %v8989_v43 }
 0x567   :  { %v8639_v63 = vpop.eup %8638 }
 0x568   :  { %v486_v1 = vmul.f32 %v8639_v63, %v8637_v59 }
 0x56a   :  { %7957 = vmatmul.mubr.msk.f32.vlgmr.msra.gmra.mrb[4].mxu1 %vm399_vm4, %v486_v1 }
 0x56b   :  { %7960 = vmatpush3.xpose.msk.msra.mxu1 %vm399_vm4, %v566_v0  ;;  %7961 = vmatprep.mubr.msk.f32.mxu1 %vm8990_vm3, %v8989_v43 }
 0x56c   :  { %7964 = vmatprep.subr.mxu1 %v8989_v43 }
 0x56e   :  { %7962 = vmatmul.mubr.msk.f32.vlgmr.msra.gmra.mrb[6].mxu1 %vm399_vm4, %v564_v2 }
 0x56f   :  { %7966 = vmatprep.mubr.msk.f32.mxu1 %vm8990_vm3, %v8989_v43 }
 0x63d   :  { %v9382_v3 = vpop.f32.mrb[4].mxu1 }
 0x63e   :  { %v7958_v4 = vpop.f32.mrb[5].mxu1 }
 0x641   :  { %v637_v5 = vpop.f32.mrb[6].mxu1 }
 0x642   :  { %v641_v6 = vmul.f32 0.35355338, %v637_v5  ;;  %v7963_v7 = vpop.f32.mrb[7].mxu1 }
 0x644   :  { %v642_v8 = vsel %vm395_vm5, %v641_v6, -10000.0 }
 0x645   :  { %v643_v9 = vsel %vm399_vm4, %v642_v8, -inf }
 0x646   :  { %644 = vmax.xlane.f32.xlu0 %v643_v9 }
 0x65c   :  { %654 = vrot.lane.b32.xlu0 %v9350_v48, %s10437_s11 }
 0x660   :  { %730 = vrot.lane.b32.xlu0 %v9350_v48, %s10455_s0 }
 0x6d3   :  { %v645_v10 = vpop.xlane.xlu0 %644 }
 0x6d4   :  { %v646_v11 = vsub.f32 %v642_v8, %v645_v10 }
 0x6d6   :  { %v647_v12 = vmul.f32 1.442695, %v646_v11 }
 0x6d7   :  { %v655_v13 = vpop.permute.xlu0 %654 }
 0x6d8   :  { %8640 = vpow2.f32 %v647_v12  ;;  %7965 = vmatpush3.msra.mxu1 %v655_v13 }
 0x6d9   :  { %7969 = vmatprep.subr.mxu1 %v8989_v43 }
 0x6db   :  { %v731_v20 = vpop.permute.xlu0 %730 }
 0x6e2   :  { %v8641_v14 = vpop.eup %8640 }
 0x6e3   :  { %v649_v15 = vsel %vm399_vm4, %v8641_v14, 0.0 }
 0x6e4   :  { %650 = vadd.xlane.f32.xlu1 %v649_v15 }
 0x6f5   :  { %732 = vrot.lane.b32.xlu1 %v9350_v48, %s10441_s10 }
 0x771   :  { %v651_v16 = vpop.xlane.xlu1 %650 }
 0x772   :  { %8642 = vrcp.f32 %v651_v16 }
 0x775   :  { %v733_v19 = vpop.permute.xlu1 %732 }
 0x77c   :  { %v8643_v17 = vpop.eup %8642 }
 0x77d   :  { %v653_v18 = vmul.f32 %v8643_v17, %v8641_v14 }
 0x77f   :  { %7967 = vmatmul.mubr.msk.f32.vlgmr.msra.gmra.mrb[8].mxu1 %vm399_vm4, %v653_v18 }
 0x780   :  { %7970 = vmatpush3.xpose.msk.msra.mxu1 %vm399_vm4, %v733_v19  ;;  %7971 = vmatprep.mubr.msk.f32.mxu1 %vm8990_vm3, %v8989_v43 }
 0x781   :  { %7974 = vmatprep.subr.mxu1 %v8989_v43 }
 0x783   :  { %7972 = vmatmul.mubr.msk.f32.vlgmr.msra.gmra.mrb[10].mxu1 %vm399_vm4, %v731_v20 }
 0x784   :  { %7976 = vmatprep.mubr.msk.f32.mxu1 %vm8990_vm3, %v8989_v43 }
 0x852   :  { %v9403_v21 = vpop.f32.mrb[8].mxu1 }
 0x853   :  { %v7968_v22 = vpop.f32.mrb[9].mxu1 }
 0x856   :  { %v804_v23 = vpop.f32.mrb[10].mxu1 }
 0x857   :  { %v808_v24 = vmul.f32 0.35355338, %v804_v23  ;;  %v7973_v25 = vpop.f32.mrb[11].mxu1 }
 0x859   :  { %v809_v26 = vsel %vm395_vm5, %v808_v24, -10000.0 }
 0x85a   :  { %v810_v27 = vsel %vm399_vm4, %v809_v26, -inf }
 0x85b   :  { %811 = vmax.xlane.f32.xlu1 %v810_v27 }
 0x86c   :  { %899 = vrot.lane.b32.xlu1 %v9350_v48, %s10443_s27 }
 0x870   :  { %897 = vrot.lane.b32.xlu1 %v9350_v48, %s10451_s5 }
 0x874   :  { %1250 = vrot.lane.b32.xlu1 %v9348_v46, %s10457_s30 }
 0x878   :  { %1417 = vrot.lane.b32.xlu1 %v9348_v46, %s10441_s10  ;;  %s10492_s10 = sld [smem:[#allocation29_spill]] }
 0x87c   :  { %1584 = vrot.lane.b32.xlu1 %v9348_v46, %s10443_s27  ;;  %s10445_s27 = smov 24  }
 0x8e8   :  { %v812_v28 = vpop.xlane.xlu1 %811 }
 0x8e9   :  { %v813_v29 = vsub.f32 %v809_v26, %v812_v28 }
 0x8eb   :  { %v814_v30 = vmul.f32 1.442695, %v813_v29 }
 0x8ec   :  { %v900_v33 = vpop.permute.xlu1 %899 }
 0x8ed   :  { %8644 = vpow2.f32 %v814_v30 }
 0x8f0   :  { %v898_v35 = vpop.permute.xlu1 %897 }
 0x8f4   :  { %v1251_v37 = vpop.permute.xlu1 %1250 }
 0x8f7   :  { %v8645_v31 = vpop.eup %8644 }
 0x8f8   :  { %v816_v32 = vsel %vm399_vm4, %v8645_v31, 0.0  ;;  %v1418_v45 = vpop.permute.xlu1 %1417 }
 0x8f9   :  { %817 = vadd.xlane.f32.xlu0 %v816_v32 }
 0x8fc   :  { %v1585_v49 = vpop.permute.xlu1 %1584 }
 0x90f   :  { %821 = vrot.lane.b32.xlu0 %v9350_v48, %s10433_s8 }
 0x913   :  { %1083 = vrot.lane.b32.xlu0 %v9348_v46, %s10449_s1  ;;  %s10494_s1 = sld [smem:[#allocation30_spill]] }
 0x917   :  { %1248 = vrot.lane.b32.xlu0 %v9348_v46, %s10453_s12 }
 0x91b   :  { %1415 = vrot.lane.b32.xlu0 %v9348_v46, %s10455_s0 }
 0x91f   :  { %1582 = vrot.lane.b32.xlu0 %v9348_v46, %s10451_s5 }
 0x986   :  { %v818_v34 = vpop.xlane.xlu0 %817 }
 0x987   :  { %8646 = vrcp.f32 %v818_v34 }
 0x98a   :  { %v822_v36 = vpop.permute.xlu0 %821 }
 0x98b   :  { %7975 = vmatpush3.msra.mxu1 %v822_v36 }
 0x98c   :  { %7979 = vmatprep.subr.mxu1 %v8989_v43 }
 0x98e   :  { %v1084_v38 = vpop.permute.xlu0 %1083 }
 0x98f   :  { %7990 = vmatpush3.xpose.msk.msra.mxu0 %vm399_vm4, %v1084_v38 }
 0x990   :  { %7999 = vmatprep.subr.mxu0 %v8989_v43 }
 0x991   :  { %v8647_v39 = vpop.eup %8646 }
 0x992   :  { %7992 = vmatmul.mubr.msk.f32.vlgmr.msra.gmra.mrb[2].mxu0 %vm399_vm4, %v9348_v46  ;;  %v1249_v40 = vpop.permute.xlu0 %1248  ;;  %v820_v44 = vmul.f32 %v8647_v39, %v8645_v31 }
 0x993   :  { %8000 = vmatpush3.xpose.msk.msra.mxu0 %vm399_vm4, %v1251_v37  ;;  %8001 = vmatprep.mubr.msk.f32.mxu0 %vm8990_vm3, %v8989_v43 }
 0x994   :  { %7977 = vmatmul.mubr.msk.f32.vlgmr.msra.gmra.mrb[12].mxu1 %vm399_vm4, %v820_v44  ;;  %8009 = vmatprep.subr.mxu0 %v8989_v43 }
 0x995   :  { %7980 = vmatpush3.xpose.msk.msra.mxu1 %vm399_vm4, %v900_v33  ;;  %7981 = vmatprep.mubr.msk.f32.mxu1 %vm8990_vm3, %v8989_v43 }
 0x996   :  { %8002 = vmatmul.mubr.msk.f32.vlgmr.msra.gmra.mrb[4].mxu0 %vm399_vm4, %v1249_v40  ;;  %7984 = vmatprep.subr.mxu1 %v8989_v43  ;;  %v1416_v47 = vpop.permute.xlu0 %1415 }
 0x997   :  { %8010 = vmatpush3.xpose.msk.msra.mxu0 %vm399_vm4, %v1418_v45  ;;  %8011 = vmatprep.mubr.msk.f32.mxu0 %vm8990_vm3, %v8989_v43 }
 0x998   :  { %7982 = vmatmul.mubr.msk.f32.vlgmr.msra.gmra.mrb[14].mxu1 %vm399_vm4, %v898_v35  ;;  %8019 = vmatprep.subr.mxu0 %v8989_v43 }
 0x999   :  { %7986 = vmatprep.mubr.msk.f32.mxu1 %vm8990_vm3, %v8989_v43 }
 0x99a   :  { %8012 = vmatmul.mubr.msk.f32.vlgmr.msra.gmra.mrb[6].mxu0 %vm399_vm4, %v1416_v47  ;;  %v1583_v51 = vpop.permute.xlu0 %1582 }
 0x99b   :  { %8020 = vmatpush3.xpose.msk.msra.mxu0 %vm399_vm4, %v1585_v49  ;;  %8021 = vmatprep.mubr.msk.f32.mxu0 %vm8990_vm3, %v8989_v43 }
 0x99e   :  { %8022 = vmatmul.mubr.msk.f32.vlgmr.msra.gmra.mrb[8].mxu0 %vm399_vm4, %v1583_v51 }
 0xa65   :  { %v1155_v53 = vpop.f32.mrb[2].mxu0 }
 0xa66   :  { %v1159_v54 = vmul.f32 0.35355338, %v1155_v53  ;;  %v7993_v55 = vpop.f32.mrb[3].mxu0 }
 0xa67   :  { %v9459_v56 = vpop.f32.mrb[12].mxu1 }
 0xa68   :  { %v7978_v57 = vpop.f32.mrb[13].mxu1  ;;  %v1160_v58 = vsel %vm1081_vm6, %v1159_v54, -10000.0 }
 0xa69   :  { %v1322_v59 = vpop.f32.mrb[4].mxu0  ;;  %v1161_v60 = vsel %vm399_vm4, %v1160_v58, -inf }
 0xa6a   :  { %v1326_v61 = vmul.f32 0.35355338, %v1322_v59  ;;  %1162 = vmax.xlane.f32.xlu0 %v1161_v60  ;;  %v8003_v62 = vpop.f32.mrb[5].mxu0 }
 0xa6b   :  { %v971_v63 = vpop.f32.mrb[14].mxu1 }
 0xa6c   :  { %v975_v0 = vmul.f32 0.35355338, %v971_v63  ;;  %v7983_v1 = vpop.f32.mrb[15].mxu1  ;;  %v1327_v2 = vsel %vm1081_vm6, %v1326_v61, -10000.0 }
 0xa6d   :  { %v1489_v4 = vpop.f32.mrb[6].mxu0  ;;  %v1328_v5 = vsel %vm399_vm4, %v1327_v2, -inf }
 0xa6e   :  { %v1493_v6 = vmul.f32 0.35355338, %v1489_v4  ;;  %1329 = vmax.xlane.f32.xlu0 %v1328_v5  ;;  %v8013_v7 = vpop.f32.mrb[7].mxu0  ;;  %v976_v8 = vsel %vm395_vm5, %v975_v0, -10000.0  ;;  %v390_v4 = vld [vmem:[%s10491_s13] sm:$0xff]  ;;  %v391_v5 = vld [vmem:[%s10491_s13 + $0x8] sm:$0xff] }
 0xa6f   :  { %v977_v9 = vsel %vm399_vm4, %v976_v8, -inf  ;;  %v392_v7 = vld [vmem:[%s10491_s13 + $0x10] sm:$0xff] }
 0xa70   :  { %978 = vmax.xlane.f32.xlu1 %v977_v9  ;;  %v1494_v10 = vsel %vm1081_vm6, %v1493_v6, -10000.0  ;;  %v8479_v6 = vpack.c.bf16 %v391_v5, %v390_v4 }
 0xa71   :  { %v1656_v11 = vpop.f32.mrb[8].mxu0  ;;  %v1495_v14 = vsel %vm399_vm4, %v1494_v10, -inf }
 0xa72   :  { %v1660_v12 = vmul.f32 0.35355338, %v1656_v11  ;;  %v8023_v13 = vpop.f32.mrb[9].mxu0  ;;  %8480 = vmatprep.subr.bf16.mxu0 %v8479_v6 }
 0xa73   :  { %8482 = vmatpush3.bf16.msra.mxu0 %v8479_v6 }
 0xa74   :  { %1496 = vmax.xlane.f32.xlu1 %v1495_v14  ;;  %v1661_v15 = vsel %vm1081_vm6, %v1660_v12, -10000.0 }
 0xa75   :  { %v1662_v16 = vsel %vm399_vm4, %v1661_v15, -inf }
 0xa76   :  { %1663 = vmax.xlane.f32.xlu0 %v1662_v16 }
 0xaf7   :  { %v1163_v17 = vpop.xlane.xlu0 %1162 }
 0xaf8   :  { %v1164_v18 = vsub.f32 %v1160_v58, %v1163_v17 }
 0xafa   :  { %v1165_v19 = vmul.f32 1.442695, %v1164_v18 }
 0xafb   :  { %v1330_v20 = vpop.xlane.xlu0 %1329 }
 0xafc   :  { %8648 = vpow2.f32 %v1165_v19  ;;  %v1331_v22 = vsub.f32 %v1327_v2, %v1330_v20 }
 0xafd   :  { %v979_v23 = vpop.xlane.xlu1 %978 }
 0xafe   :  { %v1332_v24 = vmul.f32 1.442695, %v1331_v22  ;;  %v980_v39 = vsub.f32 %v976_v8, %v979_v23  ;;  %v393_v8 = vld [vmem:[%s10491_s13 + $0x18] sm:$0xff] }
 0xb00   :  { %8650 = vpow2.f32 %v1332_v24  ;;  %v981_v40 = vmul.f32 1.442695, %v980_v39 }
 0xb01   :  { %v1497_v25 = vpop.xlane.xlu1 %1496 }
 0xb02   :  { %v1498_v26 = vsub.f32 %v1494_v10, %v1497_v25  ;;  %v8483_v10 = vpack.c.bf16 %v393_v8, %v392_v7 }
 0xb03   :  { %v1664_v27 = vpop.xlane.xlu0 %1663 }
 0xb04   :  { %v1499_v28 = vmul.f32 1.442695, %v1498_v26  ;;  %v1665_v29 = vsub.f32 %v1661_v15, %v1664_v27  ;;  %8484 = vmatprep.subr.bf16.mxu0 %v8483_v10 }
 0xb05   :  { %8486 = vmatpush3.bf16.msra.mxu0 %v8483_v10 }
 0xb06   :  { %v8649_v30 = vpop.eup %8648  ;;  %8652 = vpow2.f32 %v1499_v28  ;;  %v1666_v31 = vmul.f32 1.442695, %v1665_v29 }
 0xb07   :  { %v1167_v32 = vsel %vm399_vm4, %v8649_v30, 0.0 }
 0xb08   :  { %8654 = vpow2.f32 %v1666_v31  ;;  %1168 = vadd.xlane.f32.xlu0 %v1167_v32 }
 0xb09   :  { %8656 = vpow2.f32 %v981_v40 }
 0xb0a   :  { %v8651_v33 = vpop.eup %8650 }
 0xb0b   :  { %v1334_v34 = vsel %vm399_vm4, %v8651_v33, 0.0 }
 0xb0c   :  { %1335 = vadd.xlane.f32.xlu1 %v1334_v34 }
 0xb10   :  { %v8653_v35 = vpop.eup %8652 }
 0xb11   :  { %v1501_v36 = vsel %vm399_vm4, %v8653_v35, 0.0 }
 0xb12   :  { %v8655_v37 = vpop.eup %8654  ;;  %1502 = vadd.xlane.f32.xlu0 %v1501_v36 }
 0xb13   :  { %v1668_v38 = vsel %vm399_vm4, %v8655_v37, 0.0  ;;  %v8657_v44 = vpop.eup %8656 }
 0xb14   :  { %1669 = vadd.xlane.f32.xlu1 %v1668_v38  ;;  %v983_v45 = vsel %vm399_vm4, %v8657_v44, 0.0 }
 0xb25   :  { %1172 = vrot.lane.b32.xlu1 %v9348_v46, %s10439_s16  ;;  %s10502_s16 = smov 112  }
 0xb28   :  { %988 = vrot.lane.b32.xlu0 %v9350_v48, %s10435_s3 }
 0xb2c   :  { %1506 = vrot.lane.b32.xlu0 %v9348_v46, %s10433_s8  ;;  %s10497_s8 = smov 72  }
 0xb30   :  { %1065 = vrot.lane.b32.xlu0 %v9403_v21, %s10447_s4 }
 0xb49   :  { %984 = vadd.xlane.f32.xlu1 %v983_v45 }
 0xb5a   :  { %1339 = vrot.lane.b32.xlu1 %v9348_v46, %s10437_s11  ;;  %s10503_s11 = smov 120  }
 0xb5e   :  { %1673 = vrot.lane.b32.xlu1 %v9348_v46, %s10435_s3  ;;  %s10498_s3 = smov 80  }
 0xb62   :  { %1069 = vrot.lane.b32.xlu1 %v9459_v56, %s10486_s28 }
 0xb95   :  { %v1169_v48 = vpop.xlane.xlu0 %1168 }
 0xb99   :  { %v1336_v21 = vpop.xlane.xlu1 %1335 }
 0xb9f   :  { %v1503_v47 = vpop.xlane.xlu0 %1502 }
 0xba1   :  { %v1670_v51 = vpop.xlane.xlu1 %1669 }
 0xba3   :  { %v989_v49 = vpop.permute.xlu0 %988 }
 0xba4   :  { %7985 = vmatpush3.msra.mxu1 %v989_v49 }
 0xba5   :  { %7994 = vmatprep.subr.mxu1 %v8989_v43  ;;  %v1173_v53 = vpop.permute.xlu1 %1172 }
 0xba7   :  { %v1507_v62 = vpop.permute.xlu0 %1506 }
 0xbab   :  { %v1066_v20 = vpop.permute.xlu0 %1065 }
 0xbac   :  { %v1076_v23 = vsel %vm399_vm4, %v9382_v3, %v1066_v20  ;;  %v7494_v3 = vld [vmem:[%s10492_s10] ss:$0 sm:$0xff]  ;;  %v7502_v20 = vld [vmem:[#allocation10] ss:$0 sm:$0xff] }
 0xbd6   :  { %v985_v54 = vpop.xlane.xlu1 %984 }
 0xbd7   :  { %8658 = vrcp.f32 %v985_v54 }
 0xbd8   :  { %8660 = vrcp.f32 %v1169_v48 }
 0xbd9   :  { %8662 = vrcp.f32 %v1336_v21 }
 0xbda   :  { %8664 = vrcp.f32 %v1503_v47  ;;  %v1340_v59 = vpop.permute.xlu1 %1339 }
 0xbdb   :  { %8666 = vrcp.f32 %v1670_v51 }
 0xbde   :  { %v1674_v1 = vpop.permute.xlu1 %1673 }
 0xbe1   :  { %v8659_v55 = vpop.eup %8658 }
 0xbe2   :  { %v987_v57 = vmul.f32 %v8659_v55, %v8657_v44  ;;  %v8661_v46 = vpop.eup %8660  ;;  %v1070_v22 = vpop.permute.xlu1 %1069  ;;  %v1991_v55 = vld [vmem:[%s10493_s9 + $0x8] sm:$0xff] }
 0xbe3   :  { %v1171_v56 = vmul.f32 %v8661_v46, %v8649_v30  ;;  %v8663_v58 = vpop.eup %8662  ;;  %v1078_v24 = vsel %vm1077_vm7, %v1076_v23, %v1070_v22  ;;  %v1992_v46 = vld [vmem:[%s10493_s9 + $0x10] sm:$0xff] }
 0xbe4   :  { %7987 = vmatmul.mubr.msk.f32.vlgmr.msra.gmra.mrb[16].mxu1 %vm399_vm4, %v987_v57  ;;  %v1338_v60 = vmul.f32 %v8663_v58, %v8651_v33  ;;  %v8665_v61 = vpop.eup %8664  ;;  %v291_v58 = vld [vmem:[#allocation2] sm:$0xff] }
 0xbe5   :  { %7995 = vmatpush3.msra.mxu1 %v1173_v53  ;;  %7996 = vmatprep.mubr.msk.f32.mxu1 %vm8990_vm3, %v8989_v43  ;;  %v1505_v63 = vmul.f32 %v8665_v61, %v8653_v35  ;;  %v8667_v0 = vpop.eup %8666  ;;  %v1899_v61 = vld [vmem:[%s10494_s1 + $0x8] sm:$0xff] }
 0xbe6   :  { %8004 = vmatprep.subr.mxu1 %v8989_v43  ;;  %v1672_v2 = vmul.f32 %v8667_v0, %v8655_v37  ;;  %v1901_v0 = vld [vmem:[%s10494_s1 + $0x18] sm:$0xff] }
 0xbe8   :  { %7997 = vmatmul.mubr.msk.f32.vlgmr.msra.gmra.mrb[18].mxu1 %vm399_vm4, %v1171_v56  ;;  %v1993_v56 = vld [vmem:[%s10493_s9 + $0x18] sm:$0xff] }
 0xbe9   :  { %8005 = vmatpush3.msra.mxu1 %v1340_v59  ;;  %8006 = vmatprep.mubr.msk.f32.mxu1 %vm8990_vm3, %v8989_v43  ;;  %v8499_v59 = vpack.c.bf16 %v1993_v56, %v1992_v46 }
 0xbea   :  { %8014 = vmatprep.subr.mxu1 %v8989_v43 }
 0xbec   :  { %8007 = vmatmul.mubr.msk.f32.vlgmr.msra.gmra.mrb[20].mxu1 %vm399_vm4, %v1338_v60  ;;  %v1898_v60 = vld [vmem:[%s10494_s1] sm:$0xff] }
 0xbed   :  { %8015 = vmatpush3.msra.mxu1 %v1507_v62  ;;  %8016 = vmatprep.mubr.msk.f32.mxu1 %vm8990_vm3, %v8989_v43  ;;  %v8487_v62 = vpack.c.bf16 %v1899_v61, %v1898_v60 }
 0xbee   :  { %8024 = vmatprep.subr.mxu1 %v8989_v43 }
 0xbf0   :  { %8017 = vmatmul.mubr.msk.f32.vlgmr.msra.gmra.mrb[22].mxu1 %vm399_vm4, %v1505_v63  ;;  %v1900_v63 = vld [vmem:[%s10494_s1 + $0x10] sm:$0xff] }
 0xbf1   :  { %8025 = vmatpush3.msra.mxu1 %v1674_v1  ;;  %8026 = vmatprep.mubr.msk.f32.mxu1 %vm8990_vm3, %v8989_v43  ;;  %v8491_v1 = vpack.c.bf16 %v1901_v0, %v1900_v63  ;;  %v9673_v0 = vld [vmem:[#allocation7 + $0x8] sm:$0xff] }
 0xbf2   :  { %8488 = vmatprep.subr.bf16.mxu1 %v8487_v62  ;;  %vm2769_vm10 = vcmp.gt.f32.partialorder %v9673_v0, 0.5 }
 0xbf4   :  { %8027 = vmatmul.mubr.msk.f32.vlgmr.msra.gmra.mrb[24].mxu1 %vm399_vm4, %v1672_v2  ;;  %v292_v2 = vld [vmem:[#allocation2 + $0x8] sm:$0xff] }
 0xbf5   :  { %8490 = vmatpush3.bf16.msra.mxu1 %v8487_v62 }
 0xbf6   :  { %8492 = vmatprep.subr.bf16.mxu1 %v8491_v1 }
 0xbf9   :  { %8494 = vmatpush3.bf16.msra.mxu1 %v8491_v1 }
 0xbfa   :  { %8062 = vmatprep.subr.mxu1 %v8989_v43 }
 0xcb7   :  { %v1060_v9 = vpop.f32.mrb[16].mxu1 }
 0xcb8   :  { %1073 = vrot.lane.b32.xlu1 %v1060_v9, %s10445_s27  ;;  %v7988_v11 = vpop.f32.mrb[17].mxu1 }
 0xcb9   :  { %v7497_v11 = vld [vmem:[%s10405_s20] ss:$0 sm:$0xff] }
 0xcbb   :  { %v1244_v12 = vpop.f32.mrb[18].mxu1 }
 0xcbc   :  { %v7998_v13 = vpop.f32.mrb[19].mxu1 }
 0xcbd   :  { %v7498_v13 = vld [vmem:[%s10406_s21] ss:$0 sm:$0xff] }
 0xcbf   :  { %v1411_v14 = vpop.f32.mrb[20].mxu1 }
 0xcc0   :  { %1750 = vrot.lane.b32.xlu0 %v1411_v14, %s10447_s4  ;;  %v8008_v15 = vpop.f32.mrb[21].mxu1  ;;  %s10495_s4 = sld [smem:[#allocation31_spill]] }
 0xcc3   :  { %v1578_v16 = vpop.f32.mrb[22].mxu1 }
 0xcc4   :  { %1754 = vrot.lane.b32.xlu0 %v1578_v16, %s10486_s28  ;;  %v8018_v17 = vpop.f32.mrb[23].mxu1 }
 0xcc7   :  { %v1745_v18 = vpop.f32.mrb[24].mxu1 }
 0xcc8   :  { %1758 = vrot.lane.b32.xlu1 %v1745_v18, %s10445_s27  ;;  %v8028_v19 = vpop.f32.mrb[25].mxu1  ;;  %s10496_s27 = smov 96  }
 0xd2a   :  { %v1074_v25 = vpop.permute.xlu1 %1073 }
 0xd2b   :  { %v1080_v26 = vsel %vm1079_vm8, %v1078_v24, %v1074_v25 }
 0xd2c   :  { %8037 = vmatprep.mubr.msk.f32.mxu0 %vm308_vm2, %v1080_v26 }
 0xd32   :  { %v1751_v27 = vpop.permute.xlu0 %1750 }
 0xd33   :  { %v1761_v29 = vsel %vm399_vm4, %v1244_v12, %v1751_v27  ;;  %v7499_v27 = vld [vmem:[%s10495_s4] ss:$0 sm:$0xff]  ;;  %s10508_s4 = smov 48  }
 0xd36   :  { %v1755_v28 = vpop.permute.xlu0 %1754 }
 0xd37   :  { %v1762_v30 = vsel %vm1077_vm7, %v1761_v29, %v1755_v28 }
 0xd3a   :  { %v1759_v31 = vpop.permute.xlu1 %1758 }
 0xd3b   :  { %v1763_v32 = vsel %vm1079_vm8, %v1762_v30, %v1759_v31 }
 0xd3c   :  { %8038 = vmatmul.mubr.msk.f32.vlgmr.msra.gmra.mrb[10].mxu0 %vm308_vm2, %v1763_v32 }
 0xd3d   :  { %8059 = vmatprep.mubr.msk.f32.mxu0 %vm308_vm2, %v291_v58 }
 0xe0f   :  { %v8039_v33 = vpop.f32.mrb[10].mxu0 }
 0xe10   :  { %v1848_v34 = vadd.f32 %v8039_v33, %v7494_v3  ;;  %v1842_v35 = vpop.f32.mrb[11].mxu0 }
 0xe11   :  { %v1843_v36 = vadd.f32 %v7494_v3, %v1842_v35 }
 0xe12   :  { %v1852_v37 = vadd.f32 %v1848_v34, %v9333_v42 }
 0xe13   :  { %v1851_v38 = vadd.f32 %v1843_v36, %v9331_v41  ;;  %v1990_v41 = vld [vmem:[%s10493_s9] sm:$0xff] }
 0xe14   :  { %v1858_v39 = vsel %vm308_vm2, %v1852_v37, 0.0  ;;  %v8495_v57 = vpack.c.bf16 %v1991_v55, %v1990_v41 }
 0xe15   :  { %1859 = vadd.xlane.f32.xlu1 %v1858_v39  ;;  %v1855_v40 = vsel %vm308_vm2, %v1851_v38, 0.0 }
 0xe16   :  { %1856 = vadd.xlane.f32.xlu0 %v1855_v40  ;;  %8496 = vmatprep.subr.bf16.mxu0 %v8495_v57 }
 0xe17   :  { %8498 = vmatpush3.bf16.msra.mxu0 %v8495_v57 }
 0xe18   :  { %8500 = vmatprep.subr.bf16.mxu0 %v8499_v59 }
 0xe1b   :  { %8502 = vmatpush3.bf16.msra.mxu0 %v8499_v59 }
 0xe1c   :  { %8072 = vmatprep.subr.mxu0 %v8989_v43 }
 0xe1e   :  { %8060 = vmatmul.mubr.msk.f32.vlgmr.msra.gmra.mrb[12].mxu0 %vm308_vm2, %v292_v2 }
 0xe1f   :  { %8074 = vmatprep.mubr.msk.f32.mxu0 %vm8990_vm3, %v8989_v43 }
 0xea2   :  { %v1860_v44 = vpop.xlane.xlu1 %1859 }
 0xea3   :  { %v1863_v45 = vmul.f32 0.03125, %v1860_v44  ;;  %v1857_v48 = vpop.xlane.xlu0 %1856 }
 0xea4   :  { %v1862_v47 = vmul.f32 0.03125, %v1857_v48  ;;  %v9661_v48 = vld [vmem:[#allocation7] sm:$0xff] }
 0xea5   :  { %v1865_v49 = vsub.f32 %v1852_v37, %v1863_v45  ;;  %vm2087_vm9 = vcmp.gt.f32.partialorder %v9661_v48, 0.5 }
 0xea6   :  { %v1864_v21 = vsub.f32 %v1851_v38, %v1862_v47 }
 0xea7   :  { %v1867_v54 = vmul.f32 %v1865_v49, %v1865_v49 }
 0xea8   :  { %v1866_v51 = vmul.f32 %v1864_v21, %v1864_v21 }
 0xea9   :  { %v1871_v42 = vsel %vm308_vm2, %v1867_v54, 0.0 }
 0xeaa   :  { %v1868_v53 = vsel %vm308_vm2, %v1866_v51, 0.0 }
 0xeab   :  { %1869 = vadd.xlane.f32.xlu0 %v1868_v53 }
 0xeaf   :  { %1872 = vadd.xlane.f32.xlu0 %v1871_v42 }
 0xef1   :  { %v8061_v22 = vpop.f32.mrb[12].mxu0 }
 0xef2   :  { %v9592_v23 = vadd.f32 %v8061_v22, %v7502_v20  ;;  %v2073_v24 = vpop.f32.mrb[13].mxu0 }
 0xef3   :  { %v9594_v25 = vadd.f32 %v7502_v20, %v2073_v24 }
 0xef5   :  { %2255 = vrot.lane.b32.xlu1 %v9594_v25, %s10453_s12 }
 0xef9   :  { %2422 = vrot.lane.b32.xlu1 %v9594_v25, %s10455_s0 }
 0xf38   :  { %v1870_v4 = vpop.xlane.xlu0 %1869 }
 0xf39   :  { %v1874_v5 = vmul.f32 0.03125, %v1870_v4 }
 0xf3b   :  { %v1876_v6 = vadd.f32 1e-12, %v1874_v5 }
 0xf3c   :  { %v1873_v7 = vpop.xlane.xlu0 %1872 }
 0xf3d   :  { %8668 = vrsqrt.f32 %v1876_v6  ;;  %v1875_v8 = vmul.f32 0.03125, %v1873_v7 }
 0xf3f   :  { %v1877_v9 = vadd.f32 1e-12, %v1875_v8 }
 0xf41   :  { %8670 = vrsqrt.f32 %v1877_v9 }
 0xf47   :  { %v8669_v10 = vpop.eup %8668 }
 0xf48   :  { %v1880_v12 = vmul.f32 %v8669_v10, %v1864_v21 }
 0xf4a   :  { %v1888_v14 = vmul.f32 %v7497_v11, %v1880_v12 }
 0xf4b   :  { %v8671_v15 = vpop.eup %8670 }
 0xf4c   :  { %v1881_v16 = vmul.f32 %v8671_v15, %v1865_v49  ;;  %v9582_v17 = vadd.f32 %v7498_v13, %v1888_v14 }
 0xf4e   :  { %v1889_v18 = vmul.f32 %v7497_v11, %v1881_v16  ;;  %8048 = vmatprep.mubr.msk.f32.mxu1 %vm308_vm2, %v9582_v17 }
 0xf50   :  { %v9586_v19 = vadd.f32 %v7498_v13, %v1889_v18 }
 0xf52   :  { %8049 = vmatmul.mubr.msk.f32.vlgmr.msra.gmra.mrb[26].mxu1 %vm308_vm2, %v9586_v19 }
 0xf53   :  { %8064 = vmatprep.mubr.msk.f32.mxu1 %vm8990_vm3, %v8989_v43  ;;  %8063 = vmatpush3.xpose.msk.msra.mxu1 %vm399_vm4, %v9594_v25 }
 0xf54   :  { %8067 = vmatprep.subr.mxu1 %v8989_v43 }
 0xf67   :  { %v2256_v26 = vpop.permute.xlu1 %2255 }
 0xf68   :  { %8073 = vmatpush3.xpose.msk.msra.mxu0 %vm399_vm4, %v2256_v26 }
 0xf69   :  { %8082 = vmatprep.subr.mxu0 %v8989_v43 }
 0xf6b   :  { %v2423_v32 = vpop.permute.xlu1 %2422 }
0x1025   :  { %v8050_v28 = vpop.f32.mrb[26].mxu1 }
0x1026   :  { %v1981_v29 = vpop.f32.mrb[27].mxu1  ;;  %v1987_v31 = vadd.f32 %v8050_v28, %v7499_v27 }
0x1027   :  { %v1982_v30 = vadd.f32 %v7499_v27, %v1981_v29 }
0x1029   :  { %2420 = vrot.lane.b32.xlu1 %v1982_v30, %s10455_s0  ;;  %2253 = vrot.lane.b32.xlu0 %v1982_v30, %s10453_s12 }
0x102a   :  { %8065 = vmatmul.mubr.msk.f32.vlgmr.msra.gmra.mrb[28].mxu1 %vm399_vm4, %v1982_v30 }
0x102b   :  { %8069 = vmatprep.mubr.msk.f32.mxu1 %vm8990_vm3, %v8989_v43 }
0x102d   :  { %2587 = vrot.lane.b32.xlu1 %v1982_v30, %s10451_s5  ;;  %2589 = vrot.lane.b32.xlu0 %v9594_v25, %s10451_s5 }
0x1031   :  { %2935 = vrot.lane.b32.xlu1 %v1987_v31, %s10453_s12  ;;  %2937 = vrot.lane.b32.xlu0 %v9592_v23, %s10453_s12 }
0x1035   :  { %3102 = vrot.lane.b32.xlu1 %v1987_v31, %s10455_s0  ;;  %3104 = vrot.lane.b32.xlu0 %v9592_v23, %s10455_s0 }
0x1039   :  { %3269 = vrot.lane.b32.xlu1 %v1987_v31, %s10451_s5  ;;  %3271 = vrot.lane.b32.xlu0 %v9592_v23, %s10451_s5  ;;  %s10501_s5 = smov 88  }
0x103d   :  { %2344 = vrot.lane.b32.xlu1 %v9594_v25, %s10457_s30  ;;  %2177 = vrot.lane.b32.xlu0 %v9594_v25, %s10496_s27 }
0x109b   :  { %v2421_v3 = vpop.permute.xlu1 %2420  ;;  %v2254_v33 = vpop.permute.xlu0 %2253 }
0x109c   :  { %8075 = vmatmul.mubr.msk.f32.vlgmr.msra.gmra.mrb[14].mxu0 %vm399_vm4, %v2254_v33 }
0x109d   :  { %8083 = vmatpush3.xpose.msk.msra.mxu0 %vm399_vm4, %v2423_v32  ;;  %8084 = vmatprep.mubr.msk.f32.mxu0 %vm8990_vm3, %v8989_v43 }
0x109e   :  { %8092 = vmatprep.subr.mxu0 %v8989_v43 }
0x109f   :  { %v2590_v34 = vpop.permute.xlu0 %2589  ;;  %v2588_v35 = vpop.permute.xlu1 %2587 }
0x10a0   :  { %8085 = vmatmul.mubr.msk.f32.vlgmr.msra.gmra.mrb[16].mxu0 %vm399_vm4, %v2421_v3 }
0x10a1   :  { %8093 = vmatpush3.xpose.msk.msra.mxu0 %vm399_vm4, %v2590_v34  ;;  %8094 = vmatprep.mubr.msk.f32.mxu0 %vm8990_vm3, %v8989_v43 }
0x10a2   :  { %8102 = vmatprep.subr.mxu0 %v8989_v43 }
0x10a3   :  { %v2938_v36 = vpop.permute.xlu0 %2937  ;;  %v2936_v37 = vpop.permute.xlu1 %2935 }
0x10a4   :  { %8095 = vmatmul.mubr.msk.f32.vlgmr.msra.gmra.mrb[18].mxu0 %vm399_vm4, %v2588_v35 }
0x10a5   :  { %8103 = vmatpush3.xpose.msk.msra.mxu0 %vm399_vm4, %v9592_v23  ;;  %8104 = vmatprep.mubr.msk.f32.mxu0 %vm8990_vm3, %v8989_v43 }
0x10a6   :  { %8112 = vmatprep.subr.mxu0 %v8989_v43 }
0x10a7   :  { %v3105_v38 = vpop.permute.xlu0 %3104  ;;  %v3103_v40 = vpop.permute.xlu1 %3102 }
0x10a8   :  { %8105 = vmatmul.mubr.msk.f32.vlgmr.msra.gmra.mrb[20].mxu0 %vm399_vm4, %v1987_v31 }
0x10a9   :  { %8113 = vmatpush3.xpose.msk.msra.mxu0 %vm399_vm4, %v2938_v36  ;;  %8114 = vmatprep.mubr.msk.f32.mxu0 %vm8990_vm3, %v8989_v43 }
0x10aa   :  { %8122 = vmatprep.subr.mxu0 %v8989_v43 }
0x10ab   :  { %v3272_v39 = vpop.permute.xlu0 %3271  ;;  %v3270_v45 = vpop.permute.xlu1 %3269 }
0x10ac   :  { %8115 = vmatmul.mubr.msk.f32.vlgmr.msra.gmra.mrb[22].mxu0 %vm399_vm4, %v2936_v37 }
0x10ad   :  { %8123 = vmatpush3.xpose.msk.msra.mxu0 %vm399_vm4, %v3105_v38  ;;  %8124 = vmatprep.mubr.msk.f32.mxu0 %vm8990_vm3, %v8989_v43 }
0x10ae   :  { %8132 = vmatprep.subr.mxu0 %v8989_v43 }
0x10af   :  { %v2178_v44 = vpop.permute.xlu0 %2177  ;;  %v2345_v33 = vpop.permute.xlu1 %2344 }
0x10b0   :  { %8068 = vmatpush3.msra.mxu1 %v2178_v44  ;;  %8125 = vmatmul.mubr.msk.f32.vlgmr.msra.gmra.mrb[24].mxu0 %vm399_vm4, %v3103_v40 }
0x10b1   :  { %8133 = vmatpush3.xpose.msk.msra.mxu0 %vm399_vm4, %v3272_v39  ;;  %8134 = vmatprep.mubr.msk.f32.mxu0 %vm8990_vm3, %v8989_v43 }
0x10b2   :  { %8077 = vmatprep.subr.mxu1 %v8989_v43 }
0x10b4   :  { %8135 = vmatmul.mubr.msk.f32.vlgmr.msra.gmra.mrb[26].mxu0 %vm399_vm4, %v3270_v45 }
0x10fd   :  { %v2160_v47 = vpop.f32.mrb[28].mxu1 }
0x10fe   :  { %v2164_v49 = vmul.f32 0.35355338, %v2160_v47  ;;  %v8066_v21 = vpop.f32.mrb[29].mxu1 }
0x1100   :  { %v2165_v51 = vsel %vm2087_vm9, %v2164_v49, -10000.0 }
0x1101   :  { %v2166_v53 = vsel %vm399_vm4, %v2165_v51, -inf }
0x1102   :  { %2167 = vmax.xlane.f32.xlu0 %v2166_v53 }
0x116f   :  { %v2327_v54 = vpop.f32.mrb[14].mxu0 }
0x1170   :  { %v2331_v42 = vmul.f32 0.35355338, %v2327_v54  ;;  %v8076_v41 = vpop.f32.mrb[15].mxu0 }
0x1172   :  { %v2332_v55 = vsel %vm2087_vm9, %v2331_v42, -10000.0 }
0x1173   :  { %v2494_v57 = vpop.f32.mrb[16].mxu0  ;;  %v2333_v46 = vsel %vm399_vm4, %v2332_v55, -inf }
0x1174   :  { %v2498_v56 = vmul.f32 0.35355338, %v2494_v57  ;;  %2334 = vmax.xlane.f32.xlu1 %v2333_v46  ;;  %v8086_v58 = vpop.f32.mrb[17].mxu0 }
0x1176   :  { %v2499_v59 = vsel %vm2087_vm9, %v2498_v56, -10000.0 }
0x1177   :  { %v2661_v60 = vpop.f32.mrb[18].mxu0  ;;  %v2500_v61 = vsel %vm399_vm4, %v2499_v59, -inf }
0x1178   :  { %v2665_v62 = vmul.f32 0.35355338, %v2661_v60  ;;  %v8096_v63 = vpop.f32.mrb[19].mxu0  ;;  %2501 = vmax.xlane.f32.xlu0 %v2500_v61 }
0x117a   :  { %v2666_v1 = vsel %vm2087_vm9, %v2665_v62, -10000.0 }
0x117b   :  { %v2842_v2 = vpop.f32.mrb[20].mxu0  ;;  %v2667_v4 = vsel %vm399_vm4, %v2666_v1, -inf }
0x117c   :  { %v2846_v5 = vmul.f32 0.35355338, %v2842_v2  ;;  %v8106_v6 = vpop.f32.mrb[21].mxu0  ;;  %2668 = vmax.xlane.f32.xlu0 %v2667_v4 }
0x117e   :  { %v2847_v7 = vsel %vm2769_vm10, %v2846_v5, -10000.0 }
0x117f   :  { %v3009_v8 = vpop.f32.mrb[22].mxu0  ;;  %v2848_v9 = vsel %vm399_vm4, %v2847_v7, -inf }
0x1180   :  { %v3013_v10 = vmul.f32 0.35355338, %v3009_v8  ;;  %2849 = vmax.xlane.f32.xlu1 %v2848_v9  ;;  %v8116_v11 = vpop.f32.mrb[23].mxu0 }
0x1182   :  { %v3014_v12 = vsel %vm2769_vm10, %v3013_v10, -10000.0 }
0x1183   :  { %v3176_v13 = vpop.f32.mrb[24].mxu0  ;;  %v3015_v14 = vsel %vm399_vm4, %v3014_v12, -inf }
0x1184   :  { %v3180_v15 = vmul.f32 0.35355338, %v3176_v13  ;;  %v8126_v16 = vpop.f32.mrb[25].mxu0  ;;  %3016 = vmax.xlane.f32.xlu0 %v3015_v14 }
0x1186   :  { %v3181_v18 = vsel %vm2769_vm10, %v3180_v15, -10000.0 }
0x1187   :  { %v3343_v20 = vpop.f32.mrb[26].mxu0  ;;  %v3182_v22 = vsel %vm399_vm4, %v3181_v18, -inf }
0x1188   :  { %v3347_v24 = vmul.f32 0.35355338, %v3343_v20  ;;  %3183 = vmax.xlane.f32.xlu1 %v3182_v22  ;;  %v8136_v26 = vpop.f32.mrb[27].mxu0 }
0x118a   :  { %v3348_v27 = vsel %vm2769_vm10, %v3347_v24, -10000.0 }
0x118b   :  { %v3349_v28 = vsel %vm399_vm4, %v3348_v27, -inf }
0x118c   :  { %3350 = vmax.xlane.f32.xlu0 %v3349_v28 }
0x118f   :  { %v2168_v29 = vpop.xlane.xlu0 %2167 }
0x1190   :  { %v2169_v30 = vsub.f32 %v2165_v51, %v2168_v29 }
0x1192   :  { %v2170_v31 = vmul.f32 1.442695, %v2169_v30 }
0x1194   :  { %8672 = vpow2.f32 %v2170_v31 }
0x1199   :  { %2678 = vrot.lane.b32.xlu1 %v9594_v25, %s10497_s8 }
0x119e   :  { %v8673_v32 = vpop.eup %8672 }
0x119f   :  { %v2172_v3 = vsel %vm399_vm4, %v8673_v32, 0.0 }
0x11a2   :  { %2511 = vrot.lane.b32.xlu0 %v9594_v25, %s10498_s3 }
0x11bd   :  { %2173 = vadd.xlane.f32.xlu1 %v2172_v3 }
0x1201   :  { %v2335_v34 = vpop.xlane.xlu1 %2334 }
0x1202   :  { %v2336_v35 = vsub.f32 %v2332_v55, %v2335_v34 }
0x1204   :  { %v2337_v36 = vmul.f32 1.442695, %v2336_v35 }
0x1205   :  { %v2502_v37 = vpop.xlane.xlu0 %2501 }
0x1206   :  { %8674 = vpow2.f32 %v2337_v36  ;;  %v2503_v38 = vsub.f32 %v2499_v59, %v2502_v37 }
0x1208   :  { %v2504_v39 = vmul.f32 1.442695, %v2503_v38 }
0x1209   :  { %v2669_v40 = vpop.xlane.xlu0 %2668 }
0x120a   :  { %8676 = vpow2.f32 %v2504_v39  ;;  %v2670_v44 = vsub.f32 %v2666_v1, %v2669_v40 }
0x120c   :  { %v2671_v25 = vmul.f32 1.442695, %v2670_v44 }
0x120d   :  { %v2850_v54 = vpop.xlane.xlu1 %2849 }
0x120e   :  { %8678 = vpow2.f32 %v2671_v25  ;;  %v2851_v42 = vsub.f32 %v2847_v7, %v2850_v54 }
0x1210   :  { %v8675_v45 = vpop.eup %8674  ;;  %v2852_v46 = vmul.f32 1.442695, %v2851_v42  ;;  %v2082_v42 = vld [vmem:[%s10399_s14] sm:$0xff] }
0x1211   :  { %v2339_v47 = vsel %vm399_vm4, %v8675_v45, 0.0  ;;  %v3017_v41 = vpop.xlane.xlu0 %3016 }
0x1212   :  { %2340 = vadd.xlane.f32.xlu0 %v2339_v47  ;;  %v3018_v57 = vsub.f32 %v3014_v12, %v3017_v41  ;;  %8680 = vpow2.f32 %v2852_v46  ;;  %v2083_v41 = vld [vmem:[%s10399_s14 + $0x8] sm:$0xff]  ;;  %v2085_v46 = vld [vmem:[%s10399_s14 + $0x18] sm:$0xff] }
0x1214   :  { %v8677_v49 = vpop.eup %8676  ;;  %v3019_v59 = vmul.f32 1.442695, %v3018_v57  ;;  %v2084_v57 = vld [vmem:[%s10399_s14 + $0x10] sm:$0xff]  ;;  %s10507_s14 = smov 40  }
0x1215   :  { %v2506_v21 = vsel %vm399_vm4, %v8677_v49, 0.0  ;;  %v3184_v55 = vpop.xlane.xlu1 %3183 }
0x1216   :  { %2507 = vadd.xlane.f32.xlu1 %v2506_v21  ;;  %v3185_v56 = vsub.f32 %v3181_v18, %v3184_v55  ;;  %8682 = vpow2.f32 %v3019_v59  ;;  %v8503_v55 = vpack.c.bf16 %v2083_v41, %v2082_v42 }
0x1218   :  { %v9698_v51 = vpop.eup %8678  ;;  %v3186_v60 = vmul.f32 1.442695, %v3185_v56  ;;  %8504 = vmatprep.subr.bf16.mxu0 %v8503_v55  ;;  %v8507_v56 = vpack.c.bf16 %v2085_v46, %v2084_v57 }
0x1219   :  { %v2673_v53 = vsel %vm399_vm4, %v9698_v51, 0.0  ;;  %v3351_v58 = vpop.xlane.xlu0 %3350  ;;  %v2679_v63 = vpop.permute.xlu1 %2678  ;;  %8506 = vmatpush3.bf16.msra.mxu0 %v8503_v55 }
0x121a   :  { %2674 = vadd.xlane.f32.xlu0 %v2673_v53  ;;  %v3352_v61 = vsub.f32 %v3348_v27, %v3351_v58  ;;  %8684 = vpow2.f32 %v3186_v60  ;;  %8508 = vmatprep.subr.bf16.mxu0 %v8507_v56 }
0x121c   :  { %v3353_v62 = vmul.f32 1.442695, %v3352_v61  ;;  %v8681_v1 = vpop.eup %8680 }
0x121d   :  { %v2854_v5 = vsel %vm399_vm4, %v8681_v1, 0.0  ;;  %v2512_v13 = vpop.permute.xlu0 %2511  ;;  %8510 = vmatpush3.bf16.msra.mxu0 %v8507_v56 }
0x121e   :  { %8686 = vpow2.f32 %v3353_v62 }
0x1220   :  { %v9706_v2 = vpop.eup %8682 }
0x1221   :  { %v3021_v8 = vsel %vm399_vm4, %v9706_v2, 0.0 }
0x1224   :  { %v9709_v6 = vpop.eup %8684 }
0x1225   :  { %v3188_v7 = vsel %vm399_vm4, %v9709_v6, 0.0 }
0x1227   :  { %3026 = vrot.lane.b32.xlu1 %v9592_v23, %s10457_s30 }
0x1228   :  { %v9715_v9 = vpop.eup %8686 }
0x1229   :  { %v3355_v10 = vsel %vm399_vm4, %v9715_v9, 0.0 }
0x1230   :  { %2859 = vrot.lane.b32.xlu0 %v9592_v23, %s10496_s27 }
0x124a   :  { %v2174_v4 = vpop.xlane.xlu1 %2173 }
0x124b   :  { %8688 = vrcp.f32 %v2174_v4  ;;  %2855 = vadd.xlane.f32.xlu1 %v2854_v5 }
0x124f   :  { %3189 = vadd.xlane.f32.xlu1 %v3188_v7  ;;  %3022 = vadd.xlane.f32.xlu0 %v3021_v8 }
0x1253   :  { %3356 = vadd.xlane.f32.xlu1 %v3355_v10 }
0x1255   :  { %v8689_v11 = vpop.eup %8688 }
0x1256   :  { %v2176_v12 = vmul.f32 %v8689_v11, %v8673_v32 }
0x1258   :  { %8070 = vmatmul.mubr.msk.f32.vlgmr.msra.gmra.mrb[30].mxu1 %vm399_vm4, %v2176_v12 }
0x1259   :  { %8078 = vmatpush3.msra.mxu1 %v2345_v33  ;;  %8079 = vmatprep.mubr.msk.f32.mxu1 %vm8990_vm3, %v8989_v43 }
0x125a   :  { %8087 = vmatprep.subr.mxu1 %v8989_v43 }
0x1264   :  { %3360 = vrot.lane.b32.xlu1 %v9592_v23, %s10497_s8 }
0x1265   :  { %3193 = vrot.lane.b32.xlu0 %v9592_v23, %s10498_s3 }
0x129f   :  { %v2341_v14 = vpop.xlane.xlu0 %2340 }
0x12a0   :  { %8690 = vrcp.f32 %v2341_v14 }
0x12a3   :  { %v2508_v15 = vpop.xlane.xlu1 %2507 }
0x12a4   :  { %8692 = vrcp.f32 %v2508_v15 }
0x12a7   :  { %v2675_v16 = vpop.xlane.xlu0 %2674  ;;  %v3027_v28 = vpop.permute.xlu1 %3026 }
0x12a8   :  { %8694 = vrcp.f32 %v2675_v16  ;;  %v7529_v16 = vld [vmem:[#allocation11] ss:$0 sm:$0xff] }
0x12aa   :  { %v8691_v18 = vpop.eup %8690 }
0x12ab   :  { %v2343_v20 = vmul.f32 %v8691_v18, %v8675_v45  ;;  %v2860_v27 = vpop.permute.xlu0 %2859 }
0x12ad   :  { %8080 = vmatmul.mubr.msk.f32.vlgmr.msra.gmra.mrb[32].mxu1 %vm399_vm4, %v2343_v20 }
0x12ae   :  { %v8693_v22 = vpop.eup %8692  ;;  %8088 = vmatpush3.msra.mxu1 %v2512_v13  ;;  %8089 = vmatprep.mubr.msk.f32.mxu1 %vm8990_vm3, %v8989_v43 }
0x12af   :  { %8097 = vmatprep.subr.mxu1 %v8989_v43  ;;  %v2510_v24 = vmul.f32 %v8693_v22, %v8677_v49 }
0x12b1   :  { %8090 = vmatmul.mubr.msk.f32.vlgmr.msra.gmra.mrb[34].mxu1 %vm399_vm4, %v2510_v24 }
0x12b2   :  { %v8695_v23 = vpop.eup %8694  ;;  %8098 = vmatpush3.msra.mxu1 %v2679_v63  ;;  %8099 = vmatprep.mubr.msk.f32.mxu1 %vm8990_vm3, %v8989_v43 }
0x12b3   :  { %8107 = vmatprep.subr.mxu1 %v8989_v43  ;;  %v2677_v26 = vmul.f32 %v8695_v23, %v9698_v51 }
0x12b5   :  { %8100 = vmatmul.mubr.msk.f32.vlgmr.msra.gmra.mrb[36].mxu1 %vm399_vm4, %v2677_v26 }
0x12b6   :  { %8108 = vmatpush3.msra.mxu1 %v2860_v27  ;;  %8109 = vmatprep.mubr.msk.f32.mxu1 %vm8990_vm3, %v8989_v43 }
0x12b7   :  { %8117 = vmatprep.subr.mxu1 %v8989_v43 }
0x12d8   :  { %v2856_v29 = vpop.xlane.xlu1 %2855 }
0x12d9   :  { %8696 = vrcp.f32 %v2856_v29 }
0x12dc   :  { %v3190_v30 = vpop.xlane.xlu1 %3189  ;;  %v3023_v31 = vpop.xlane.xlu0 %3022 }
0x12dd   :  { %8698 = vrcp.f32 %v3023_v31 }
0x12de   :  { %8700 = vrcp.f32 %v3190_v30 }
0x12e0   :  { %v3357_v32 = vpop.xlane.xlu1 %3356  ;;  %v3194_v37 = vpop.permute.xlu0 %3193 }
0x12e1   :  { %8702 = vrcp.f32 %v3357_v32 }
0x12e3   :  { %v8697_v3 = vpop.eup %8696 }
0x12e4   :  { %v2858_v33 = vmul.f32 %v8697_v3, %v8681_v1  ;;  %v3361_v40 = vpop.permute.xlu1 %3360 }
0x12e6   :  { %8110 = vmatmul.mubr.msk.f32.vlgmr.msra.gmra.mrb[38].mxu1 %vm399_vm4, %v2858_v33 }
0x12e7   :  { %8118 = vmatpush3.msra.mxu1 %v3027_v28  ;;  %8119 = vmatprep.mubr.msk.f32.mxu1 %vm8990_vm3, %v8989_v43  ;;  %v8699_v34 = vpop.eup %8698 }
0x12e8   :  { %8127 = vmatprep.subr.mxu1 %v8989_v43  ;;  %v3025_v35 = vmul.f32 %v8699_v34, %v9706_v2  ;;  %v8701_v36 = vpop.eup %8700 }
0x12e9   :  { %v3192_v38 = vmul.f32 %v8701_v36, %v9709_v6 }
0x12ea   :  { %8120 = vmatmul.mubr.msk.f32.vlgmr.msra.gmra.mrb[40].mxu1 %vm399_vm4, %v3025_v35 }
0x12eb   :  { %8128 = vmatpush3.msra.mxu1 %v3194_v37  ;;  %8129 = vmatprep.mubr.msk.f32.mxu1 %vm8990_vm3, %v8989_v43  ;;  %v8703_v39 = vpop.eup %8702  ;;  %v3585_v37 = vld [vmem:[#allocation13 + $0x8] sm:$0xff] }
0x12ec   :  { %8137 = vmatprep.subr.mxu1 %v8989_v43  ;;  %v3359_v44 = vmul.f32 %v8703_v39, %v9715_v9 }
0x12ee   :  { %8130 = vmatmul.mubr.msk.f32.vlgmr.msra.gmra.mrb[42].mxu1 %vm399_vm4, %v3192_v38  ;;  %v3586_v38 = vld [vmem:[#allocation13 + $0x10] sm:$0xff] }
0x12ef   :  { %8138 = vmatpush3.msra.mxu1 %v3361_v40  ;;  %8139 = vmatprep.mubr.msk.f32.mxu1 %vm8990_vm3, %v8989_v43  ;;  %v3587_v40 = vld [vmem:[#allocation13 + $0x18] sm:$0xff] }
0x12f2   :  { %8140 = vmatmul.mubr.msk.f32.vlgmr.msra.gmra.mrb[44].mxu1 %vm399_vm4, %v3359_v44  ;;  %v8515_v44 = vpack.c.bf16 %v3587_v40, %v3586_v38  ;;  %v7543_v38 = vld [vmem:[%s10489_s6 + $0x28] sm:$0xff] }
0x132b   :  { %v2249_v25 = vpop.f32.mrb[30].mxu1 }
0x132c   :  { %v8071_v45 = vpop.f32.mrb[31].mxu1 }
0x132d   :  { %v3679_v45 = vld [vmem:[%s10403_s18 + $0x8] sm:$0xff] }
0x1380   :  { %v2416_v47 = vpop.f32.mrb[32].mxu1 }
0x1381   :  { %2755 = vrot.lane.b32.xlu0 %v2416_v47, %s10499_s2  ;;  %v8081_v49 = vpop.f32.mrb[33].mxu1  ;;  %v3680_v47 = vld [vmem:[%s10403_s18 + $0x10] sm:$0xff] }
0x1384   :  { %v2583_v21 = vpop.f32.mrb[34].mxu1 }
0x1385   :  { %2759 = vrot.lane.b32.xlu1 %v2583_v21, %s10486_s28  ;;  %v8091_v51 = vpop.f32.mrb[35].mxu1  ;;  %v3681_v21 = vld [vmem:[%s10403_s18 + $0x18] sm:$0xff] }
0x1386   :  { %v8523_v51 = vpack.c.bf16 %v3681_v21, %v3680_v47 }
0x1388   :  { %v2750_v53 = vpop.f32.mrb[36].mxu1 }
0x1389   :  { %2763 = vrot.lane.b32.xlu1 %v2750_v53, %s10500_s29  ;;  %v8101_v54 = vpop.f32.mrb[37].mxu1  ;;  %v3682_v53 = vld [vmem:[%s10403_s18 + $0x20] sm:$0xff] }
0x138a   :  { %v3683_v54 = vld [vmem:[%s10403_s18 + $0x28] sm:$0xff] }
0x138b   :  { %v8527_v42 = vpack.c.bf16 %v3683_v54, %v3682_v53 }
0x13b9   :  { %v2931_v58 = vpop.f32.mrb[38].mxu1 }
0x13ba   :  { %v8111_v59 = vpop.f32.mrb[39].mxu1 }
0x13bd   :  { %v3098_v60 = vpop.f32.mrb[40].mxu1 }
0x13be   :  { %3437 = vrot.lane.b32.xlu0 %v3098_v60, %s10499_s2  ;;  %v8121_v61 = vpop.f32.mrb[41].mxu1  ;;  %v7532_v60 = vld [vmem:[%s10407_s22] ss:$0 sm:$0xff] }
0x13c1   :  { %v3265_v62 = vpop.f32.mrb[42].mxu1 }
0x13c2   :  { %3441 = vrot.lane.b32.xlu0 %v3265_v62, %s10486_s28  ;;  %v8131_v63 = vpop.f32.mrb[43].mxu1  ;;  %v7533_v62 = vld [vmem:[%s10408_s23] ss:$0 sm:$0xff] }
0x13c5   :  { %v3432_v1 = vpop.f32.mrb[44].mxu1 }
0x13c6   :  { %3445 = vrot.lane.b32.xlu1 %v3432_v1, %s10500_s29  ;;  %v8141_v2 = vpop.f32.mrb[45].mxu1 }
0x13f3   :  { %v2756_v4 = vpop.permute.xlu0 %2755 }
0x13f4   :  { %v2766_v6 = vsel %vm399_vm4, %v2249_v25, %v2756_v4  ;;  %v3678_v25 = vld [vmem:[%s10403_s18] sm:$0xff] }
0x13f5   :  { %v8519_v49 = vpack.c.bf16 %v3679_v45, %v3678_v25 }
0x13f7   :  { %v2760_v5 = vpop.permute.xlu1 %2759  ;;  %8520 = vmatprep.subr.bf16.mxu0 %v8519_v49 }
0x13f8   :  { %v2767_v7 = vsel %vm1077_vm7, %v2766_v6, %v2760_v5 }
0x13fb   :  { %v2764_v8 = vpop.permute.xlu1 %2763 }
0x13fc   :  { %v2768_v9 = vsel %vm1079_vm8, %v2767_v7, %v2764_v8  ;;  %v3684_v7 = vld [vmem:[%s10403_s18 + $0x30] sm:$0xff]  ;;  %v3685_v8 = vld [vmem:[%s10403_s18 + $0x38] sm:$0xff] }
0x13fd   :  { %8150 = vmatprep.mubr.msk.f32.mxu0 %vm308_vm2, %v2768_v9  ;;  %v8531_v9 = vpack.c.bf16 %v3685_v8, %v3684_v7 }
0x1430   :  { %v3438_v10 = vpop.permute.xlu0 %3437 }
0x1431   :  { %v3448_v12 = vsel %vm399_vm4, %v2931_v58, %v3438_v10  ;;  %v7534_v10 = vld [vmem:[%s10402_s17] ss:$0 sm:$0xff] }
0x1434   :  { %v3442_v11 = vpop.permute.xlu0 %3441 }
0x1435   :  { %v3449_v13 = vsel %vm1077_vm7, %v3448_v12, %v3442_v11 }
0x1438   :  { %v3446_v14 = vpop.permute.xlu1 %3445 }
0x1439   :  { %v3450_v15 = vsel %vm1079_vm8, %v3449_v13, %v3446_v14 }
0x143a   :  { %8151 = vmatmul.mubr.msk.f32.vlgmr.msra.gmra.mrb[28].mxu0 %vm308_vm2, %v3450_v15 }
0x143b   :  { %8522 = vmatpush3.bf16.msra.mxu0 %v8519_v49 }
0x143c   :  { %8524 = vmatprep.subr.bf16.mxu0 %v8523_v51 }
0x143f   :  { %8526 = vmatpush3.bf16.msra.mxu0 %v8523_v51 }
0x1440   :  { %8528 = vmatprep.subr.bf16.mxu0 %v8527_v42 }
0x1443   :  { %8530 = vmatpush3.bf16.msra.mxu0 %v8527_v42  ;;  %v7540_v42 = vld [vmem:[%s10409_s24] ss:$0 sm:$0xff] }
0x1444   :  { %8532 = vmatprep.subr.bf16.mxu0 %v8531_v9 }
0x1447   :  { %8534 = vmatpush3.bf16.msra.mxu0 %v8531_v9 }
0x1448   :  { %8204 = vmatprep.subr.mxu0 %v8989_v43 }
0x150d   :  { %v8152_v18 = vpop.f32.mrb[28].mxu0 }
0x150e   :  { %v3535_v20 = vadd.f32 %v8152_v18, %v7529_v16  ;;  %v3529_v22 = vpop.f32.mrb[29].mxu0  ;;  %v7537_v18 = vld [vmem:[%s10404_s19] ss:$0 sm:$0xff] }
0x150f   :  { %v3530_v24 = vadd.f32 %v7529_v16, %v3529_v22 }
0x1510   :  { %v3539_v23 = vadd.f32 %v3535_v20, %v9586_v19 }
0x1511   :  { %v3538_v26 = vadd.f32 %v3530_v24, %v9582_v17  ;;  %v3584_v17 = vld [vmem:[#allocation13] sm:$0xff] }
0x1512   :  { %v3545_v27 = vsel %vm308_vm2, %v3539_v23, 0.0  ;;  %v8511_v39 = vpack.c.bf16 %v3585_v37, %v3584_v17  ;;  %v7542_v37 = vld [vmem:[%s10489_s6 + $0x20] sm:$0xff] }
0x1513   :  { %3546 = vadd.xlane.f32.xlu1 %v3545_v27  ;;  %v3542_v28 = vsel %vm308_vm2, %v3538_v26, 0.0  ;;  %v8535_v40 = vpack.c.bf16 %v7543_v38, %v7542_v37 }
0x1514   :  { %3543 = vadd.xlane.f32.xlu0 %v3542_v28  ;;  %8512 = vmatprep.subr.bf16.mxu1 %v8511_v39 }
0x1515   :  { %8514 = vmatpush3.bf16.msra.mxu1 %v8511_v39  ;;  %v7544_v39 = vld [vmem:[%s10489_s6 + $0x30] sm:$0xff] }
0x1516   :  { %8516 = vmatprep.subr.bf16.mxu1 %v8515_v44 }
0x1519   :  { %8518 = vmatpush3.bf16.msra.mxu1 %v8515_v44  ;;  %v7545_v44 = vld [vmem:[%s10489_s6 + $0x38] sm:$0xff] }
0x151a   :  { %v8539_v25 = vpack.c.bf16 %v7545_v44, %v7544_v39  ;;  %8536 = vmatprep.subr.bf16.mxu1 %v8535_v40 }
0x15a0   :  { %v3547_v29 = vpop.xlane.xlu1 %3546 }
0x15a1   :  { %v3549_v30 = vmul.f32 0.03125, %v3547_v29  ;;  %v3544_v31 = vpop.xlane.xlu0 %3543 }
0x15a2   :  { %v3548_v32 = vmul.f32 0.03125, %v3544_v31 }
0x15a3   :  { %v3551_v3 = vsub.f32 %v3539_v23, %v3549_v30 }
0x15a4   :  { %v3550_v33 = vsub.f32 %v3538_v26, %v3548_v32 }
0x15a5   :  { %v3553_v36 = vmul.f32 %v3551_v3, %v3551_v3 }
0x15a6   :  { %v3552_v34 = vmul.f32 %v3550_v33, %v3550_v33 }
0x15a7   :  { %v3557_v19 = vsel %vm308_vm2, %v3553_v36, 0.0 }
0x15a8   :  { %v3554_v35 = vsel %vm308_vm2, %v3552_v34, 0.0 }
0x15a9   :  { %3555 = vadd.xlane.f32.xlu0 %v3554_v35 }
0x15ad   :  { %3558 = vadd.xlane.f32.xlu0 %v3557_v19 }
0x1636   :  { %v3556_v41 = vpop.xlane.xlu0 %3555 }
0x1637   :  { %v3560_v55 = vmul.f32 0.03125, %v3556_v41 }
0x1639   :  { %v3562_v57 = vadd.f32 1e-12, %v3560_v55 }
0x163a   :  { %v3559_v46 = vpop.xlane.xlu0 %3558 }
0x163b   :  { %8704 = vrsqrt.f32 %v3562_v57  ;;  %v3561_v56 = vmul.f32 0.03125, %v3559_v46  ;;  %v7541_v46 = vld [vmem:[%s10410_s25] ss:$0 sm:$0xff] }
0x163d   :  { %v3563_v58 = vadd.f32 1e-12, %v3561_v56 }
0x163f   :  { %8706 = vrsqrt.f32 %v3563_v58 }
0x1645   :  { %v8705_v59 = vpop.eup %8704 }
0x1646   :  { %v3566_v61 = vmul.f32 %v8705_v59, %v3550_v33 }
0x1648   :  { %v3574_v63 = vmul.f32 %v7532_v60, %v3566_v61  ;;  %v7547_v61 = vld [vmem:[%s10490_s7 + $0x1] ss:$0 sm:$0xff]  ;;  %s10505_s7 = smov 64  }
0x1649   :  { %v8707_v1 = vpop.eup %8706 }
0x164a   :  { %v3567_v2 = vmul.f32 %v8707_v1, %v3551_v3  ;;  %v3582_v4 = vadd.f32 %v7533_v62, %v3574_v63 }
0x164c   :  { %v3575_v5 = vmul.f32 %v7532_v60, %v3567_v2  ;;  %8161 = vmatprep.mubr.msk.f32.mxu1 %vm308_vm2, %v3582_v4 }
0x164e   :  { %v3583_v6 = vadd.f32 %v7533_v62, %v3575_v5 }
0x1650   :  { %8162 = vmatmul.mubr.msk.f32.vlgmr.msra.gmra.mrb[46].mxu1 %vm308_vm2, %v3583_v6 }
0x1651   :  { %8538 = vmatpush3.bf16.msra.mxu1 %v8535_v40 }
0x1652   :  { %8540 = vmatprep.subr.bf16.mxu1 %v8539_v25 }
0x1655   :  { %8542 = vmatpush3.bf16.msra.mxu1 %v8539_v25 }
0x1656   :  { %8194 = vmatprep.subr.mxu1 %v8989_v43 }
0x1723   :  { %v8163_v11 = vpop.f32.mrb[46].mxu1 }
0x1724   :  { %v3673_v12 = vadd.f32 %v8163_v11, %v7534_v10  ;;  %v3667_v13 = vpop.f32.mrb[47].mxu1 }
0x1725   :  { %v3668_v14 = vadd.f32 %v7534_v10, %v3667_v13 }
0x1726   :  { %v3677_v16 = vmax.f32 %v3673_v12, 0.0 }
0x1727   :  { %v3676_v15 = vmax.f32 %v3668_v14, 0.0 }
0x1729   :  { %8180 = vmatprep.mubr.msk.f32.mxu0 %vm3693_vm11, %v3676_v15 }
0x172a   :  { %8181 = vmatmul.mubr.msk.f32.vlgmr.msra.gmra.mrb[30].mxu0 %vm3693_vm11, %v3677_v16 }
0x172b   :  { %8206 = vmatprep.mubr.msk.f32.mxu0 %vm8990_vm3, %v8989_v43 }
0x17fd   :  { %v8182_v20 = vpop.f32.mrb[30].mxu0 }
0x17fe   :  { %v3772_v22 = vadd.f32 %v8182_v20, %v7537_v18  ;;  %v3766_v24 = vpop.f32.mrb[31].mxu0 }
0x17ff   :  { %v3767_v23 = vadd.f32 %v7537_v18, %v3766_v24 }
0x1800   :  { %v3776_v26 = vadd.f32 %v3772_v22, %v3583_v6 }
0x1801   :  { %v3775_v27 = vadd.f32 %v3767_v23, %v3582_v4 }
0x1802   :  { %v3782_v28 = vsel %vm308_vm2, %v3776_v26, 0.0 }
0x1803   :  { %3783 = vadd.xlane.f32.xlu0 %v3782_v28  ;;  %v3779_v29 = vsel %vm308_vm2, %v3775_v27, 0.0 }
0x1804   :  { %3780 = vadd.xlane.f32.xlu1 %v3779_v29 }
0x1890   :  { %v3784_v30 = vpop.xlane.xlu0 %3783 }
0x1891   :  { %v3786_v31 = vmul.f32 0.03125, %v3784_v30  ;;  %v3781_v32 = vpop.xlane.xlu1 %3780 }
0x1892   :  { %v3785_v3 = vmul.f32 0.03125, %v3781_v32 }
0x1893   :  { %v3788_v33 = vsub.f32 %v3776_v26, %v3786_v31 }
0x1894   :  { %v3787_v34 = vsub.f32 %v3775_v27, %v3785_v3 }
0x1895   :  { %v3790_v35 = vmul.f32 %v3788_v33, %v3788_v33 }
0x1896   :  { %v3789_v36 = vmul.f32 %v3787_v34, %v3787_v34 }
0x1897   :  { %v3794_v19 = vsel %vm308_vm2, %v3790_v35, 0.0 }
0x1898   :  { %3795 = vadd.xlane.f32.xlu0 %v3794_v19  ;;  %v3791_v17 = vsel %vm308_vm2, %v3789_v36, 0.0 }
0x1899   :  { %3792 = vadd.xlane.f32.xlu1 %v3791_v17 }
0x1925   :  { %v3796_v45 = vpop.xlane.xlu0 %3795 }
0x1926   :  { %v3798_v47 = vmul.f32 0.03125, %v3796_v45  ;;  %v3793_v49 = vpop.xlane.xlu1 %3792 }
0x1927   :  { %v3797_v21 = vmul.f32 0.03125, %v3793_v49 }
0x1928   :  { %v3800_v51 = vadd.f32 1e-12, %v3798_v47 }
0x1929   :  { %v3799_v53 = vadd.f32 1e-12, %v3797_v21 }
0x192a   :  { %8708 = vrsqrt.f32 %v3800_v51 }
0x192b   :  { %8710 = vrsqrt.f32 %v3799_v53 }
0x1934   :  { %v8709_v54 = vpop.eup %8708 }
0x1935   :  { %v8711_v41 = vpop.eup %8710  ;;  %v3804_v55 = vmul.f32 %v8709_v54, %v3788_v33 }
0x1936   :  { %v3803_v57 = vmul.f32 %v8711_v41, %v3787_v34 }
0x1937   :  { %v3812_v56 = vmul.f32 %v7540_v42, %v3804_v55 }
0x1938   :  { %v3811_v58 = vmul.f32 %v7540_v42, %v3803_v57 }
0x1939   :  { %v9855_v60 = vadd.f32 %v7541_v46, %v3812_v56 }
0x193a   :  { %v9853_v59 = vadd.f32 %v7541_v46, %v3811_v58 }
0x193c   :  { %8191 = vmatprep.mubr.msk.f32.mxu1 %vm308_vm2, %v9853_v59 }
0x193d   :  { %8192 = vmatmul.mubr.msk.f32.vlgmr.msra.gmra.mrb[48].mxu1 %vm308_vm2, %v9855_v60 }
0x193e   :  { %8196 = vmatprep.mubr.msk.f32.mxu1 %vm8990_vm3, %v8989_v43 }
0x1a10   :  { %v8193_v62 = vpop.f32.mrb[48].mxu1 }
0x1a11   :  { %v3906_v63 = vpop.f32.mrb[49].mxu1  ;;  %v9880_v2 = vadd.f32 %v8193_v62, %v7547_v61 }
0x1a12   :  { %v9866_v1 = vadd.f32 %v7547_v61, %v3906_v63 }
0x1a14   :  { %4090 = vrot.lane.b32.xlu0 %v9866_v1, %s10501_s5  ;;  %3923 = vrot.lane.b32.xlu1 %v9866_v1, %s10496_s27 }
0x1a18   :  { %4255 = vrot.lane.b32.xlu0 %v9866_v1, %s10502_s16  ;;  %4088 = vrot.lane.b32.xlu1 %v9866_v1, %s10503_s11 }
0x1a1c   :  { %4422 = vrot.lane.b32.xlu0 %v9866_v1, %s10504_s26  ;;  %4257 = vrot.lane.b32.xlu1 %v9866_v1, %s10498_s3 }
0x1a20   :  { %4772 = vrot.lane.b32.xlu0 %v9880_v2, %s10501_s5  ;;  %4424 = vrot.lane.b32.xlu1 %v9866_v1, %s10497_s8 }
0x1a24   :  { %4939 = vrot.lane.b32.xlu0 %v9880_v2, %s10498_s3  ;;  %4605 = vrot.lane.b32.xlu1 %v9880_v2, %s10496_s27 }
0x1a28   :  { %5106 = vrot.lane.b32.xlu0 %v9880_v2, %s10497_s8  ;;  %4770 = vrot.lane.b32.xlu1 %v9880_v2, %s10503_s11 }
0x1a2c   :  { %4012 = vrot.lane.b32.xlu0 %v9866_v1, %s10505_s7  ;;  %4937 = vrot.lane.b32.xlu1 %v9880_v2, %s10502_s16 }
0x1a30   :  { %5104 = vrot.lane.b32.xlu1 %v9880_v2, %s10504_s26 }
0x1a34   :  { %4179 = vrot.lane.b32.xlu1 %v9866_v1, %s10506_s15 }
0x1a86   :  { %v4091_v4 = vpop.permute.xlu0 %4090  ;;  %v3924_v5 = vpop.permute.xlu1 %3923 }
0x1a87   :  { %8195 = vmatpush3.xpose.msk.msra.mxu1 %vm399_vm4, %v3924_v5  ;;  %8205 = vmatpush3.xpose.msk.msra.mxu0 %vm399_vm4, %v4091_v4 }
0x1a88   :  { %8214 = vmatprep.subr.mxu0 %v8989_v43  ;;  %8199 = vmatprep.subr.mxu1 %v8989_v43 }
0x1a8a   :  { %v4256_v6 = vpop.permute.xlu0 %4255  ;;  %8197 = vmatmul.mubr.msk.f32.vlgmr.msra.gmra.mrb[50].mxu1 %vm399_vm4, %v9866_v1  ;;  %v4089_v7 = vpop.permute.xlu1 %4088 }
0x1a8b   :  { %8207 = vmatmul.mubr.msk.f32.vlgmr.msra.gmra.mrb[32].mxu0 %vm399_vm4, %v4089_v7  ;;  %8201 = vmatprep.mubr.msk.f32.mxu1 %vm8990_vm3, %v8989_v43 }
0x1a8c   :  { %8216 = vmatprep.mubr.msk.f32.mxu0 %vm8990_vm3, %v8989_v43 }
0x1a8e   :  { %v4423_v8 = vpop.permute.xlu0 %4422  ;;  %v4258_v9 = vpop.permute.xlu1 %4257 }
0x1a8f   :  { %8215 = vmatpush3.xpose.msk.msra.mxu0 %vm399_vm4, %v4258_v9 }
0x1a90   :  { %8224 = vmatprep.subr.mxu0 %v8989_v43 }
0x1a92   :  { %v4773_v10 = vpop.permute.xlu0 %4772  ;;  %8217 = vmatmul.mubr.msk.f32.vlgmr.msra.gmra.mrb[34].mxu0 %vm399_vm4, %v4256_v6  ;;  %v4425_v11 = vpop.permute.xlu1 %4424 }
0x1a93   :  { %8225 = vmatpush3.xpose.msk.msra.mxu0 %vm399_vm4, %v4425_v11  ;;  %8226 = vmatprep.mubr.msk.f32.mxu0 %vm8990_vm3, %v8989_v43 }
0x1a94   :  { %8234 = vmatprep.subr.mxu0 %v8989_v43 }
0x1a96   :  { %v4940_v12 = vpop.permute.xlu0 %4939  ;;  %8227 = vmatmul.mubr.msk.f32.vlgmr.msra.gmra.mrb[36].mxu0 %vm399_vm4, %v4423_v8  ;;  %v4606_v13 = vpop.permute.xlu1 %4605 }
0x1a97   :  { %8235 = vmatpush3.xpose.msk.msra.mxu0 %vm399_vm4, %v4606_v13  ;;  %8236 = vmatprep.mubr.msk.f32.mxu0 %vm8990_vm3, %v8989_v43 }
0x1a98   :  { %8244 = vmatprep.subr.mxu0 %v8989_v43 }
0x1a9a   :  { %v5107_v14 = vpop.permute.xlu0 %5106  ;;  %8237 = vmatmul.mubr.msk.f32.vlgmr.msra.gmra.mrb[38].mxu0 %vm399_vm4, %v9880_v2  ;;  %v4771_v15 = vpop.permute.xlu1 %4770 }
0x1a9b   :  { %8245 = vmatpush3.xpose.msk.msra.mxu0 %vm399_vm4, %v4773_v10  ;;  %8246 = vmatprep.mubr.msk.f32.mxu0 %vm8990_vm3, %v8989_v43 }
0x1a9c   :  { %8254 = vmatprep.subr.mxu0 %v8989_v43 }
0x1a9e   :  { %v4013_v16 = vpop.permute.xlu0 %4012  ;;  %8247 = vmatmul.mubr.msk.f32.vlgmr.msra.gmra.mrb[40].mxu0 %vm399_vm4, %v4771_v15  ;;  %v4938_v18 = vpop.permute.xlu1 %4937 }
0x1a9f   :  { %8200 = vmatpush3.msra.mxu1 %v4013_v16  ;;  %8255 = vmatpush3.xpose.msk.msra.mxu0 %vm399_vm4, %v4940_v12 }
0x1aa0   :  { %8256 = vmatprep.mubr.msk.f32.mxu0 %vm8990_vm3, %v8989_v43  ;;  %8264 = vmatprep.subr.mxu0 %v8989_v43 }
0x1aa1   :  { %8209 = vmatprep.subr.mxu1 %v8989_v43 }
0x1aa2   :  { %8257 = vmatmul.mubr.msk.f32.vlgmr.msra.gmra.mrb[42].mxu0 %vm399_vm4, %v4938_v18  ;;  %v5105_v20 = vpop.permute.xlu1 %5104 }
0x1aa3   :  { %8265 = vmatpush3.xpose.msk.msra.mxu0 %vm399_vm4, %v5107_v14  ;;  %8266 = vmatprep.mubr.msk.f32.mxu0 %vm8990_vm3, %v8989_v43 }
0x1aa6   :  { %8267 = vmatmul.mubr.msk.f32.vlgmr.msra.gmra.mrb[44].mxu0 %vm399_vm4, %v5105_v20  ;;  %v9970_v63 = vpop.permute.xlu1 %4179 }
0x1b5d   :  { %v3995_v22 = vpop.f32.mrb[50].mxu1 }
0x1b5e   :  { %v3999_v24 = vmul.f32 0.35355338, %v3995_v22  ;;  %v8198_v23 = vpop.f32.mrb[51].mxu1  ;;  %v4162_v26 = vpop.f32.mrb[32].mxu0 }
0x1b5f   :  { %v4166_v27 = vmul.f32 0.35355338, %v4162_v26  ;;  %v8208_v28 = vpop.f32.mrb[33].mxu0 }
0x1b60   :  { %v4000_v29 = vsel %vm395_vm5, %v3999_v24, -10000.0 }
0x1b61   :  { %v4167_v30 = vsel %vm395_vm5, %v4166_v27, -10000.0  ;;  %v4001_v31 = vsel %vm399_vm4, %v4000_v29, -inf }
0x1b62   :  { %4002 = vmax.xlane.f32.xlu0 %v4001_v31  ;;  %v4168_v32 = vsel %vm399_vm4, %v4167_v30, -inf }
0x1b63   :  { %4169 = vmax.xlane.f32.xlu1 %v4168_v32 }
0x1b65   :  { %v4329_v3 = vpop.f32.mrb[34].mxu0 }
0x1b66   :  { %v4333_v33 = vmul.f32 0.35355338, %v4329_v3  ;;  %v8218_v34 = vpop.f32.mrb[35].mxu0 }
0x1b68   :  { %v4334_v35 = vsel %vm395_vm5, %v4333_v33, -10000.0 }
0x1b69   :  { %v4496_v36 = vpop.f32.mrb[36].mxu0  ;;  %v4335_v19 = vsel %vm399_vm4, %v4334_v35, -inf }
0x1b6a   :  { %v4500_v17 = vmul.f32 0.35355338, %v4496_v36  ;;  %4336 = vmax.xlane.f32.xlu0 %v4335_v19  ;;  %v8228_v37 = vpop.f32.mrb[37].mxu0 }
0x1b6c   :  { %v4501_v38 = vsel %vm395_vm5, %v4500_v17, -10000.0 }
0x1b6d   :  { %v4677_v39 = vpop.f32.mrb[38].mxu0  ;;  %v4502_v40 = vsel %vm399_vm4, %v4501_v38, -inf }
0x1b6e   :  { %v4681_v44 = vmul.f32 0.35355338, %v4677_v39  ;;  %4503 = vmax.xlane.f32.xlu0 %v4502_v40  ;;  %v8238_v25 = vpop.f32.mrb[39].mxu0 }
0x1b70   :  { %v4682_v45 = vsel %vm1081_vm6, %v4681_v44, -10000.0 }
0x1b71   :  { %v4844_v47 = vpop.f32.mrb[40].mxu0  ;;  %v4683_v49 = vsel %vm399_vm4, %v4682_v45, -inf }
0x1b72   :  { %v4848_v21 = vmul.f32 0.35355338, %v4844_v47  ;;  %4684 = vmax.xlane.f32.xlu1 %v4683_v49  ;;  %v8248_v51 = vpop.f32.mrb[41].mxu0 }
0x1b74   :  { %v4849_v53 = vsel %vm1081_vm6, %v4848_v21, -10000.0 }
0x1b75   :  { %v5011_v50 = vpop.f32.mrb[42].mxu0  ;;  %v4850_v54 = vsel %vm399_vm4, %v4849_v53, -inf }
0x1b76   :  { %v5015_v42 = vmul.f32 0.35355338, %v5011_v50  ;;  %4851 = vmax.xlane.f32.xlu0 %v4850_v54  ;;  %v8258_v41 = vpop.f32.mrb[43].mxu0 }
0x1b78   :  { %v5016_v55 = vsel %vm1081_vm6, %v5015_v42, -10000.0 }
0x1b79   :  { %v5178_v57 = vpop.f32.mrb[44].mxu0  ;;  %v5017_v46 = vsel %vm399_vm4, %v5016_v55, -inf }
0x1b7a   :  { %v5182_v56 = vmul.f32 0.35355338, %v5178_v57  ;;  %5018 = vmax.xlane.f32.xlu1 %v5017_v46  ;;  %v8268_v58 = vpop.f32.mrb[45].mxu0 }
0x1b7c   :  { %v5183_v61 = vsel %vm1081_vm6, %v5182_v56, -10000.0 }
0x1b7d   :  { %v5184_v62 = vsel %vm399_vm4, %v5183_v61, -inf }
0x1b7e   :  { %5185 = vmax.xlane.f32.xlu0 %v5184_v62 }
0x1b8b   :  { %4513 = vrot.lane.b32.xlu1 %v9866_v1, %s10507_s14 }
0x1b94   :  { %4346 = vrot.lane.b32.xlu0 %v9866_v1, %s10508_s4 }
0x1bef   :  { %v4003_v4 = vpop.xlane.xlu0 %4002 }
0x1bf0   :  { %v4004_v5 = vsub.f32 %v4000_v29, %v4003_v4  ;;  %v4170_v6 = vpop.xlane.xlu1 %4169 }
0x1bf1   :  { %v4171_v7 = vsub.f32 %v4167_v30, %v4170_v6 }
0x1bf2   :  { %v4005_v8 = vmul.f32 1.442695, %v4004_v5 }
0x1bf3   :  { %v4172_v9 = vmul.f32 1.442695, %v4171_v7 }
0x1bf4   :  { %8712 = vpow2.f32 %v4005_v8 }
0x1bf5   :  { %8714 = vpow2.f32 %v4172_v9 }
0x1bf7   :  { %v4337_v52 = vpop.xlane.xlu0 %4336 }
0x1bf8   :  { %v4338_v10 = vsub.f32 %v4334_v35, %v4337_v52 }
0x1bfa   :  { %v4339_v11 = vmul.f32 1.442695, %v4338_v10 }
0x1bfb   :  { %v4504_v12 = vpop.xlane.xlu0 %4503 }
0x1bfc   :  { %8716 = vpow2.f32 %v4339_v11  ;;  %v4505_v13 = vsub.f32 %v4501_v38, %v4504_v12 }
0x1bfe   :  { %v8713_v14 = vpop.eup %8712  ;;  %v4506_v15 = vmul.f32 1.442695, %v4505_v13 }
0x1bff   :  { %v8715_v16 = vpop.eup %8714  ;;  %v4007_v1 = vsel %vm399_vm4, %v8713_v14, 0.0  ;;  %v4685_v26 = vpop.xlane.xlu1 %4684 }
0x1c00   :  { %8718 = vpow2.f32 %v4506_v15  ;;  %4008 = vadd.xlane.f32.xlu1 %v4007_v1  ;;  %v4174_v18 = vsel %vm399_vm4, %v8715_v16, 0.0  ;;  %v4686_v27 = vsub.f32 %v4682_v45, %v4685_v26  ;;  %v7551_v26 = vld [vmem:[%s10491_s13 + $0x28] sm:$0xff] }
0x1c01   :  { %4175 = vadd.xlane.f32.xlu0 %v4174_v18 }
0x1c02   :  { %v4687_v31 = vmul.f32 1.442695, %v4686_v27 }
0x1c03   :  { %v4852_v28 = vpop.xlane.xlu0 %4851 }
0x1c04   :  { %v4853_v30 = vsub.f32 %v4849_v53, %v4852_v28  ;;  %8720 = vpow2.f32 %v4687_v31  ;;  %v7552_v28 = vld [vmem:[%s10491_s13 + $0x30] sm:$0xff] }
0x1c06   :  { %v8717_v20 = vpop.eup %8716  ;;  %v4854_v33 = vmul.f32 1.442695, %v4853_v30 }
0x1c07   :  { %v4341_v22 = vsel %vm399_vm4, %v8717_v20, 0.0  ;;  %v5019_v29 = vpop.xlane.xlu1 %5018 }
0x1c08   :  { %4342 = vadd.xlane.f32.xlu1 %v4341_v22  ;;  %v5020_v32 = vsub.f32 %v5016_v55, %v5019_v29  ;;  %8722 = vpow2.f32 %v4854_v33  ;;  %v7553_v29 = vld [vmem:[%s10491_s13 + $0x38] sm:$0xff] }
0x1c09   :  { %v8547_v30 = vpack.c.bf16 %v7553_v29, %v7552_v28 }
0x1c0a   :  { %v9975_v24 = vpop.eup %8718  ;;  %v5021_v34 = vmul.f32 1.442695, %v5020_v32 }
0x1c0b   :  { %v4508_v23 = vsel %vm399_vm4, %v9975_v24, 0.0  ;;  %v5186_v3 = vpop.xlane.xlu0 %5185  ;;  %v4514_v45 = vpop.permute.xlu1 %4513 }
0x1c0c   :  { %4509 = vadd.xlane.f32.xlu0 %v4508_v23  ;;  %v5187_v35 = vsub.f32 %v5183_v61, %v5186_v3  ;;  %8724 = vpow2.f32 %v5021_v34  ;;  %v7550_v23 = vld [vmem:[%s10491_s13 + $0x20] sm:$0xff]  ;;  %s10509_s13 = sld [smem:[#allocation31_spill]] }
0x1c0d   :  { %v8543_v27 = vpack.c.bf16 %v7551_v26, %v7550_v23 }
0x1c0e   :  { %v5188_v36 = vmul.f32 1.442695, %v5187_v35  ;;  %v8721_v19 = vpop.eup %8720 }
0x1c0f   :  { %v4689_v37 = vsel %vm399_vm4, %v8721_v19, 0.0  ;;  %v4347_v47 = vpop.permute.xlu0 %4346  ;;  %8544 = vmatprep.subr.bf16.mxu0 %v8543_v27 }
0x1c10   :  { %8726 = vpow2.f32 %v5188_v36  ;;  %8546 = vmatpush3.bf16.msra.mxu0 %v8543_v27 }
0x1c11   :  { %8548 = vmatprep.subr.bf16.mxu0 %v8547_v30 }
0x1c12   :  { %v9983_v17 = vpop.eup %8722 }
0x1c13   :  { %v4856_v39 = vsel %vm399_vm4, %v9983_v17, 0.0 }
0x1c14   :  { %8550 = vmatpush3.bf16.msra.mxu0 %v8547_v30  ;;  %v7584_v30 = vld [vmem:[%s10405_s20 + $0x1] ss:$0 sm:$0xff]  ;;  %s10512_s20 = sld [smem:[#allocation35_spill]] }
0x1c16   :  { %v9986_v38 = vpop.eup %8724 }
0x1c17   :  { %v5023_v40 = vsel %vm399_vm4, %v9986_v38, 0.0 }
0x1c19   :  { %4861 = vrot.lane.b32.xlu1 %v9880_v2, %s10506_s15 }
0x1c1a   :  { %v9992_v44 = vpop.eup %8726 }
0x1c1b   :  { %v5190_v25 = vsel %vm399_vm4, %v9992_v44, 0.0 }
0x1c22   :  { %4694 = vrot.lane.b32.xlu0 %v9880_v2, %s10505_s7 }
0x1c3d   :  { %4690 = vadd.xlane.f32.xlu1 %v4689_v37 }
0x1c41   :  { %4857 = vadd.xlane.f32.xlu0 %v4856_v39  ;;  %5024 = vadd.xlane.f32.xlu1 %v5023_v40 }
0x1c45   :  { %5191 = vadd.xlane.f32.xlu1 %v5190_v25 }
0x1c56   :  { %5195 = vrot.lane.b32.xlu1 %v9880_v2, %s10507_s14 }
0x1c57   :  { %5028 = vrot.lane.b32.xlu0 %v9880_v2, %s10508_s4 }
0x1c8d   :  { %v4009_v49 = vpop.xlane.xlu1 %4008 }
0x1c8e   :  { %8728 = vrcp.f32 %v4009_v49  ;;  %v4176_v21 = vpop.xlane.xlu0 %4175 }
0x1c8f   :  { %8730 = vrcp.f32 %v4176_v21 }
0x1c95   :  { %v4343_v51 = vpop.xlane.xlu1 %4342 }
0x1c96   :  { %8732 = vrcp.f32 %v4343_v51 }
0x1c98   :  { %v8729_v53 = vpop.eup %8728 }
0x1c99   :  { %v4011_v50 = vmul.f32 %v8729_v53, %v8713_v14  ;;  %v4510_v54 = vpop.xlane.xlu0 %4509  ;;  %v8731_v42 = vpop.eup %8730  ;;  %v8788_v53 = vld [vmem:[#allocation2] sm:$0xff] }
0x1c9a   :  { %8734 = vrcp.f32 %v4510_v54  ;;  %v4178_v2 = vmul.f32 %v8731_v42, %v8715_v16  ;;  %v4862_v58 = vpop.permute.xlu1 %4861 }
0x1c9b   :  { %8202 = vmatmul.mubr.msk.f32.vlgmr.msra.gmra.mrb[52].mxu1 %vm399_vm4, %v4011_v50  ;;  %v7579_v50 = vld [vmem:[%s10492_s10 + $0x1] ss:$0 sm:$0xff] }
0x1c9c   :  { %8210 = vmatpush3.msra.mxu1 %v9970_v63  ;;  %8211 = vmatprep.mubr.msk.f32.mxu1 %vm8990_vm3, %v8989_v43 }
0x1c9d   :  { %8219 = vmatprep.subr.mxu1 %v8989_v43  ;;  %v4695_v56 = vpop.permute.xlu0 %4694 }
0x1c9f   :  { %8212 = vmatmul.mubr.msk.f32.vlgmr.msra.gmra.mrb[54].mxu1 %vm399_vm4, %v4178_v2 }
0x1ca0   :  { %v8733_v41 = vpop.eup %8732  ;;  %8220 = vmatpush3.msra.mxu1 %v4347_v47  ;;  %8221 = vmatprep.mubr.msk.f32.mxu1 %vm8990_vm3, %v8989_v43 }
0x1ca1   :  { %v4345_v55 = vmul.f32 %v8733_v41, %v8717_v20  ;;  %8229 = vmatprep.subr.mxu1 %v8989_v43 }
0x1ca3   :  { %8222 = vmatmul.mubr.msk.f32.vlgmr.msra.gmra.mrb[56].mxu1 %vm399_vm4, %v4345_v55 }
0x1ca4   :  { %v8735_v57 = vpop.eup %8734  ;;  %8230 = vmatpush3.msra.mxu1 %v4514_v45  ;;  %8231 = vmatprep.mubr.msk.f32.mxu1 %vm8990_vm3, %v8989_v43 }
0x1ca5   :  { %v4512_v46 = vmul.f32 %v8735_v57, %v9975_v24  ;;  %8239 = vmatprep.subr.mxu1 %v8989_v43 }
0x1ca7   :  { %8232 = vmatmul.mubr.msk.f32.vlgmr.msra.gmra.mrb[58].mxu1 %vm399_vm4, %v4512_v46 }
0x1ca8   :  { %8240 = vmatpush3.msra.mxu1 %v4695_v56  ;;  %8241 = vmatprep.mubr.msk.f32.mxu1 %vm8990_vm3, %v8989_v43 }
0x1ca9   :  { %8249 = vmatprep.subr.mxu1 %v8989_v43 }
0x1cca   :  { %v4691_v61 = vpop.xlane.xlu1 %4690 }
0x1ccb   :  { %8736 = vrcp.f32 %v4691_v61 }
0x1cce   :  { %v4858_v62 = vpop.xlane.xlu0 %4857  ;;  %v5025_v63 = vpop.xlane.xlu1 %5024 }
0x1ccf   :  { %8738 = vrcp.f32 %v4858_v62 }
0x1cd0   :  { %8740 = vrcp.f32 %v5025_v63 }
0x1cd2   :  { %v5192_v4 = vpop.xlane.xlu1 %5191  ;;  %v5029_v52 = vpop.permute.xlu0 %5028 }
0x1cd3   :  { %8742 = vrcp.f32 %v5192_v4 }
0x1cd5   :  { %v8737_v5 = vpop.eup %8736 }
0x1cd6   :  { %v4693_v6 = vmul.f32 %v8737_v5, %v8721_v19  ;;  %v5196_v12 = vpop.permute.xlu1 %5195 }
0x1cd8   :  { %8242 = vmatmul.mubr.msk.f32.vlgmr.msra.gmra.mrb[60].mxu1 %vm399_vm4, %v4693_v6 }
0x1cd9   :  { %v8739_v7 = vpop.eup %8738  ;;  %8250 = vmatpush3.msra.mxu1 %v4862_v58  ;;  %8251 = vmatprep.mubr.msk.f32.mxu1 %vm8990_vm3, %v8989_v43 }
0x1cda   :  { %v4860_v8 = vmul.f32 %v8739_v7, %v9983_v17  ;;  %8259 = vmatprep.subr.mxu1 %v8989_v43  ;;  %v8741_v9 = vpop.eup %8740 }
0x1cdb   :  { %v5027_v10 = vmul.f32 %v8741_v9, %v9986_v38  ;;  %v7595_v9 = vld [vmem:[%s10493_s9 + $0x28] sm:$0xff] }
0x1cdc   :  { %8252 = vmatmul.mubr.msk.f32.vlgmr.msra.gmra.mrb[62].mxu1 %vm399_vm4, %v4860_v8 }
0x1cdd   :  { %8260 = vmatpush3.msra.mxu1 %v5029_v52  ;;  %8261 = vmatprep.mubr.msk.f32.mxu1 %vm8990_vm3, %v8989_v43  ;;  %v8743_v11 = vpop.eup %8742 }
0x1cde   :  { %8269 = vmatprep.subr.mxu1 %v8989_v43  ;;  %v5194_v13 = vmul.f32 %v8743_v11, %v9992_v44  ;;  %v7597_v11 = vld [vmem:[%s10493_s9 + $0x38] sm:$0xff] }
0x1ce0   :  { %8262 = vmatmul.mubr.msk.f32.vlgmr.msra.gmra.mrb[64].mxu1 %vm399_vm4, %v5027_v10  ;;  %v7596_v10 = vld [vmem:[%s10493_s9 + $0x30] sm:$0xff] }
0x1ce1   :  { %8270 = vmatpush3.msra.mxu1 %v5196_v12  ;;  %8271 = vmatprep.mubr.msk.f32.mxu1 %vm8990_vm3, %v8989_v43  ;;  %v8563_v12 = vpack.c.bf16 %v7597_v11, %v7596_v10 }
0x1ce4   :  { %8272 = vmatmul.mubr.msk.f32.vlgmr.msra.gmra.mrb[66].mxu1 %vm399_vm4, %v5194_v13  ;;  %v7586_v13 = vld [vmem:[%s10494_s1 + $0x20] sm:$0xff] }
0x1d6e   :  { %v4084_v14 = vpop.f32.mrb[52].mxu1 }
0x1d6f   :  { %v8203_v15 = vpop.f32.mrb[53].mxu1 }
0x1d72   :  { %v4251_v16 = vpop.f32.mrb[54].mxu1 }
0x1d73   :  { %4590 = vrot.lane.b32.xlu0 %v4251_v16, %s10499_s2  ;;  %v8213_v1 = vpop.f32.mrb[55].mxu1  ;;  %v8789_v16 = vld [vmem:[#allocation2 + $0x8] sm:$0xff] }
0x1d74   :  { %v7588_v1 = vld [vmem:[%s10494_s1 + $0x30] sm:$0xff] }
0x1d76   :  { %v4418_v18 = vpop.f32.mrb[56].mxu1 }
0x1d77   :  { %4594 = vrot.lane.b32.xlu1 %v4418_v18, %s10486_s28  ;;  %v8223_v20 = vpop.f32.mrb[57].mxu1  ;;  %v7589_v18 = vld [vmem:[%s10494_s1 + $0x38] sm:$0xff] }
0x1d78   :  { %v8555_v20 = vpack.c.bf16 %v7589_v18, %v7588_v1 }
0x1d7a   :  { %v4585_v22 = vpop.f32.mrb[58].mxu1 }
0x1d7b   :  { %4598 = vrot.lane.b32.xlu1 %v4585_v22, %s10500_s29  ;;  %v8233_v24 = vpop.f32.mrb[59].mxu1 }
0x1dab   :  { %v4766_v31 = vpop.f32.mrb[60].mxu1 }
0x1dac   :  { %v8243_v32 = vpop.f32.mrb[61].mxu1 }
0x1dad   :  { %v7585_v32 = vld [vmem:[%s10406_s21 + $0x1] ss:$0 sm:$0xff] }
0x1daf   :  { %v4933_v3 = vpop.f32.mrb[62].mxu1 }
0x1db0   :  { %5272 = vrot.lane.b32.xlu0 %v4933_v3, %s10499_s2  ;;  %v8253_v33 = vpop.f32.mrb[63].mxu1 }
0x1db3   :  { %v5100_v34 = vpop.f32.mrb[64].mxu1 }
0x1db4   :  { %5276 = vrot.lane.b32.xlu0 %v5100_v34, %s10486_s28  ;;  %v8263_v35 = vpop.f32.mrb[65].mxu1 }
0x1db7   :  { %v5267_v36 = vpop.f32.mrb[66].mxu1 }
0x1db8   :  { %5280 = vrot.lane.b32.xlu1 %v5267_v36, %s10500_s29  ;;  %v8273_v19 = vpop.f32.mrb[67].mxu1 }
0x1de5   :  { %v4591_v17 = vpop.permute.xlu0 %4590 }
0x1de6   :  { %v4601_v38 = vsel %vm399_vm4, %v4084_v14, %v4591_v17  ;;  %v7587_v14 = vld [vmem:[%s10494_s1 + $0x28] sm:$0xff]  ;;  %v7598_v17 = vld [vmem:[#allocation10 + $0x1] ss:$0 sm:$0xff] }
0x1de7   :  { %v8551_v15 = vpack.c.bf16 %v7587_v14, %v7586_v13 }
0x1de9   :  { %v4595_v37 = vpop.permute.xlu1 %4594  ;;  %8552 = vmatprep.subr.bf16.mxu1 %v8551_v15 }
0x1dea   :  { %v4602_v39 = vsel %vm1077_vm7, %v4601_v38, %v4595_v37  ;;  %8554 = vmatpush3.bf16.msra.mxu1 %v8551_v15 }
0x1deb   :  { %8556 = vmatprep.subr.bf16.mxu1 %v8555_v20 }
0x1ded   :  { %v4599_v40 = vpop.permute.xlu1 %4598 }
0x1dee   :  { %v4603_v44 = vsel %vm1079_vm8, %v4602_v39, %v4599_v40  ;;  %8558 = vmatpush3.bf16.msra.mxu1 %v8555_v20 }
0x1def   :  { %8282 = vmatprep.mubr.msk.f32.mxu0 %vm308_vm2, %v4603_v44  ;;  %8307 = vmatprep.subr.mxu1 %v8989_v43 }
0x1e22   :  { %v5273_v25 = vpop.permute.xlu0 %5272 }
0x1e23   :  { %v5283_v47 = vsel %vm399_vm4, %v4766_v31, %v5273_v25  ;;  %v7591_v25 = vld [vmem:[%s10509_s13 + $0x1] ss:$0 sm:$0xff] }
0x1e26   :  { %v5277_v45 = vpop.permute.xlu0 %5276 }
0x1e27   :  { %v5284_v49 = vsel %vm1077_vm7, %v5283_v47, %v5277_v45 }
0x1e2a   :  { %v5281_v21 = vpop.permute.xlu1 %5280 }
0x1e2b   :  { %v5285_v51 = vsel %vm1079_vm8, %v5284_v49, %v5281_v21 }
0x1e2c   :  { %8283 = vmatmul.mubr.msk.f32.vlgmr.msra.gmra.mrb[46].mxu0 %vm308_vm2, %v5285_v51 }
0x1e2d   :  { %8304 = vmatprep.mubr.msk.f32.mxu0 %vm308_vm2, %v8788_v53 }
0x1eff   :  { %v8284_v54 = vpop.f32.mrb[46].mxu0 }
0x1f00   :  { %v5370_v42 = vadd.f32 %v8284_v54, %v7579_v50  ;;  %v5364_v2 = vpop.f32.mrb[47].mxu0 }
0x1f01   :  { %v5365_v41 = vadd.f32 %v7579_v50, %v5364_v2 }
0x1f02   :  { %v5374_v55 = vadd.f32 %v5370_v42, %v9855_v60 }
0x1f03   :  { %v5373_v57 = vadd.f32 %v5365_v41, %v9853_v59  ;;  %v7594_v59 = vld [vmem:[%s10493_s9 + $0x20] sm:$0xff] }
0x1f04   :  { %v5382_v46 = vsel %vm308_vm2, %v5374_v55, 0.0  ;;  %v8559_v52 = vpack.c.bf16 %v7595_v9, %v7594_v59 }
0x1f05   :  { %5383 = vadd.xlane.f32.xlu1 %v5382_v46  ;;  %v5379_v56 = vsel %vm308_vm2, %v5373_v57, 0.0 }
0x1f06   :  { %5380 = vadd.xlane.f32.xlu0 %v5379_v56  ;;  %8560 = vmatprep.subr.bf16.mxu0 %v8559_v52 }
0x1f07   :  { %8562 = vmatpush3.bf16.msra.mxu0 %v8559_v52 }
0x1f08   :  { %8564 = vmatprep.subr.bf16.mxu0 %v8563_v12 }
0x1f0b   :  { %8566 = vmatpush3.bf16.msra.mxu0 %v8563_v12 }
0x1f0c   :  { %8317 = vmatprep.subr.mxu0 %v8989_v43 }
0x1f0e   :  { %8305 = vmatmul.mubr.msk.f32.vlgmr.msra.gmra.mrb[48].mxu0 %vm308_vm2, %v8789_v16 }
0x1f0f   :  { %8319 = vmatprep.mubr.msk.f32.mxu0 %vm8990_vm3, %v8989_v43 }
0x1f92   :  { %v5384_v58 = vpop.xlane.xlu1 %5383 }
0x1f93   :  { %v5386_v61 = vmul.f32 0.03125, %v5384_v58  ;;  %v5381_v62 = vpop.xlane.xlu0 %5380 }
0x1f94   :  { %v5385_v63 = vmul.f32 0.03125, %v5381_v62 }
0x1f95   :  { %v5388_v4 = vsub.f32 %v5374_v55, %v5386_v61 }
0x1f96   :  { %v5387_v5 = vsub.f32 %v5373_v57, %v5385_v63 }
0x1f97   :  { %v5390_v8 = vmul.f32 %v5388_v4, %v5388_v4 }
0x1f98   :  { %v5389_v6 = vmul.f32 %v5387_v5, %v5387_v5 }
0x1f99   :  { %v5394_v60 = vsel %vm308_vm2, %v5390_v8, 0.0 }
0x1f9a   :  { %v5391_v7 = vsel %vm308_vm2, %v5389_v6, 0.0 }
0x1f9b   :  { %5392 = vadd.xlane.f32.xlu0 %v5391_v7 }
0x1f9f   :  { %5395 = vadd.xlane.f32.xlu0 %v5394_v60 }
0x1fe1   :  { %v8306_v37 = vpop.f32.mrb[48].mxu0 }
0x1fe2   :  { %v10114_v38 = vadd.f32 %v8306_v37, %v7598_v17  ;;  %v5594_v39 = vpop.f32.mrb[49].mxu0 }
0x1fe3   :  { %v10116_v40 = vadd.f32 %v7598_v17, %v5594_v39 }
0x1fe5   :  { %5777 = vrot.lane.b32.xlu1 %v10116_v40, %s10503_s11 }
0x1fe9   :  { %5944 = vrot.lane.b32.xlu1 %v10116_v40, %s10502_s16 }
0x2028   :  { %v5393_v22 = vpop.xlane.xlu0 %5392 }
0x2029   :  { %v5397_v24 = vmul.f32 0.03125, %v5393_v22 }
0x202b   :  { %v5399_v23 = vadd.f32 1e-12, %v5397_v24 }
0x202c   :  { %v5396_v26 = vpop.xlane.xlu0 %5395 }
0x202d   :  { %8744 = vrsqrt.f32 %v5399_v23  ;;  %v5398_v27 = vmul.f32 0.03125, %v5396_v26 }
0x202f   :  { %v5400_v28 = vadd.f32 1e-12, %v5398_v27 }
0x2031   :  { %8746 = vrsqrt.f32 %v5400_v28 }
0x2037   :  { %v8745_v29 = vpop.eup %8744 }
0x2038   :  { %v5403_v31 = vmul.f32 %v8745_v29, %v5387_v5 }
0x203a   :  { %v5411_v3 = vmul.f32 %v7584_v30, %v5403_v31 }
0x203b   :  { %v8747_v33 = vpop.eup %8746 }
0x203c   :  { %v5404_v34 = vmul.f32 %v8747_v33, %v5388_v4  ;;  %v10104_v35 = vadd.f32 %v7585_v32, %v5411_v3 }
0x203e   :  { %v5412_v36 = vmul.f32 %v7584_v30, %v5404_v34  ;;  %8293 = vmatprep.mubr.msk.f32.mxu1 %vm308_vm2, %v10104_v35 }
0x2040   :  { %v10108_v19 = vadd.f32 %v7585_v32, %v5412_v36 }
0x2042   :  { %8294 = vmatmul.mubr.msk.f32.vlgmr.msra.gmra.mrb[68].mxu1 %vm308_vm2, %v10108_v19 }
0x2043   :  { %8309 = vmatprep.mubr.msk.f32.mxu1 %vm8990_vm3, %v8989_v43  ;;  %8308 = vmatpush3.xpose.msk.msra.mxu1 %vm399_vm4, %v10116_v40 }
0x2044   :  { %8312 = vmatprep.subr.mxu1 %v8989_v43 }
0x2057   :  { %v5778_v44 = vpop.permute.xlu1 %5777 }
0x2058   :  { %8318 = vmatpush3.xpose.msk.msra.mxu0 %vm399_vm4, %v5778_v44 }
0x2059   :  { %8327 = vmatprep.subr.mxu0 %v8989_v43 }
0x205b   :  { %v5945_v51 = vpop.permute.xlu1 %5944 }
0x2115   :  { %v8295_v45 = vpop.f32.mrb[68].mxu1 }
0x2116   :  { %v5506_v47 = vpop.f32.mrb[69].mxu1  ;;  %v5512_v21 = vadd.f32 %v8295_v45, %v7591_v25 }
0x2117   :  { %v5507_v49 = vadd.f32 %v7591_v25, %v5506_v47 }
0x2119   :  { %5942 = vrot.lane.b32.xlu1 %v5507_v49, %s10502_s16  ;;  %5775 = vrot.lane.b32.xlu0 %v5507_v49, %s10503_s11 }
0x211a   :  { %8310 = vmatmul.mubr.msk.f32.vlgmr.msra.gmra.mrb[70].mxu1 %vm399_vm4, %v5507_v49 }
0x211b   :  { %8314 = vmatprep.mubr.msk.f32.mxu1 %vm8990_vm3, %v8989_v43 }
0x211d   :  { %6109 = vrot.lane.b32.xlu1 %v5507_v49, %s10504_s26  ;;  %6111 = vrot.lane.b32.xlu0 %v10116_v40, %s10504_s26 }
0x2121   :  { %6456 = vrot.lane.b32.xlu1 %v5512_v21, %s10503_s11  ;;  %6458 = vrot.lane.b32.xlu0 %v10114_v38, %s10503_s11 }
0x2125   :  { %6623 = vrot.lane.b32.xlu1 %v5512_v21, %s10502_s16  ;;  %6625 = vrot.lane.b32.xlu0 %v10114_v38, %s10502_s16 }
0x2129   :  { %6790 = vrot.lane.b32.xlu1 %v5512_v21, %s10504_s26  ;;  %6792 = vrot.lane.b32.xlu0 %v10114_v38, %s10504_s26 }
0x212d   :  { %5866 = vrot.lane.b32.xlu1 %v10116_v40, %s10501_s5  ;;  %5699 = vrot.lane.b32.xlu0 %v10116_v40, %s10496_s27 }
0x218b   :  { %v5943_v53 = vpop.permute.xlu1 %5942  ;;  %v5776_v50 = vpop.permute.xlu0 %5775 }
0x218c   :  { %8320 = vmatmul.mubr.msk.f32.vlgmr.msra.gmra.mrb[50].mxu0 %vm399_vm4, %v5776_v50 }
0x218d   :  { %8328 = vmatpush3.xpose.msk.msra.mxu0 %vm399_vm4, %v5945_v51  ;;  %8329 = vmatprep.mubr.msk.f32.mxu0 %vm8990_vm3, %v8989_v43 }
0x218e   :  { %8337 = vmatprep.subr.mxu0 %v8989_v43 }
0x218f   :  { %v6112_v54 = vpop.permute.xlu0 %6111  ;;  %v6110_v42 = vpop.permute.xlu1 %6109 }
0x2190   :  { %8330 = vmatmul.mubr.msk.f32.vlgmr.msra.gmra.mrb[52].mxu0 %vm399_vm4, %v5943_v53 }
0x2191   :  { %8338 = vmatpush3.xpose.msk.msra.mxu0 %vm399_vm4, %v6112_v54  ;;  %8339 = vmatprep.mubr.msk.f32.mxu0 %vm8990_vm3, %v8989_v43 }
0x2192   :  { %8347 = vmatprep.subr.mxu0 %v8989_v43 }
0x2193   :  { %v6459_v2 = vpop.permute.xlu0 %6458  ;;  %v6457_v41 = vpop.permute.xlu1 %6456 }
0x2194   :  { %8340 = vmatmul.mubr.msk.f32.vlgmr.msra.gmra.mrb[54].mxu0 %vm399_vm4, %v6110_v42 }
0x2195   :  { %8348 = vmatpush3.xpose.msk.msra.mxu0 %vm399_vm4, %v10114_v38  ;;  %8349 = vmatprep.mubr.msk.f32.mxu0 %vm8990_vm3, %v8989_v43 }
0x2196   :  { %8357 = vmatprep.subr.mxu0 %v8989_v43 }
0x2197   :  { %v6626_v55 = vpop.permute.xlu0 %6625  ;;  %v6624_v46 = vpop.permute.xlu1 %6623 }
0x2198   :  { %8350 = vmatmul.mubr.msk.f32.vlgmr.msra.gmra.mrb[56].mxu0 %vm399_vm4, %v5512_v21 }
0x2199   :  { %8358 = vmatpush3.xpose.msk.msra.mxu0 %vm399_vm4, %v6459_v2  ;;  %8359 = vmatprep.mubr.msk.f32.mxu0 %vm8990_vm3, %v8989_v43 }
0x219a   :  { %8367 = vmatprep.subr.mxu0 %v8989_v43 }
0x219b   :  { %v6793_v57 = vpop.permute.xlu0 %6792  ;;  %v6791_v58 = vpop.permute.xlu1 %6790 }
0x219c   :  { %8360 = vmatmul.mubr.msk.f32.vlgmr.msra.gmra.mrb[58].mxu0 %vm399_vm4, %v6457_v41 }
0x219d   :  { %8368 = vmatpush3.xpose.msk.msra.mxu0 %vm399_vm4, %v6626_v55  ;;  %8369 = vmatprep.mubr.msk.f32.mxu0 %vm8990_vm3, %v8989_v43 }
0x219e   :  { %8377 = vmatprep.subr.mxu0 %v8989_v43 }
0x219f   :  { %v5700_v56 = vpop.permute.xlu0 %5699  ;;  %v5867_v21 = vpop.permute.xlu1 %5866 }
0x21a0   :  { %8313 = vmatpush3.msra.mxu1 %v5700_v56  ;;  %8370 = vmatmul.mubr.msk.f32.vlgmr.msra.gmra.mrb[60].mxu0 %vm399_vm4, %v6624_v46 }
0x21a1   :  { %8378 = vmatpush3.xpose.msk.msra.mxu0 %vm399_vm4, %v6793_v57  ;;  %8379 = vmatprep.mubr.msk.f32.mxu0 %vm8990_vm3, %v8989_v43 }
0x21a2   :  { %8322 = vmatprep.subr.mxu1 %v8989_v43 }
0x21a4   :  { %8380 = vmatmul.mubr.msk.f32.vlgmr.msra.gmra.mrb[62].mxu0 %vm399_vm4, %v6791_v58 }
0x21ed   :  { %v5682_v61 = vpop.f32.mrb[70].mxu1 }
0x21ee   :  { %v5686_v62 = vmul.f32 0.35355338, %v5682_v61  ;;  %v8311_v63 = vpop.f32.mrb[71].mxu1 }
0x21f0   :  { %v5687_v4 = vsel %vm2087_vm9, %v5686_v62, -10000.0 }
0x21f1   :  { %v5688_v5 = vsel %vm399_vm4, %v5687_v4, -inf }
0x21f2   :  { %5689 = vmax.xlane.f32.xlu0 %v5688_v5 }
0x225f   :  { %v5849_v6 = vpop.f32.mrb[50].mxu0 }
0x2260   :  { %v5853_v7 = vmul.f32 0.35355338, %v5849_v6  ;;  %v8321_v8 = vpop.f32.mrb[51].mxu0 }
0x2262   :  { %v5854_v60 = vsel %vm2087_vm9, %v5853_v7, -10000.0 }
0x2263   :  { %v6016_v59 = vpop.f32.mrb[52].mxu0  ;;  %v5855_v9 = vsel %vm399_vm4, %v5854_v60, -inf }
0x2264   :  { %v6020_v52 = vmul.f32 0.35355338, %v6016_v59  ;;  %5856 = vmax.xlane.f32.xlu1 %v5855_v9  ;;  %v8331_v10 = vpop.f32.mrb[53].mxu0 }
0x2266   :  { %v6021_v11 = vsel %vm2087_vm9, %v6020_v52, -10000.0 }
0x2267   :  { %v6183_v12 = vpop.f32.mrb[54].mxu0  ;;  %v6022_v13 = vsel %vm399_vm4, %v6021_v11, -inf }
0x2268   :  { %v6187_v14 = vmul.f32 0.35355338, %v6183_v12  ;;  %v8341_v15 = vpop.f32.mrb[55].mxu0  ;;  %6023 = vmax.xlane.f32.xlu0 %v6022_v13 }
0x226a   :  { %v6188_v16 = vsel %vm2087_vm9, %v6187_v14, -10000.0 }
0x226b   :  { %v6363_v1 = vpop.f32.mrb[56].mxu0  ;;  %v6189_v18 = vsel %vm399_vm4, %v6188_v16, -inf }
0x226c   :  { %v6367_v20 = vmul.f32 0.35355338, %v6363_v1  ;;  %v8351_v22 = vpop.f32.mrb[57].mxu0  ;;  %6190 = vmax.xlane.f32.xlu0 %v6189_v18 }
0x226e   :  { %v6368_v24 = vsel %vm2769_vm10, %v6367_v20, -10000.0 }
0x226f   :  { %v6530_v23 = vpop.f32.mrb[58].mxu0  ;;  %v6369_v26 = vsel %vm399_vm4, %v6368_v24, -inf }
0x2270   :  { %v6534_v27 = vmul.f32 0.35355338, %v6530_v23  ;;  %6370 = vmax.xlane.f32.xlu1 %v6369_v26  ;;  %v8361_v28 = vpop.f32.mrb[59].mxu0 }
0x2272   :  { %v6535_v29 = vsel %vm2769_vm10, %v6534_v27, -10000.0 }
0x2273   :  { %v6697_v48 = vpop.f32.mrb[60].mxu0  ;;  %v6536_v30 = vsel %vm399_vm4, %v6535_v29, -inf }
0x2274   :  { %v6701_v31 = vmul.f32 0.35355338, %v6697_v48  ;;  %v8371_v32 = vpop.f32.mrb[61].mxu0  ;;  %6537 = vmax.xlane.f32.xlu0 %v6536_v30 }
0x2276   :  { %v6702_v3 = vsel %vm2769_vm10, %v6701_v31, -10000.0 }
0x2277   :  { %v6864_v33 = vpop.f32.mrb[62].mxu0  ;;  %v6703_v34 = vsel %vm399_vm4, %v6702_v3, -inf }
0x2278   :  { %v6868_v36 = vmul.f32 0.35355338, %v6864_v33  ;;  %6704 = vmax.xlane.f32.xlu1 %v6703_v34  ;;  %v8381_v17 = vpop.f32.mrb[63].mxu0 }
0x227a   :  { %v6869_v37 = vsel %vm2769_vm10, %v6868_v36, -10000.0 }
0x227b   :  { %v6870_v39 = vsel %vm399_vm4, %v6869_v37, -inf }
0x227c   :  { %6871 = vmax.xlane.f32.xlu0 %v6870_v39 }
0x227f   :  { %v5690_v44 = vpop.xlane.xlu0 %5689 }
0x2280   :  { %v5691_v25 = vsub.f32 %v5687_v4, %v5690_v44 }
0x2282   :  { %v5692_v45 = vmul.f32 1.442695, %v5691_v25 }
0x2284   :  { %8748 = vpow2.f32 %v5692_v45 }
0x2289   :  { %6200 = vrot.lane.b32.xlu1 %v10116_v40, %s10497_s8 }
0x228e   :  { %v8749_v47 = vpop.eup %8748 }
0x228f   :  { %v5694_v49 = vsel %vm399_vm4, %v8749_v47, 0.0 }
0x2292   :  { %6033 = vrot.lane.b32.xlu0 %v10116_v40, %s10498_s3 }
0x22ad   :  { %5695 = vadd.xlane.f32.xlu1 %v5694_v49 }
0x22f1   :  { %v5857_v0 = vpop.xlane.xlu1 %5856 }
0x22f2   :  { %v5858_v51 = vsub.f32 %v5854_v60, %v5857_v0 }
0x22f4   :  { %v5859_v53 = vmul.f32 1.442695, %v5858_v51 }
0x22f5   :  { %v6024_v50 = vpop.xlane.xlu0 %6023 }
0x22f6   :  { %8750 = vpow2.f32 %v5859_v53  ;;  %v6025_v54 = vsub.f32 %v6021_v11, %v6024_v50 }
0x22f8   :  { %v6026_v42 = vmul.f32 1.442695, %v6025_v54 }
0x22f9   :  { %v6191_v2 = vpop.xlane.xlu0 %6190 }
0x22fa   :  { %8752 = vpow2.f32 %v6026_v42  ;;  %v6192_v41 = vsub.f32 %v6188_v16, %v6191_v2 }
0x22fc   :  { %v6193_v40 = vmul.f32 1.442695, %v6192_v41 }
0x22fd   :  { %v6371_v62 = vpop.xlane.xlu1 %6370 }
0x22fe   :  { %8754 = vpow2.f32 %v6193_v40  ;;  %v6372_v63 = vsub.f32 %v6368_v24, %v6371_v62 }
0x2300   :  { %v8751_v55 = vpop.eup %8750  ;;  %v6373_v7 = vmul.f32 1.442695, %v6372_v63 }
0x2301   :  { %v5861_v57 = vsel %vm399_vm4, %v8751_v55, 0.0  ;;  %v6538_v4 = vpop.xlane.xlu0 %6537 }
0x2302   :  { %5862 = vadd.xlane.f32.xlu0 %v5861_v57  ;;  %v6539_v6 = vsub.f32 %v6535_v29, %v6538_v4  ;;  %8756 = vpow2.f32 %v6373_v7 }
0x2304   :  { %v8753_v46 = vpop.eup %8752  ;;  %v6540_v59 = vmul.f32 1.442695, %v6539_v6 }
0x2305   :  { %v6028_v56 = vsel %vm399_vm4, %v8753_v46, 0.0  ;;  %v6705_v5 = vpop.xlane.xlu1 %6704 }
0x2306   :  { %6029 = vadd.xlane.f32.xlu1 %v6028_v56  ;;  %v6706_v8 = vsub.f32 %v6702_v3, %v6705_v5  ;;  %8758 = vpow2.f32 %v6540_v59 }
0x2308   :  { %v10214_v58 = vpop.eup %8754  ;;  %v6707_v9 = vmul.f32 1.442695, %v6706_v8 }
0x2309   :  { %v6195_v61 = vsel %vm399_vm4, %v10214_v58, 0.0  ;;  %v6872_v60 = vpop.xlane.xlu0 %6871  ;;  %v6201_v11 = vpop.permute.xlu1 %6200 }
0x230a   :  { %6196 = vadd.xlane.f32.xlu0 %v6195_v61  ;;  %v6873_v52 = vsub.f32 %v6869_v37, %v6872_v60  ;;  %8760 = vpow2.f32 %v6707_v9 }
0x230c   :  { %v6874_v10 = vmul.f32 1.442695, %v6873_v52  ;;  %v8757_v12 = vpop.eup %8756 }
0x230d   :  { %v6375_v15 = vsel %vm399_vm4, %v8757_v12, 0.0  ;;  %v6034_v26 = vpop.permute.xlu0 %6033 }
0x230e   :  { %8762 = vpow2.f32 %v6874_v10 }
0x2310   :  { %v10222_v13 = vpop.eup %8758 }
0x2311   :  { %v6542_v18 = vsel %vm399_vm4, %v10222_v13, 0.0 }
0x2314   :  { %v10225_v16 = vpop.eup %8760 }
0x2315   :  { %v6709_v1 = vsel %vm399_vm4, %v10225_v16, 0.0 }
0x2317   :  { %6547 = vrot.lane.b32.xlu1 %v10114_v38, %s10501_s5 }
0x2318   :  { %v10231_v20 = vpop.eup %8762 }
0x2319   :  { %v6876_v22 = vsel %vm399_vm4, %v10231_v20, 0.0 }
0x2320   :  { %6380 = vrot.lane.b32.xlu0 %v10114_v38, %s10496_s27 }
0x233a   :  { %v5696_v14 = vpop.xlane.xlu1 %5695 }
0x233b   :  { %8764 = vrcp.f32 %v5696_v14  ;;  %6376 = vadd.xlane.f32.xlu1 %v6375_v15 }
0x233f   :  { %6710 = vadd.xlane.f32.xlu1 %v6709_v1  ;;  %6543 = vadd.xlane.f32.xlu0 %v6542_v18 }
0x2343   :  { %6877 = vadd.xlane.f32.xlu1 %v6876_v22 }
0x2345   :  { %v8765_v24 = vpop.eup %8764 }
0x2346   :  { %v5698_v23 = vmul.f32 %v8765_v24, %v8749_v47  ;;  %v7629_v24 = vld [vmem:[#allocation11 + $0x1] ss:$0 sm:$0xff] }
0x2348   :  { %8315 = vmatmul.mubr.msk.f32.vlgmr.msra.gmra.mrb[72].mxu1 %vm399_vm4, %v5698_v23 }
0x2349   :  { %8323 = vmatpush3.msra.mxu1 %v5867_v21  ;;  %8324 = vmatprep.mubr.msk.f32.mxu1 %vm8990_vm3, %v8989_v43 }
0x234a   :  { %8332 = vmatprep.subr.mxu1 %v8989_v43 }
0x2354   :  { %6881 = vrot.lane.b32.xlu1 %v10114_v38, %s10497_s8 }
0x2355   :  { %6714 = vrot.lane.b32.xlu0 %v10114_v38, %s10498_s3  ;;  %s10510_s3 = sld [smem:[#allocation33_spill]] }
0x235b   :  { %v7602_v56 = vld [vmem:[%s10510_s3 + $0x28] sm:$0xff]  ;;  %v7603_v61 = vld [vmem:[%s10510_s3 + $0x30] sm:$0xff]  ;;  %v7604_v62 = vld [vmem:[%s10510_s3 + $0x38] sm:$0xff] }
0x235c   :  { %v8571_v63 = vpack.c.bf16 %v7604_v62, %v7603_v61  ;;  %v7634_v61 = vld [vmem:[%s10407_s22 + $0x1] ss:$0 sm:$0xff] }
0x238f   :  { %v5863_v27 = vpop.xlane.xlu0 %5862 }
0x2390   :  { %8766 = vrcp.f32 %v5863_v27 }
0x2393   :  { %v6030_v28 = vpop.xlane.xlu1 %6029 }
0x2394   :  { %8768 = vrcp.f32 %v6030_v28 }
0x2397   :  { %v6197_v29 = vpop.xlane.xlu0 %6196  ;;  %v6548_v34 = vpop.permute.xlu1 %6547 }
0x2398   :  { %8770 = vrcp.f32 %v6197_v29 }
0x239a   :  { %v8767_v48 = vpop.eup %8766 }
0x239b   :  { %v5865_v30 = vmul.f32 %v8767_v48, %v8751_v55  ;;  %v6381_v33 = vpop.permute.xlu0 %6380 }
0x239d   :  { %8325 = vmatmul.mubr.msk.f32.vlgmr.msra.gmra.mrb[74].mxu1 %vm399_vm4, %v5865_v30 }
0x239e   :  { %v8769_v31 = vpop.eup %8768  ;;  %8333 = vmatpush3.msra.mxu1 %v6034_v26  ;;  %8334 = vmatprep.mubr.msk.f32.mxu1 %vm8990_vm3, %v8989_v43 }
0x239f   :  { %v6032_v32 = vmul.f32 %v8769_v31, %v8753_v46  ;;  %8342 = vmatprep.subr.mxu1 %v8989_v43 }
0x23a1   :  { %8335 = vmatmul.mubr.msk.f32.vlgmr.msra.gmra.mrb[76].mxu1 %vm399_vm4, %v6032_v32 }
0x23a2   :  { %v8771_v38 = vpop.eup %8770  ;;  %8343 = vmatpush3.msra.mxu1 %v6201_v11  ;;  %8344 = vmatprep.mubr.msk.f32.mxu1 %vm8990_vm3, %v8989_v43 }
0x23a3   :  { %v6199_v3 = vmul.f32 %v8771_v38, %v10214_v58  ;;  %8352 = vmatprep.subr.mxu1 %v8989_v43 }
0x23a5   :  { %8345 = vmatmul.mubr.msk.f32.vlgmr.msra.gmra.mrb[78].mxu1 %vm399_vm4, %v6199_v3 }
0x23a6   :  { %8353 = vmatpush3.msra.mxu1 %v6381_v33  ;;  %8354 = vmatprep.mubr.msk.f32.mxu1 %vm8990_vm3, %v8989_v43 }
0x23a7   :  { %8362 = vmatprep.subr.mxu1 %v8989_v43 }
0x23c8   :  { %v6377_v36 = vpop.xlane.xlu1 %6376 }
0x23c9   :  { %8772 = vrcp.f32 %v6377_v36 }
0x23cc   :  { %v6711_v17 = vpop.xlane.xlu1 %6710  ;;  %v6544_v37 = vpop.xlane.xlu0 %6543 }
0x23cd   :  { %8774 = vrcp.f32 %v6544_v37 }
0x23ce   :  { %8776 = vrcp.f32 %v6711_v17 }
0x23d0   :  { %v6878_v39 = vpop.xlane.xlu1 %6877  ;;  %v6715_v21 = vpop.permute.xlu0 %6714 }
0x23d1   :  { %8778 = vrcp.f32 %v6878_v39 }
0x23d3   :  { %v8773_v44 = vpop.eup %8772 }
0x23d4   :  { %v6379_v25 = vmul.f32 %v8773_v44, %v8757_v12  ;;  %v6882_v53 = vpop.permute.xlu1 %6881  ;;  %v7109_v44 = vld [vmem:[#allocation13 + $0x28] sm:$0xff] }
0x23d6   :  { %8355 = vmatmul.mubr.msk.f32.vlgmr.msra.gmra.mrb[80].mxu1 %vm399_vm4, %v6379_v25 }
0x23d7   :  { %8363 = vmatpush3.msra.mxu1 %v6548_v34  ;;  %8364 = vmatprep.mubr.msk.f32.mxu1 %vm8990_vm3, %v8989_v43  ;;  %v8775_v45 = vpop.eup %8774 }
0x23d8   :  { %8372 = vmatprep.subr.mxu1 %v8989_v43  ;;  %v6546_v47 = vmul.f32 %v8775_v45, %v10222_v13  ;;  %v8777_v49 = vpop.eup %8776  ;;  %v7110_v45 = vld [vmem:[#allocation13 + $0x30] sm:$0xff] }
0x23d9   :  { %v6713_v0 = vmul.f32 %v8777_v49, %v10225_v16 }
0x23da   :  { %8365 = vmatmul.mubr.msk.f32.vlgmr.msra.gmra.mrb[82].mxu1 %vm399_vm4, %v6546_v47  ;;  %v7111_v47 = vld [vmem:[#allocation13 + $0x38] sm:$0xff] }
0x23db   :  { %8373 = vmatpush3.msra.mxu1 %v6715_v21  ;;  %8374 = vmatprep.mubr.msk.f32.mxu1 %vm8990_vm3, %v8989_v43  ;;  %v8779_v51 = vpop.eup %8778  ;;  %v8579_v49 = vpack.c.bf16 %v7111_v47, %v7110_v45  ;;  %v7640_v21 = vld [vmem:[%s10403_s18 + $0x40] sm:$0xff] }
0x23dc   :  { %8382 = vmatprep.subr.mxu1 %v8989_v43  ;;  %v6880_v50 = vmul.f32 %v8779_v51, %v10231_v20  ;;  %v7642_v51 = vld [vmem:[%s10403_s18 + $0x50] sm:$0xff] }
0x23de   :  { %8375 = vmatmul.mubr.msk.f32.vlgmr.msra.gmra.mrb[84].mxu1 %vm399_vm4, %v6713_v0  ;;  %v7641_v0 = vld [vmem:[%s10403_s18 + $0x48] sm:$0xff] }
0x23df   :  { %8383 = vmatpush3.msra.mxu1 %v6882_v53  ;;  %8384 = vmatprep.mubr.msk.f32.mxu1 %vm8990_vm3, %v8989_v43  ;;  %v7601_v43 = vld [vmem:[%s10510_s3 + $0x20] sm:$0xff]  ;;  %v8583_v53 = vpack.c.bf16 %v7641_v0, %v7640_v21 }
0x23e0   :  { %v8567_v58 = vpack.c.bf16 %v7602_v56, %v7601_v43 }
0x23e2   :  { %8385 = vmatmul.mubr.msk.f32.vlgmr.msra.gmra.mrb[86].mxu1 %vm399_vm4, %v6880_v50  ;;  %8568 = vmatprep.subr.bf16.mxu0 %v8567_v58  ;;  %v7643_v50 = vld [vmem:[%s10403_s18 + $0x58] sm:$0xff] }
0x23e3   :  { %8570 = vmatpush3.bf16.msra.mxu0 %v8567_v58 }
0x23e4   :  { %8572 = vmatprep.subr.bf16.mxu0 %v8571_v63 }
0x23e7   :  { %8574 = vmatpush3.bf16.msra.mxu0 %v8571_v63  ;;  %v7635_v63 = vld [vmem:[%s10408_s23 + $0x1] ss:$0 sm:$0xff] }
0x23e8   :  { %8584 = vmatprep.subr.bf16.mxu0 %v8583_v53 }
0x241b   :  { %v5771_v54 = vpop.f32.mrb[72].mxu1 }
0x241c   :  { %v8316_v42 = vpop.f32.mrb[73].mxu1 }
0x241d   :  { %v7644_v42 = vld [vmem:[%s10403_s18 + $0x60] sm:$0xff] }
0x2470   :  { %v5938_v2 = vpop.f32.mrb[74].mxu1 }
0x2471   :  { %6277 = vrot.lane.b32.xlu0 %v5938_v2, %s10499_s2  ;;  %v8326_v41 = vpop.f32.mrb[75].mxu1  ;;  %v7645_v2 = vld [vmem:[%s10403_s18 + $0x68] sm:$0xff] }
0x2472   :  { %v8591_v41 = vpack.c.bf16 %v7645_v2, %v7644_v42  ;;  %v7655_v2 = vld [vmem:[%s10410_s25 + $0x1] ss:$0 sm:$0xff] }
0x2474   :  { %v6105_v40 = vpop.f32.mrb[76].mxu1 }
0x2475   :  { %6281 = vrot.lane.b32.xlu1 %v6105_v40, %s10486_s28  ;;  %v8336_v55 = vpop.f32.mrb[77].mxu1 }
0x2478   :  { %v6272_v57 = vpop.f32.mrb[78].mxu1 }
0x2479   :  { %6285 = vrot.lane.b32.xlu1 %v6272_v57, %s10500_s29  ;;  %v8346_v46 = vpop.f32.mrb[79].mxu1 }
0x24a9   :  { %v6452_v4 = vpop.f32.mrb[80].mxu1 }
0x24aa   :  { %v8356_v5 = vpop.f32.mrb[81].mxu1 }
0x24ad   :  { %v6619_v6 = vpop.f32.mrb[82].mxu1 }
0x24ae   :  { %6958 = vrot.lane.b32.xlu0 %v6619_v6, %s10499_s2  ;;  %v8366_v7 = vpop.f32.mrb[83].mxu1 }
0x24b1   :  { %v6786_v8 = vpop.f32.mrb[84].mxu1 }
0x24b2   :  { %6962 = vrot.lane.b32.xlu0 %v6786_v8, %s10486_s28  ;;  %v8376_v60 = vpop.f32.mrb[85].mxu1 }
0x24b5   :  { %v6953_v59 = vpop.f32.mrb[86].mxu1 }
0x24b6   :  { %6966 = vrot.lane.b32.xlu1 %v6953_v59, %s10500_s29  ;;  %v8386_v9 = vpop.f32.mrb[87].mxu1  ;;  %v7646_v59 = vld [vmem:[%s10403_s18 + $0x70] sm:$0xff] }
0x24b7   :  { %v7647_v9 = vld [vmem:[%s10403_s18 + $0x78] sm:$0xff] }
0x24e3   :  { %v6278_v52 = vpop.permute.xlu0 %6277 }
0x24e4   :  { %v6288_v11 = vsel %vm399_vm4, %v5771_v54, %v6278_v52  ;;  %v8587_v54 = vpack.c.bf16 %v7643_v50, %v7642_v51  ;;  %v8595_v52 = vpack.c.bf16 %v7647_v9, %v7646_v59 }
0x24e7   :  { %v6282_v10 = vpop.permute.xlu1 %6281 }
0x24e8   :  { %v6289_v12 = vsel %vm1077_vm7, %v6288_v11, %v6282_v10  ;;  %v7637_v10 = vld [vmem:[%s10402_s17 + $0x1] ss:$0 sm:$0xff] }
0x24eb   :  { %v6286_v13 = vpop.permute.xlu1 %6285 }
0x24ec   :  { %v6290_v14 = vsel %vm1079_vm8, %v6289_v12, %v6286_v13 }
0x24ed   :  { %8395 = vmatprep.mubr.msk.f32.mxu0 %vm308_vm2, %v6290_v14 }
0x2520   :  { %v6959_v15 = vpop.permute.xlu0 %6958 }
0x2521   :  { %v6969_v1 = vsel %vm399_vm4, %v6452_v4, %v6959_v15 }
0x2524   :  { %v6963_v16 = vpop.permute.xlu0 %6962 }
0x2525   :  { %v6970_v18 = vsel %vm1077_vm7, %v6969_v1, %v6963_v16  ;;  %v7649_v1 = vld [vmem:[%s10404_s19 + $0x1] ss:$0 sm:$0xff]  ;;  %s10511_s19 = sld [smem:[#allocation34_spill]] }
0x2528   :  { %v6967_v20 = vpop.permute.xlu1 %6966 }
0x2529   :  { %v6971_v22 = vsel %vm1079_vm8, %v6970_v18, %v6967_v20 }
0x252a   :  { %8396 = vmatmul.mubr.msk.f32.vlgmr.msra.gmra.mrb[64].mxu0 %vm308_vm2, %v6971_v22 }
0x252b   :  { %8586 = vmatpush3.bf16.msra.mxu0 %v8583_v53  ;;  %v7654_v53 = vld [vmem:[%s10409_s24 + $0x1] ss:$0 sm:$0xff]  ;;  %s9003_s24 = smov [#allocation14]  }
0x252c   :  { %8588 = vmatprep.subr.bf16.mxu0 %v8587_v54  ;;  %s7448_s21 = sshll.u32 %s9003_s24, 4  ;;  %s7449_s21 = int_to_ptr.vmem [resolvable:$true] %s7448_s21 }
0x252d   :  { %s8944_s25 = scalar_lea.vmem %s7449_s21, 256  ;;  %p8949_p1 = scmp.lt.s32.totalorder %s7449_s21, %s7449_s21 }
0x252e   :  { %p8945_p0 = scmp.ne.s32.totalorder %s7449_s21, %s8944_s25  ;;  %p8950_p2 = scmp.lt.s32.totalorder %s8944_s25, %s8944_s25 }
0x252f   :  { %8590 = vmatpush3.bf16.msra.mxu0 %v8587_v54 }
0x2530   :  { %8592 = vmatprep.subr.bf16.mxu0 %v8591_v41  ;;  %p8951_p3 = por %p8950_p2, %p8949_p1 }
0x2532   :  { %p8952_p4 = pnand %p8951_p3, %p8945_p0 }
0x2533   :  { %8594 = vmatpush3.bf16.msra.mxu0 %v8591_v41 }
0x2534   :  { %8596 = vmatprep.subr.bf16.mxu0 %v8595_v52 }
0x2537   :  { %8598 = vmatpush3.bf16.msra.mxu0 %v8595_v52 }
0x25fd   :  { %v8397_v23 = vpop.f32.mrb[64].mxu0 }
0x25fe   :  { %v7056_v26 = vadd.f32 %v8397_v23, %v7629_v24  ;;  %v7050_v27 = vpop.f32.mrb[65].mxu0 }
0x25ff   :  { %v7051_v28 = vadd.f32 %v7629_v24, %v7050_v27 }
0x2600   :  { %v7060_v29 = vadd.f32 %v7056_v26, %v10108_v19 }
0x2601   :  { %v7059_v48 = vadd.f32 %v7051_v28, %v10104_v35  ;;  %v7108_v35 = vld [vmem:[#allocation13 + $0x20] sm:$0xff] }
0x2602   :  { %v7068_v30 = vsel %vm308_vm2, %v7060_v29, 0.0  ;;  %v8575_v25 = vpack.c.bf16 %v7109_v44, %v7108_v35  ;;  %v7352_v35 = vld [vmem:[%s10511_s19 + $0x18] sm:$0xff] }
0x2603   :  { %7069 = vadd.xlane.f32.xlu1 %v7068_v30  ;;  %v7065_v31 = vsel %vm308_vm2, %v7059_v48, 0.0 }
0x2604   :  { %7066 = vadd.xlane.f32.xlu0 %v7065_v31  ;;  %8576 = vmatprep.subr.bf16.mxu1 %v8575_v25 }
0x2605   :  { %8578 = vmatpush3.bf16.msra.mxu1 %v8575_v25 }
0x2606   :  { %8580 = vmatprep.subr.bf16.mxu1 %v8579_v49 }
0x2609   :  { %8582 = vmatpush3.bf16.msra.mxu1 %v8579_v49 }
0x2690   :  { %v7070_v32 = vpop.xlane.xlu1 %7069 }
0x2691   :  { %v7072_v38 = vmul.f32 0.03125, %v7070_v32  ;;  %v7067_v3 = vpop.xlane.xlu0 %7066 }
0x2692   :  { %v7071_v33 = vmul.f32 0.03125, %v7067_v3 }
0x2693   :  { %v7074_v34 = vsub.f32 %v7060_v29, %v7072_v38 }
0x2694   :  { %v7073_v36 = vsub.f32 %v7059_v48, %v7071_v33 }
0x2695   :  { %v7076_v39 = vmul.f32 %v7074_v34, %v7074_v34 }
0x2696   :  { %v7075_v17 = vmul.f32 %v7073_v36, %v7073_v36 }
0x2697   :  { %v7080_v19 = vsel %vm308_vm2, %v7076_v39, 0.0 }
0x2698   :  { %v7077_v37 = vsel %vm308_vm2, %v7075_v17, 0.0  ;;  %v7349_v17 = vld [vmem:[%s10511_s19] sm:$0xff] }
0x2699   :  { %7078 = vadd.xlane.f32.xlu0 %v7077_v37  ;;  %v7350_v37 = vld [vmem:[%s10511_s19 + $0x8] sm:$0xff] }
0x269a   :  { %v8599_v39 = vpack.c.bf16 %v7350_v37, %v7349_v17 }
0x269c   :  { %8600 = vmatprep.subr.bf16.mxu1 %v8599_v39 }
0x269d   :  { %7081 = vadd.xlane.f32.xlu0 %v7080_v19  ;;  %v7351_v19 = vld [vmem:[%s10511_s19 + $0x10] sm:$0xff] }
0x269e   :  { %v8603_v44 = vpack.c.bf16 %v7352_v35, %v7351_v19 }
0x2726   :  { %v7079_v40 = vpop.xlane.xlu0 %7078 }
0x2727   :  { %v7083_v55 = vmul.f32 0.03125, %v7079_v40 }
0x2729   :  { %v7085_v57 = vadd.f32 1e-12, %v7083_v55 }
0x272a   :  { %v7082_v46 = vpop.xlane.xlu0 %7081 }
0x272b   :  { %8780 = vrsqrt.f32 %v7085_v57  ;;  %v7084_v43 = vmul.f32 0.03125, %v7082_v46  ;;  %v7656_v46 = vld [vmem:[%s10512_s20] ss:$0 sm:$0xff] }
0x272d   :  { %v7086_v56 = vadd.f32 1e-12, %v7084_v43 }
0x272f   :  { %8782 = vrsqrt.f32 %v7086_v56 }
0x2735   :  { %v8781_v58 = vpop.eup %8780 }
0x2736   :  { %v7089_v62 = vmul.f32 %v8781_v58, %v7073_v36 }
0x2738   :  { %v7097_v4 = vmul.f32 %v7634_v61, %v7089_v62 }
0x2739   :  { %v8783_v5 = vpop.eup %8782 }
0x273a   :  { %v7090_v6 = vmul.f32 %v8783_v5, %v7074_v34  ;;  %v7105_v7 = vadd.f32 %v7635_v63, %v7097_v4 }
0x273c   :  { %v7098_v8 = vmul.f32 %v7634_v61, %v7090_v6  ;;  %8406 = vmatprep.mubr.msk.f32.mxu1 %vm308_vm2, %v7105_v7 }
0x273e   :  { %v7106_v60 = vadd.f32 %v7635_v63, %v7098_v8 }
0x2740   :  { %8407 = vmatmul.mubr.msk.f32.vlgmr.msra.gmra.mrb[88].mxu1 %vm308_vm2, %v7106_v60 }
0x2741   :  { %8602 = vmatpush3.bf16.msra.mxu1 %v8599_v39 }
0x2742   :  { %8604 = vmatprep.subr.bf16.mxu1 %v8603_v44 }
0x2745   :  { %8606 = vmatpush3.bf16.msra.mxu1 %v8603_v44 }
0x2813   :  { %v8408_v11 = vpop.f32.mrb[88].mxu1 }
0x2814   :  { %v7198_v12 = vadd.f32 %v8408_v11, %v7637_v10  ;;  %v7192_v13 = vpop.f32.mrb[89].mxu1 }
0x2815   :  { %v7193_v14 = vadd.f32 %v7637_v10, %v7192_v13 }
0x2816   :  { %v7202_v16 = vmax.f32 %v7198_v12, 0.0 }
0x2817   :  { %v7201_v15 = vmax.f32 %v7193_v14, 0.0 }
0x2819   :  { %8425 = vmatprep.mubr.msk.f32.mxu0 %vm3693_vm11, %v7201_v15 }
0x281a   :  { %8426 = vmatmul.mubr.msk.f32.vlgmr.msra.gmra.mrb[66].mxu0 %vm3693_vm11, %v7202_v16 }
0x28ed   :  { %v8427_v18 = vpop.f32.mrb[66].mxu0 }
0x28ee   :  { %v7298_v20 = vadd.f32 %v8427_v18, %v7649_v1  ;;  %v7292_v22 = vpop.f32.mrb[67].mxu0 }
0x28ef   :  { %v7293_v24 = vadd.f32 %v7649_v1, %v7292_v22 }
0x28f0   :  { %v7302_v23 = vadd.f32 %v7298_v20, %v7106_v60 }
0x28f1   :  { %v7301_v26 = vadd.f32 %v7293_v24, %v7105_v7 }
0x28f2   :  { %v7310_v27 = vsel %vm308_vm2, %v7302_v23, 0.0 }
0x28f3   :  { %7311 = vadd.xlane.f32.xlu0 %v7310_v27  ;;  %v7307_v28 = vsel %vm308_vm2, %v7301_v26, 0.0 }
0x28f4   :  { %7308 = vadd.xlane.f32.xlu1 %v7307_v28 }
0x2980   :  { %v7312_v29 = vpop.xlane.xlu0 %7311 }
0x2981   :  { %v7314_v48 = vmul.f32 0.03125, %v7312_v29  ;;  %v7309_v30 = vpop.xlane.xlu1 %7308 }
0x2982   :  { %v7313_v31 = vmul.f32 0.03125, %v7309_v30 }
0x2983   :  { %v7316_v32 = vsub.f32 %v7302_v23, %v7314_v48 }
0x2984   :  { %v7315_v38 = vsub.f32 %v7301_v26, %v7313_v31 }
0x2985   :  { %v7318_v3 = vmul.f32 %v7316_v32, %v7316_v32 }
0x2986   :  { %v7317_v33 = vmul.f32 %v7315_v38, %v7315_v38 }
0x2987   :  { %v7322_v34 = vsel %vm308_vm2, %v7318_v3, 0.0 }
0x2988   :  { %7323 = vadd.xlane.f32.xlu0 %v7322_v34  ;;  %v7319_v36 = vsel %vm308_vm2, %v7317_v33, 0.0 }
0x2989   :  { %7320 = vadd.xlane.f32.xlu1 %v7319_v36 }
0x2a15   :  { %v7324_v25 = vpop.xlane.xlu0 %7323 }
0x2a16   :  { %v7326_v45 = vmul.f32 0.03125, %v7324_v25  ;;  %v7321_v47 = vpop.xlane.xlu1 %7320 }
0x2a17   :  { %v7325_v49 = vmul.f32 0.03125, %v7321_v47 }
0x2a18   :  { %v7328_v21 = vadd.f32 1e-12, %v7326_v45 }
0x2a19   :  { %v7327_v0 = vadd.f32 1e-12, %v7325_v49 }
0x2a1a   :  { %8784 = vrsqrt.f32 %v7328_v21 }
0x2a1b   :  { %8786 = vrsqrt.f32 %v7327_v0 }
0x2a24   :  { %v8785_v51 = vpop.eup %8784 }
0x2a25   :  { %v8787_v50 = vpop.eup %8786  ;;  %v7332_v54 = vmul.f32 %v8785_v51, %v7316_v32 }
0x2a26   :  { %v7331_v42 = vmul.f32 %v8787_v50, %v7315_v38 }
0x2a27   :  { %v7340_v41 = vmul.f32 %v7654_v53, %v7332_v54 }
0x2a28   :  { %v7339_v40 = vmul.f32 %v7654_v53, %v7331_v42 }
0x2a29   :  { %v7348_v57 = vadd.f32 %v7655_v2, %v7340_v41 }
0x2a2a   :  { %v7347_v55 = vadd.f32 %v7655_v2, %v7339_v40 }
0x2a2c   :  { %8436 = vmatprep.mubr.msk.f32.mxu1 %vm308_vm2, %v7347_v55 }
0x2a2d   :  { %8437 = vmatmul.mubr.msk.f32.vlgmr.msra.gmra.mrb[90].mxu1 %vm308_vm2, %v7348_v57 }
0x2b00   :  { %v8438_v43 = vpop.f32.mrb[90].mxu1 }
0x2b01   :  { %v7438_v56 = vadd.f32 %v8438_v43, %v7656_v46  ;;  %v7432_v58 = vpop.f32.mrb[91].mxu1 }
0x2b02   :  { %v7433_v61 = vadd.f32 %v7656_v46, %v7432_v58 }
0x2b03   :  { %7442 = vst [vmem:[#allocation14 + $0x8] sm:$0xff] %v7438_v56 }
0x2b04   :  { %7441 = vst [vmem:[#allocation14] sm:$0xff] %v7433_v61 }
0x2b05   :  { %8955 = shalt.err (!%p8952_p4)
}
0x2b06   :  { %s10513_s8 = sld [smem:[#allocation36_spill]] }
0x2b0c   :  { %s8956_s3 = scalar_lea.hbm %s10513_s8, 256 }
0x2b0d   :  { %p8957_p5 = scmp.ne.s32.totalorder %s10513_s8, %s8956_s3  ;;  %p8960_p6 = scmp.lt.u32.totalorder %s8956_s3, %s10513_s8 }
0x2b0f   :  { %p8962_p7 = pnand %p8960_p6, %p8957_p5 }
0x2b11   :  { %8965 = shalt.err (!%p8962_p7)
}
0x2b12   :  { %s10514_s11 = smov 128  }
0x2b13   :  { %7454 = dma.vmem_to_hbm [thread:$0]  %s7449_s21, 256, %s10513_s8, [#allocation4], %s10514_s11, %s10514_s11, %s10499_s2  }
0x2b14   :  { %8974 = dma.done.wait [#allocation4], 256  }
0x2b15   :  { %8975 = vsyncadd [#allocation4], 4294967040 }
0x2b16   :  { %7458 = vsyncpa [#allocation3], 1 }
0x2b17   :  { %7459 = vsyncpa [#allocation6], 1 }
0x2b18   :  { %7460 = vsyncpa [#allocation9], 1 }
0x2b19   :  { %7461 = vsyncpa [#allocation12], 1 }
0x2b1a   :  { %7462 = vsyncpa [#allocation4], 1 }

</bundles_post_ra>
